<compile_context>
chip_gen: v5e
topology: v5e:2x2
jax: 0.10.0
libtpu: 0.0.40
codegen_flags: <defaults>
</compile_context>

<pallas_src>
import jax
import jax.numpy as jnp
from jax.experimental import pallas as pl
from jax.experimental.pallas import tpu as pltpu

# ---------------- small config consistent with the PyTorch module ----------------
VOCAB_SIZE = 256
EMBED_DIM  = 64                       # ModelArgs.embeddings_dims (scaled down)
BLOCK_SIZE = 16                       # seq len
BATCH      = 2
N_LAYERS   = 2                        # ModelArgs.no_of_decoder_layers (scaled down)
N_HEADS    = 8                        # ModelArgs.no_of_heads
MQA_HEADS  = 2                        # ModelArgs.mqa_heads / no_kv_heads
N_GROUPS   = N_HEADS // MQA_HEADS     # GQA.no_of_q_heads -> 4 MQA groups
KV_HEADS   = 2                        # MQA.no_of_kv_heads (query heads per group)
HEAD_DIM   = EMBED_DIM // N_GROUPS    # MQA.head_size = 16
HALF_HEAD  = HEAD_DIM // 2            # 8
FFN_HIDDEN = int(2 * (4 * EMBED_DIM) / 3)      # 170 (SWiGLU hidden dims)
FFN_PAD    = 256                      # zero-padded to a lane multiple of 128
RMS_EPS    = 1.1920929e-07            # torch.nn.RMSNorm(eps=None) -> finfo(f32).eps
NEG_INF    = -1e30


# ---------------------------------- kernel math ----------------------------------
def _rms(x, w):
    ms = jnp.mean(x * x, axis=-1, keepdims=True)
    return x * jax.lax.rsqrt(ms + RMS_EPS) * w


def _decoder_layer(x, n1, wq, wk, wv, weff, n2, w1, w2, w3, cos_t, sin_t, bias):
    """One DecoderLayer on a [T, E] residual slab (f32 math, bf16 MXU operands)."""
    T = x.shape[0]
    bf = jnp.bfloat16
    H, G, KV, hh, hd = N_HEADS, N_GROUPS, KV_HEADS, HALF_HEAD, HEAD_DIM

    # ---- attention: RMSNorm1 + head-batched QKV + RoPE + causal softmax + Wo∘Wgqa ----
    xn = _rms(x, n1).astype(bf)                                     # [T, E]
    xq = jnp.broadcast_to(xn[None], (H, T, EMBED_DIM))              # [H, T, E]
    xkv = jnp.broadcast_to(xn[None], (G, T, EMBED_DIM))             # [G, T, E]
    q = jnp.einsum('hte,hed->htd', xq, wq, preferred_element_type=jnp.float32)
    k = jnp.einsum('gte,ged->gtd', xkv, wk, preferred_element_type=jnp.float32)
    v = jnp.einsum('gte,ged->gtd', xkv, wv, preferred_element_type=jnp.float32)

    # interleaved RoPE; channels pre-permuted to [even | odd] halves at init time
    qe, qo = q[..., :hh], q[..., hh:]
    ke, ko = k[..., :hh], k[..., hh:]
    cq, sq = cos_t[None], sin_t[None]                               # [1, T, hh]
    qre = (qe * cq - qo * sq).astype(bf)
    qro = (qo * cq + qe * sq).astype(bf)
    kre = (ke * cq - ko * sq).astype(bf)
    kro = (ko * cq + ke * sq).astype(bf)

    # share each group's K/V across its KV_HEADS query heads (head h -> group h // KV)
    kre_h = jnp.broadcast_to(kre[:, None], (G, KV, T, hh)).reshape(H, T, hh)
    kro_h = jnp.broadcast_to(kro[:, None], (G, KV, T, hh)).reshape(H, T, hh)
    v_h = jnp.broadcast_to(v.astype(bf)[:, None], (G, KV, T, hd)).reshape(H, T, hd)

    # batched scores (dot over hd is permutation-invariant -> even/odd halves sum)
    scale = hd ** -0.5
    s = (jnp.einsum('hqd,hkd->hqk', qre, kre_h, preferred_element_type=jnp.float32)
         + jnp.einsum('hqd,hkd->hqk', qro, kro_h, preferred_element_type=jnp.float32))
    s = s * scale + bias[None]                                       # additive causal mask
    s = s - jnp.max(s, axis=-1, keepdims=True)
    p = jnp.exp(s)
    p = p * pl.reciprocal(jnp.sum(p, axis=-1, keepdims=True), approx=True)

    o = jnp.einsum('hqk,hkd->hqd', p.astype(bf), v_h,
                   preferred_element_type=jnp.float32)                # [H, T, hd]
    # fused (Wo ∘ Wgqa) output projection: weff is [H, hd, E]; sum over heads
    y = jnp.sum(jnp.einsum('htc,hce->hte', o.astype(bf), weff,
                           preferred_element_type=jnp.float32), axis=0)
    x = x + y                                                         # residual add

    # ---- FFN: RMSNorm2 + SwiGLU (hidden zero-padded to FFN_PAD lanes) ----
    xb = _rms(x, n2).astype(bf)
    h1 = jnp.dot(xb, w1, preferred_element_type=jnp.float32)
    h2 = jnp.dot(xb, w2, preferred_element_type=jnp.float32)
    gate = h1 * jax.nn.sigmoid(h1)                                    # Swish / SiLU
    y = jnp.dot((gate * h2).astype(bf), w3, preferred_element_type=jnp.float32)
    return x + y                                                      # residual add


def _llama_fwd_kernel(x_ref, cos_ref, sin_ref, bias_ref,
                      n1_ref, wq_ref, wk_ref, wv_ref, weff_ref,
                      n2_ref, w1_ref, w2_ref, w3_ref,
                      nf_ref, lmw_ref, lmb_ref, o_ref):
    # whole forward for one batch element; residual stream stays in VMEM/vregs
    x = x_ref[0].astype(jnp.float32)                                  # [T, E]
    cos_t = cos_ref[...]
    sin_t = sin_ref[...]
    bias = bias_ref[...]
    for l in range(N_LAYERS):                                         # static unroll
        x = _decoder_layer(x,
                           n1_ref[l], wq_ref[l], wk_ref[l], wv_ref[l], weff_ref[l],
                           n2_ref[l], w1_ref[l], w2_ref[l], w3_ref[l],
                           cos_t, sin_t, bias)
    xn = _rms(x, nf_ref[...])                                         # final RMSNorm
    logits = jnp.dot(xn.astype(lmw_ref.dtype), lmw_ref[...],
                     preferred_element_type=jnp.float32)
    o_ref[0] = (logits + lmb_ref[...]).astype(o_ref.dtype)            # biased vocab head


# ---------------------------------- wrapper ----------------------------------
def llama_call(fused, x_emb):
    B, T, E = x_emb.shape
    L, H, G = N_LAYERS, N_HEADS, N_GROUPS
    return pl.pallas_call(
        _llama_fwd_kernel,
        out_shape=jax.ShapeDtypeStruct((B, T, VOCAB_SIZE), jnp.float32),
        grid=(B,),
        in_specs=[
            pl.BlockSpec((1, T, E), lambda b: (b, 0, 0)),                  # embedded tokens
            pl.BlockSpec((T, HALF_HEAD), lambda b: (0, 0)),                # rope cos
            pl.BlockSpec((T, HALF_HEAD), lambda b: (0, 0)),                # rope sin
            pl.BlockSpec((T, T), lambda b: (0, 0)),                        # causal bias
            pl.BlockSpec((L, 1, E), lambda b: (0, 0, 0)),                  # norm1 (stacked)
            pl.BlockSpec((L, H, E, HEAD_DIM), lambda b: (0, 0, 0, 0)),     # Wq  [L,H,E,hd]
            pl.BlockSpec((L, G, E, HEAD_DIM), lambda b: (0, 0, 0, 0)),     # Wk  [L,G,E,hd]
            pl.BlockSpec((L, G, E, HEAD_DIM), lambda b: (0, 0, 0, 0)),     # Wv  [L,G,E,hd]
            pl.BlockSpec((L, H, HEAD_DIM, E), lambda b: (0, 0, 0, 0)),     # Wo∘Wgqa
            pl.BlockSpec((L, 1, E), lambda b: (0, 0, 0)),                  # norm2 (stacked)
            pl.BlockSpec((L, E, FFN_PAD), lambda b: (0, 0, 0)),            # ffn w1
            pl.BlockSpec((L, E, FFN_PAD), lambda b: (0, 0, 0)),            # ffn w2
            pl.BlockSpec((L, FFN_PAD, E), lambda b: (0, 0, 0)),            # ffn w3
            pl.BlockSpec((1, E), lambda b: (0, 0)),                        # final norm
            pl.BlockSpec((E, VOCAB_SIZE), lambda b: (0, 0)),               # lm head W
            pl.BlockSpec((1, VOCAB_SIZE), lambda b: (0, 0)),               # lm head bias
        ],
        out_specs=pl.BlockSpec((1, T, VOCAB_SIZE), lambda b: (b, 0, 0)),
        compiler_params=pltpu.CompilerParams(dimension_semantics=("parallel",)),
    )(x_emb, fused["rope_cos"], fused["rope_sin"], fused["causal_bias"],
      fused["norm1"], fused["wq"], fused["wk"], fused["wv"], fused["weff"],
      fused["norm2"], fused["ffn_w1"], fused["ffn_w2"], fused["ffn_w3"],
      fused["final_norm"], fused["lm_head_w"], fused["lm_head_b"])


# ---------------------------------- params / fusion ----------------------------------
def init_params(key):
    """Raw per-module weights (same structure as the torch module, [in, out] layout)."""
    def nrm(k, shape):
        return 0.02 * jax.random.normal(k, shape, dtype=jnp.float32)
    keys = jax.random.split(key, 2 + N_LAYERS)
    params = {
        "embed": nrm(keys[0], (VOCAB_SIZE, EMBED_DIM)),
        "final_norm": jnp.ones((EMBED_DIM,), jnp.float32),
        "lm_head_w": nrm(keys[1], (EMBED_DIM, VOCAB_SIZE)),
        "lm_head_b": jnp.zeros((VOCAB_SIZE,), jnp.float32),
        "layers": [],
    }
    for l in range(N_LAYERS):
        lk = jax.random.split(keys[2 + l], 8)
        params["layers"].append({
            "norm1": jnp.ones((EMBED_DIM,), jnp.float32),
            "norm2": jnp.ones((EMBED_DIM,), jnp.float32),
            "wq": nrm(lk[0], (N_GROUPS, KV_HEADS, EMBED_DIM, HEAD_DIM)),
            "wk": nrm(lk[1], (N_GROUPS, EMBED_DIM, HEAD_DIM)),
            "wv": nrm(lk[2], (N_GROUPS, EMBED_DIM, HEAD_DIM)),
            "wo": nrm(lk[3], (N_GROUPS, KV_HEADS * HEAD_DIM, EMBED_DIM)),
            "w_gqa": nrm(lk[4], (N_GROUPS * EMBED_DIM, EMBED_DIM)),
            "ffn_w1": nrm(lk[5], (EMBED_DIM, FFN_HIDDEN)),
            "ffn_w2": nrm(lk[6], (EMBED_DIM, FFN_HIDDEN)),
            "ffn_w3": nrm(lk[7], (FFN_HIDDEN, EMBED_DIM)),
        })
    return params


def rope_tables(T):
    # theta = 10000 ** (-2 * positions / head_dim), positions = arange(0, head_dim, 2)
    # (faithful to RotaryEmbeddings.apply_rope in the reference implementation)
    positions = jnp.arange(0, HEAD_DIM, 2, dtype=jnp.float32)[None, :]
    theta = 10000.0 ** (-2.0 * positions / HEAD_DIM)
    angles = jnp.arange(T, dtype=jnp.float32)[:, None] * theta      # [T, hh]
    return jnp.cos(angles), jnp.sin(angles)


def causal_bias(T):
    row = jnp.arange(T, dtype=jnp.int32)[:, None]
    col = jnp.arange(T, dtype=jnp.int32)[None, :]
    return jnp.where(col <= row, 0.0, NEG_INF).astype(jnp.float32)


def fuse_params(params, block_size=BLOCK_SIZE, dtype=jnp.bfloat16):
    """One-time weight fusion/layout: per-head QKV stacks with lane-contiguous
    even/odd RoPE halves, Wo@Wgqa collapse, FFN zero-padding, RoPE/causal tables,
    per-layer stacking, bf16 cast.  Nothing here runs per forward."""
    E, G, KV, hd, hh, H = EMBED_DIM, N_GROUPS, KV_HEADS, HEAD_DIM, HALF_HEAD, N_HEADS
    wqs, wks, wvs, weffs, w1s, w2s, w3s, n1s, n2s = ([] for _ in range(9))
    for layer in params["layers"]:
        wq = layer["wq"].reshape(H, E, hd)                    # head h = g*KV_HEADS + j
        wqs.append(jnp.concatenate([wq[..., 0::2], wq[..., 1::2]], axis=-1))   # [H,E,hd]
        wk = layer["wk"]
        wks.append(jnp.concatenate([wk[..., 0::2], wk[..., 1::2]], axis=-1))   # [G,E,hd]
        wvs.append(layer["wv"])                                                # [G,E,hd]
        # concat_g(attn_g @ Wo_g) @ Wgqa  ==  sum_h attn_h @ Weff_h  (linear collapse)
        weff = jnp.stack([layer["wo"][g] @ layer["w_gqa"][g * E:(g + 1) * E]
                          for g in range(G)], axis=0)                          # [G,KV*hd,E]
        weffs.append(weff.reshape(H, hd, E))
        w1s.append(jnp.zeros((E, FFN_PAD), jnp.float32).at[:, :FFN_HIDDEN].set(layer["ffn_w1"]))
        w2s.append(jnp.zeros((E, FFN_PAD), jnp.float32).at[:, :FFN_HIDDEN].set(layer["ffn_w2"]))
        w3s.append(jnp.zeros((FFN_PAD, E), jnp.float32).at[:FFN_HIDDEN, :].set(layer["ffn_w3"]))
        n1s.append(layer["norm1"].reshape(1, E))
        n2s.append(layer["norm2"].reshape(1, E))

    cos_t, sin_t = rope_tables(block_size)
    return {
        "embed": params["embed"].astype(dtype),
        "rope_cos": cos_t, "rope_sin": sin_t, "causal_bias": causal_bias(block_size),
        "norm1": jnp.stack(n1s), "norm2": jnp.stack(n2s),              # [L,1,E] f32
        "wq": jnp.stack(wqs).astype(dtype),                            # [L,H,E,hd]
        "wk": jnp.stack(wks).astype(dtype),                            # [L,G,E,hd]
        "wv": jnp.stack(wvs).astype(dtype),                            # [L,G,E,hd]
        "weff": jnp.stack(weffs).astype(dtype),                        # [L,H,hd,E]
        "ffn_w1": jnp.stack(w1s).astype(dtype),                        # [L,E,256]
        "ffn_w2": jnp.stack(w2s).astype(dtype),
        "ffn_w3": jnp.stack(w3s).astype(dtype),                        # [L,256,E]
        "final_norm": params["final_norm"].reshape(1, E),              # f32
        "lm_head_w": params["lm_head_w"].astype(dtype),
        "lm_head_b": params["lm_head_b"].reshape(1, VOCAB_SIZE),       # f32
    }


@jax.jit
def llama_forward(fused, tokens):
    # TODO(synk): nn.Dropout (after embeddings / attention / FFN) is stochastic in
    # train mode; implemented as identity (eval / deterministic).
    x = fused["embed"][tokens]                     # embedding gather (plain-JAX glue)
    return llama_call(fused, x)


if __name__ == "__main__":
    key = jax.random.PRNGKey(0)
    pkey, tkey = jax.random.split(key)
    params = init_params(pkey)
    fused = fuse_params(params)
    tokens = jax.random.randint(tkey, (BATCH, BLOCK_SIZE), 0, VOCAB_SIZE, dtype=jnp.int32)
    logits = jax.block_until_ready(llama_forward(fused, tokens))
    assert logits.shape == (BATCH, BLOCK_SIZE, VOCAB_SIZE)
    assert bool(jnp.all(jnp.isfinite(logits)))
    print("KERNEL_OK")
</pallas_src>

<mosaic_0001>
module attributes {stable_mosaic.version = 11 : i64} {
  func.func @_llama_fwd_kernel(%arg0: i32, %arg1: memref<1x16x64xbf16, #tpu.memory_space<vmem>>, %arg2: memref<16x8xf32, #tpu.memory_space<vmem>>, %arg3: memref<16x8xf32, #tpu.memory_space<vmem>>, %arg4: memref<16x16xf32, #tpu.memory_space<vmem>>, %arg5: memref<2x1x64xf32, #tpu.memory_space<vmem>>, %arg6: memref<2x8x64x16xbf16, #tpu.memory_space<vmem>>, %arg7: memref<2x4x64x16xbf16, #tpu.memory_space<vmem>>, %arg8: memref<2x4x64x16xbf16, #tpu.memory_space<vmem>>, %arg9: memref<2x8x16x64xbf16, #tpu.memory_space<vmem>>, %arg10: memref<2x1x64xf32, #tpu.memory_space<vmem>>, %arg11: memref<2x64x256xbf16, #tpu.memory_space<vmem>>, %arg12: memref<2x64x256xbf16, #tpu.memory_space<vmem>>, %arg13: memref<2x256x64xbf16, #tpu.memory_space<vmem>>, %arg14: memref<1x64xf32, #tpu.memory_space<vmem>>, %arg15: memref<64x256xbf16, #tpu.memory_space<vmem>>, %arg16: memref<1x256xf32, #tpu.memory_space<vmem>>, %arg17: memref<1x16x256xf32, #tpu.memory_space<vmem>>) attributes {dimension_semantics = [#tpu.dimension_semantics<parallel>], iteration_bounds = array<i64: 2>, scalar_prefetch = 0 : i64, scratch_operands = 0 : i64, tpu.core_type = #tpu.core_type<tc>, window_params = [{transform_indices = @transform_0, window_bounds = array<i64: 1, 16, 64>}, {pipeline_mode = #tpu.pipeline_mode<synchronous>, transform_indices = @transform_1, window_bounds = array<i64: 16, 8>}, {pipeline_mode = #tpu.pipeline_mode<synchronous>, transform_indices = @transform_2, window_bounds = array<i64: 16, 8>}, {pipeline_mode = #tpu.pipeline_mode<synchronous>, transform_indices = @transform_3, window_bounds = array<i64: 16, 16>}, {pipeline_mode = #tpu.pipeline_mode<synchronous>, transform_indices = @transform_4, window_bounds = array<i64: 2, 1, 64>}, {pipeline_mode = #tpu.pipeline_mode<synchronous>, transform_indices = @transform_5, window_bounds = array<i64: 2, 8, 64, 16>}, {pipeline_mode = #tpu.pipeline_mode<synchronous>, transform_indices = @transform_6, window_bounds = array<i64: 2, 4, 64, 16>}, {pipeline_mode = #tpu.pipeline_mode<synchronous>, transform_indices = @transform_7, window_bounds = array<i64: 2, 4, 64, 16>}, {pipeline_mode = #tpu.pipeline_mode<synchronous>, transform_indices = @transform_8, window_bounds = array<i64: 2, 8, 16, 64>}, {pipeline_mode = #tpu.pipeline_mode<synchronous>, transform_indices = @transform_9, window_bounds = array<i64: 2, 1, 64>}, {pipeline_mode = #tpu.pipeline_mode<synchronous>, transform_indices = @transform_10, window_bounds = array<i64: 2, 64, 256>}, {pipeline_mode = #tpu.pipeline_mode<synchronous>, transform_indices = @transform_11, window_bounds = array<i64: 2, 64, 256>}, {pipeline_mode = #tpu.pipeline_mode<synchronous>, transform_indices = @transform_12, window_bounds = array<i64: 2, 256, 64>}, {pipeline_mode = #tpu.pipeline_mode<synchronous>, transform_indices = @transform_13, window_bounds = array<i64: 1, 64>}, {pipeline_mode = #tpu.pipeline_mode<synchronous>, transform_indices = @transform_14, window_bounds = array<i64: 64, 256>}, {pipeline_mode = #tpu.pipeline_mode<synchronous>, transform_indices = @transform_15, window_bounds = array<i64: 1, 256>}, {transform_indices = @transform_16, window_bounds = array<i64: 1, 16, 256>}]} {
    %c0 = arith.constant 0 : index
    %c0_0 = arith.constant 0 : index
    %c0_1 = arith.constant 0 : index
    %0 = vector.load %arg1[%c0, %c0_0, %c0_1] : memref<1x16x64xbf16, #tpu.memory_space<vmem>>, vector<1x16x64xbf16>
    %1 = vector.shape_cast %0 : vector<1x16x64xbf16> to vector<16x64xbf16>
    %2 = arith.extf %1 : vector<16x64xbf16> to vector<16x64xf32>
    %c0_2 = arith.constant 0 : index
    %c0_3 = arith.constant 0 : index
    %3 = vector.load %arg2[%c0_2, %c0_3] : memref<16x8xf32, #tpu.memory_space<vmem>>, vector<16x8xf32>
    %c0_4 = arith.constant 0 : index
    %c0_5 = arith.constant 0 : index
    %4 = vector.load %arg3[%c0_4, %c0_5] : memref<16x8xf32, #tpu.memory_space<vmem>>, vector<16x8xf32>
    %c0_6 = arith.constant 0 : index
    %c0_7 = arith.constant 0 : index
    %5 = vector.load %arg4[%c0_6, %c0_7] : memref<16x16xf32, #tpu.memory_space<vmem>>, vector<16x16xf32>
    %c0_8 = arith.constant 0 : index
    %c0_9 = arith.constant 0 : index
    %c0_10 = arith.constant 0 : index
    %6 = vector.load %arg5[%c0_8, %c0_9, %c0_10] : memref<2x1x64xf32, #tpu.memory_space<vmem>>, vector<1x1x64xf32>
    %7 = vector.shape_cast %6 : vector<1x1x64xf32> to vector<1x64xf32>
    %c0_11 = arith.constant 0 : index
    %c0_12 = arith.constant 0 : index
    %c0_13 = arith.constant 0 : index
    %c0_14 = arith.constant 0 : index
    %8 = vector.load %arg6[%c0_11, %c0_12, %c0_13, %c0_14] : memref<2x8x64x16xbf16, #tpu.memory_space<vmem>>, vector<1x8x64x16xbf16>
    %9 = vector.shape_cast %8 : vector<1x8x64x16xbf16> to vector<8x64x16xbf16>
    %c0_15 = arith.constant 0 : index
    %c0_16 = arith.constant 0 : index
    %c0_17 = arith.constant 0 : index
    %c0_18 = arith.constant 0 : index
    %10 = vector.load %arg7[%c0_15, %c0_16, %c0_17, %c0_18] : memref<2x4x64x16xbf16, #tpu.memory_space<vmem>>, vector<1x4x64x16xbf16>
    %11 = vector.shape_cast %10 : vector<1x4x64x16xbf16> to vector<4x64x16xbf16>
    %c0_19 = arith.constant 0 : index
    %c0_20 = arith.constant 0 : index
    %c0_21 = arith.constant 0 : index
    %c0_22 = arith.constant 0 : index
    %12 = vector.load %arg8[%c0_19, %c0_20, %c0_21, %c0_22] : memref<2x4x64x16xbf16, #tpu.memory_space<vmem>>, vector<1x4x64x16xbf16>
    %13 = vector.shape_cast %12 : vector<1x4x64x16xbf16> to vector<4x64x16xbf16>
    %c0_23 = arith.constant 0 : index
    %c0_24 = arith.constant 0 : index
    %c0_25 = arith.constant 0 : index
    %c0_26 = arith.constant 0 : index
    %14 = vector.load %arg9[%c0_23, %c0_24, %c0_25, %c0_26] : memref<2x8x16x64xbf16, #tpu.memory_space<vmem>>, vector<1x8x16x64xbf16>
    %15 = vector.shape_cast %14 : vector<1x8x16x64xbf16> to vector<8x16x64xbf16>
    %c0_27 = arith.constant 0 : index
    %c0_28 = arith.constant 0 : index
    %c0_29 = arith.constant 0 : index
    %16 = vector.load %arg10[%c0_27, %c0_28, %c0_29] : memref<2x1x64xf32, #tpu.memory_space<vmem>>, vector<1x1x64xf32>
    %17 = vector.shape_cast %16 : vector<1x1x64xf32> to vector<1x64xf32>
    %c0_30 = arith.constant 0 : index
    %c0_31 = arith.constant 0 : index
    %c0_32 = arith.constant 0 : index
    %18 = vector.load %arg11[%c0_30, %c0_31, %c0_32] : memref<2x64x256xbf16, #tpu.memory_space<vmem>>, vector<1x64x256xbf16>
    %19 = vector.shape_cast %18 : vector<1x64x256xbf16> to vector<64x256xbf16>
    %c0_33 = arith.constant 0 : index
    %c0_34 = arith.constant 0 : index
    %c0_35 = arith.constant 0 : index
    %20 = vector.load %arg12[%c0_33, %c0_34, %c0_35] : memref<2x64x256xbf16, #tpu.memory_space<vmem>>, vector<1x64x256xbf16>
    %21 = vector.shape_cast %20 : vector<1x64x256xbf16> to vector<64x256xbf16>
    %c0_36 = arith.constant 0 : index
    %c0_37 = arith.constant 0 : index
    %c0_38 = arith.constant 0 : index
    %22 = vector.load %arg13[%c0_36, %c0_37, %c0_38] : memref<2x256x64xbf16, #tpu.memory_space<vmem>>, vector<1x256x64xbf16>
    %23 = vector.shape_cast %22 : vector<1x256x64xbf16> to vector<256x64xbf16>
    %24 = arith.mulf %2, %2 : vector<16x64xf32>
    %cst = arith.constant dense<0.000000e+00> : vector<16xf32>
    %25 = vector.multi_reduction <add>, %24, %cst [1] : vector<16x64xf32> to vector<16xf32>
    %26 = vector.shape_cast %25 : vector<16xf32> to vector<16x1xf32>
    %cst_39 = arith.constant 6.400000e+01 : f32
    %27 = vector.broadcast %cst_39 : f32 to vector<16x1xf32>
    %28 = arith.divf %26, %27 : vector<16x1xf32>
    %cst_40 = arith.constant 1.1920929E-7 : f32
    %29 = vector.broadcast %cst_40 : f32 to vector<16x1xf32>
    %30 = arith.addf %28, %29 : vector<16x1xf32>
    %31 = math.rsqrt %30 : vector<16x1xf32>
    %32 = vector.broadcast %31 : vector<16x1xf32> to vector<16x64xf32>
    %33 = arith.mulf %2, %32 : vector<16x64xf32>
    %34 = vector.broadcast %7 : vector<1x64xf32> to vector<16x64xf32>
    %35 = arith.mulf %33, %34 : vector<16x64xf32>
    %36 = arith.truncf %35 : vector<16x64xf32> to vector<16x64xbf16>
    %37 = vector.shape_cast %36 : vector<16x64xbf16> to vector<1x16x64xbf16>
    %38 = vector.shape_cast %37 : vector<1x16x64xbf16> to vector<1x16x64xbf16>
    %39 = vector.broadcast %38 : vector<1x16x64xbf16> to vector<8x16x64xbf16>
    %40 = vector.shape_cast %36 : vector<16x64xbf16> to vector<1x16x64xbf16>
    %41 = vector.shape_cast %40 : vector<1x16x64xbf16> to vector<1x16x64xbf16>
    %42 = vector.broadcast %41 : vector<1x16x64xbf16> to vector<4x16x64xbf16>
    "tpu.trace_start"() <{level = 10 : i32, message = "hte,hed->htd"}> : () -> ()
    %cst_41 = arith.constant dense<0.000000e+00> : vector<8x16x16xf32>
    %43 = tpu.matmul %39, %9, %cst_41 {dimension_numbers = #tpu.dot_dimension_numbers<[2], [1], [1], [2], [0, 0, 0, 1, 1, 2], [0], [0]>} : vector<8x16x64xbf16>, vector<8x64x16xbf16>, vector<8x16x16xf32> -> vector<8x16x16xf32>
    "tpu.trace_stop"() : () -> ()
    "tpu.trace_start"() <{level = 10 : i32, message = "gte,ged->gtd"}> : () -> ()
    %cst_42 = arith.constant dense<0.000000e+00> : vector<4x16x16xf32>
    %44 = tpu.matmul %42, %11, %cst_42 {dimension_numbers = #tpu.dot_dimension_numbers<[2], [1], [1], [2], [0, 0, 0, 1, 1, 2], [0], [0]>} : vector<4x16x64xbf16>, vector<4x64x16xbf16>, vector<4x16x16xf32> -> vector<4x16x16xf32>
    %cst_43 = arith.constant dense<0.000000e+00> : vector<4x16x16xf32>
    %45 = tpu.matmul %42, %13, %cst_43 {dimension_numbers = #tpu.dot_dimension_numbers<[2], [1], [1], [2], [0, 0, 0, 1, 1, 2], [0], [0]>} : vector<4x16x64xbf16>, vector<4x64x16xbf16>, vector<4x16x16xf32> -> vector<4x16x16xf32>
    "tpu.trace_stop"() : () -> ()
    %46 = vector.extract_strided_slice %43 {offsets = [0, 0, 0], sizes = [8, 16, 8], strides = [1, 1, 1]} : vector<8x16x16xf32> to vector<8x16x8xf32>
    %47 = vector.extract_strided_slice %43 {offsets = [0, 0, 8], sizes = [8, 16, 8], strides = [1, 1, 1]} : vector<8x16x16xf32> to vector<8x16x8xf32>
    %48 = vector.extract_strided_slice %44 {offsets = [0, 0, 0], sizes = [4, 16, 8], strides = [1, 1, 1]} : vector<4x16x16xf32> to vector<4x16x8xf32>
    %49 = vector.extract_strided_slice %44 {offsets = [0, 0, 8], sizes = [4, 16, 8], strides = [1, 1, 1]} : vector<4x16x16xf32> to vector<4x16x8xf32>
    %50 = vector.shape_cast %3 : vector<16x8xf32> to vector<1x16x8xf32>
    %51 = vector.shape_cast %4 : vector<16x8xf32> to vector<1x16x8xf32>
    %52 = vector.broadcast %50 : vector<1x16x8xf32> to vector<8x16x8xf32>
    %53 = arith.mulf %46, %52 : vector<8x16x8xf32>
    %54 = vector.broadcast %51 : vector<1x16x8xf32> to vector<8x16x8xf32>
    %55 = arith.mulf %47, %54 : vector<8x16x8xf32>
    %56 = arith.subf %53, %55 : vector<8x16x8xf32>
    %57 = arith.truncf %56 : vector<8x16x8xf32> to vector<8x16x8xbf16>
    %58 = vector.broadcast %50 : vector<1x16x8xf32> to vector<8x16x8xf32>
    %59 = arith.mulf %47, %58 : vector<8x16x8xf32>
    %60 = vector.broadcast %51 : vector<1x16x8xf32> to vector<8x16x8xf32>
    %61 = arith.mulf %46, %60 : vector<8x16x8xf32>
    %62 = arith.addf %59, %61 : vector<8x16x8xf32>
    %63 = arith.truncf %62 : vector<8x16x8xf32> to vector<8x16x8xbf16>
    %64 = vector.broadcast %50 : vector<1x16x8xf32> to vector<4x16x8xf32>
    %65 = arith.mulf %48, %64 : vector<4x16x8xf32>
    %66 = vector.broadcast %51 : vector<1x16x8xf32> to vector<4x16x8xf32>
    %67 = arith.mulf %49, %66 : vector<4x16x8xf32>
    %68 = arith.subf %65, %67 : vector<4x16x8xf32>
    %69 = arith.truncf %68 : vector<4x16x8xf32> to vector<4x16x8xbf16>
    %70 = vector.broadcast %50 : vector<1x16x8xf32> to vector<4x16x8xf32>
    %71 = arith.mulf %49, %70 : vector<4x16x8xf32>
    %72 = vector.broadcast %51 : vector<1x16x8xf32> to vector<4x16x8xf32>
    %73 = arith.mulf %48, %72 : vector<4x16x8xf32>
    %74 = arith.addf %71, %73 : vector<4x16x8xf32>
    %75 = arith.truncf %74 : vector<4x16x8xf32> to vector<4x16x8xbf16>
    %76 = vector.shape_cast %69 : vector<4x16x8xbf16> to vector<4x1x16x8xbf16>
    %77 = vector.shape_cast %76 : vector<4x1x16x8xbf16> to vector<4x1x16x8xbf16>
    %78 = vector.broadcast %77 : vector<4x1x16x8xbf16> to vector<4x2x16x8xbf16>
    %79 = vector.shape_cast %78 : vector<4x2x16x8xbf16> to vector<8x16x8xbf16>
    %80 = vector.shape_cast %75 : vector<4x16x8xbf16> to vector<4x1x16x8xbf16>
    %81 = vector.shape_cast %80 : vector<4x1x16x8xbf16> to vector<4x1x16x8xbf16>
    %82 = vector.broadcast %81 : vector<4x1x16x8xbf16> to vector<4x2x16x8xbf16>
    %83 = vector.shape_cast %82 : vector<4x2x16x8xbf16> to vector<8x16x8xbf16>
    %84 = arith.truncf %45 : vector<4x16x16xf32> to vector<4x16x16xbf16>
    %85 = vector.shape_cast %84 : vector<4x16x16xbf16> to vector<4x1x16x16xbf16>
    %86 = vector.shape_cast %85 : vector<4x1x16x16xbf16> to vector<4x1x16x16xbf16>
    %87 = vector.broadcast %86 : vector<4x1x16x16xbf16> to vector<4x2x16x16xbf16>
    %88 = vector.shape_cast %87 : vector<4x2x16x16xbf16> to vector<8x16x16xbf16>
    "tpu.trace_start"() <{level = 10 : i32, message = "hqd,hkd->hqk"}> : () -> ()
    %cst_44 = arith.constant dense<0.000000e+00> : vector<8x16x16xf32>
    %89 = tpu.matmul %57, %79, %cst_44 {dimension_numbers = #tpu.dot_dimension_numbers<[2], [2], [1], [1], [0, 0, 0, 1, 1, 1], [0], [0]>} : vector<8x16x8xbf16>, vector<8x16x8xbf16>, vector<8x16x16xf32> -> vector<8x16x16xf32>
    %cst_45 = arith.constant dense<0.000000e+00> : vector<8x16x16xf32>
    %90 = tpu.matmul %63, %83, %cst_45 {dimension_numbers = #tpu.dot_dimension_numbers<[2], [2], [1], [1], [0, 0, 0, 1, 1, 1], [0], [0]>} : vector<8x16x8xbf16>, vector<8x16x8xbf16>, vector<8x16x16xf32> -> vector<8x16x16xf32>
    "tpu.trace_stop"() : () -> ()
    %91 = arith.addf %89, %90 : vector<8x16x16xf32>
    %cst_46 = arith.constant 2.500000e-01 : f32
    %92 = vector.broadcast %cst_46 : f32 to vector<8x16x16xf32>
    %93 = arith.mulf %91, %92 : vector<8x16x16xf32>
    %94 = vector.shape_cast %5 : vector<16x16xf32> to vector<1x16x16xf32>
    %95 = vector.broadcast %94 : vector<1x16x16xf32> to vector<8x16x16xf32>
    %96 = arith.addf %93, %95 : vector<8x16x16xf32>
    %cst_47 = arith.constant dense<0xFF800000> : vector<8x16xf32>
    %97 = vector.multi_reduction <maximumf>, %96, %cst_47 [2] : vector<8x16x16xf32> to vector<8x16xf32>
    %98 = vector.shape_cast %97 : vector<8x16xf32> to vector<8x16x1xf32>
    %99 = vector.broadcast %98 : vector<8x16x1xf32> to vector<8x16x16xf32>
    %100 = arith.subf %96, %99 : vector<8x16x16xf32>
    %101 = math.exp %100 : vector<8x16x16xf32>
    %cst_48 = arith.constant dense<0.000000e+00> : vector<8x16xf32>
    %102 = vector.multi_reduction <add>, %101, %cst_48 [2] : vector<8x16x16xf32> to vector<8x16xf32>
    %103 = vector.shape_cast %102 : vector<8x16xf32> to vector<8x16x1xf32>
    %104 = tpu.reciprocal %103 {approx = true} : vector<8x16x1xf32> -> vector<8x16x1xf32>
    %105 = vector.broadcast %104 : vector<8x16x1xf32> to vector<8x16x16xf32>
    %106 = arith.mulf %101, %105 : vector<8x16x16xf32>
    %107 = arith.truncf %106 : vector<8x16x16xf32> to vector<8x16x16xbf16>
    "tpu.trace_start"() <{level = 10 : i32, message = "hqk,hkd->hqd"}> : () -> ()
    %cst_49 = arith.constant dense<0.000000e+00> : vector<8x16x16xf32>
    %108 = tpu.matmul %107, %88, %cst_49 {dimension_numbers = #tpu.dot_dimension_numbers<[2], [1], [1], [2], [0, 0, 0, 1, 1, 2], [0], [0]>} : vector<8x16x16xbf16>, vector<8x16x16xbf16>, vector<8x16x16xf32> -> vector<8x16x16xf32>
    "tpu.trace_stop"() : () -> ()
    %109 = arith.truncf %108 : vector<8x16x16xf32> to vector<8x16x16xbf16>
    "tpu.trace_start"() <{level = 10 : i32, message = "htc,hce->hte"}> : () -> ()
    %cst_50 = arith.constant dense<0.000000e+00> : vector<8x16x64xf32>
    %110 = tpu.matmul %109, %15, %cst_50 {dimension_numbers = #tpu.dot_dimension_numbers<[2], [1], [1], [2], [0, 0, 0, 1, 1, 2], [0], [0]>} : vector<8x16x16xbf16>, vector<8x16x64xbf16>, vector<8x16x64xf32> -> vector<8x16x64xf32>
    "tpu.trace_stop"() : () -> ()
    %cst_51 = arith.constant dense<0.000000e+00> : vector<16x64xf32>
    %111 = vector.multi_reduction <add>, %110, %cst_51 [0] : vector<8x16x64xf32> to vector<16x64xf32>
    %112 = arith.addf %2, %111 : vector<16x64xf32>
    %113 = arith.mulf %112, %112 : vector<16x64xf32>
    %cst_52 = arith.constant dense<0.000000e+00> : vector<16xf32>
    %114 = vector.multi_reduction <add>, %113, %cst_52 [1] : vector<16x64xf32> to vector<16xf32>
    %115 = vector.shape_cast %114 : vector<16xf32> to vector<16x1xf32>
    %cst_53 = arith.constant 6.400000e+01 : f32
    %116 = vector.broadcast %cst_53 : f32 to vector<16x1xf32>
    %117 = arith.divf %115, %116 : vector<16x1xf32>
    %cst_54 = arith.constant 1.1920929E-7 : f32
    %118 = vector.broadcast %cst_54 : f32 to vector<16x1xf32>
    %119 = arith.addf %117, %118 : vector<16x1xf32>
    %120 = math.rsqrt %119 : vector<16x1xf32>
    %121 = vector.broadcast %120 : vector<16x1xf32> to vector<16x64xf32>
    %122 = arith.mulf %112, %121 : vector<16x64xf32>
    %123 = vector.broadcast %17 : vector<1x64xf32> to vector<16x64xf32>
    %124 = arith.mulf %122, %123 : vector<16x64xf32>
    %125 = arith.truncf %124 : vector<16x64xf32> to vector<16x64xbf16>
    %cst_55 = arith.constant dense<0.000000e+00> : vector<16x256xf32>
    %126 = tpu.matmul %125, %19, %cst_55 {dimension_numbers = #tpu.dot_dimension_numbers<[1], [0], [0], [1], [0, 0, 1, 1], [], []>} : vector<16x64xbf16>, vector<64x256xbf16>, vector<16x256xf32> -> vector<16x256xf32>
    %cst_56 = arith.constant dense<0.000000e+00> : vector<16x256xf32>
    %127 = tpu.matmul %125, %21, %cst_56 {dimension_numbers = #tpu.dot_dimension_numbers<[1], [0], [0], [1], [0, 0, 1, 1], [], []>} : vector<16x64xbf16>, vector<64x256xbf16>, vector<16x256xf32> -> vector<16x256xf32>
    %128 = arith.negf %126 : vector<16x256xf32>
    %129 = math.exp %128 : vector<16x256xf32>
    %cst_57 = arith.constant 1.000000e+00 : f32
    %130 = vector.broadcast %cst_57 : f32 to vector<16x256xf32>
    %131 = arith.addf %130, %129 : vector<16x256xf32>
    %132 = arith.divf %130, %131 : vector<16x256xf32>
    %133 = arith.mulf %126, %132 : vector<16x256xf32>
    %134 = arith.mulf %133, %127 : vector<16x256xf32>
    %135 = arith.truncf %134 : vector<16x256xf32> to vector<16x256xbf16>
    %cst_58 = arith.constant dense<0.000000e+00> : vector<16x64xf32>
    %136 = tpu.matmul %135, %23, %cst_58 {dimension_numbers = #tpu.dot_dimension_numbers<[1], [0], [0], [1], [0, 0, 1, 1], [], []>} : vector<16x256xbf16>, vector<256x64xbf16>, vector<16x64xf32> -> vector<16x64xf32>
    %137 = arith.addf %112, %136 : vector<16x64xf32>
    %c1 = arith.constant 1 : index
    %c0_59 = arith.constant 0 : index
    %c0_60 = arith.constant 0 : index
    %138 = vector.load %arg5[%c1, %c0_59, %c0_60] : memref<2x1x64xf32, #tpu.memory_space<vmem>>, vector<1x1x64xf32>
    %139 = vector.shape_cast %138 : vector<1x1x64xf32> to vector<1x64xf32>
    %c1_61 = arith.constant 1 : index
    %c0_62 = arith.constant 0 : index
    %c0_63 = arith.constant 0 : index
    %c0_64 = arith.constant 0 : index
    %140 = vector.load %arg6[%c1_61, %c0_62, %c0_63, %c0_64] : memref<2x8x64x16xbf16, #tpu.memory_space<vmem>>, vector<1x8x64x16xbf16>
    %141 = vector.shape_cast %140 : vector<1x8x64x16xbf16> to vector<8x64x16xbf16>
    %c1_65 = arith.constant 1 : index
    %c0_66 = arith.constant 0 : index
    %c0_67 = arith.constant 0 : index
    %c0_68 = arith.constant 0 : index
    %142 = vector.load %arg7[%c1_65, %c0_66, %c0_67, %c0_68] : memref<2x4x64x16xbf16, #tpu.memory_space<vmem>>, vector<1x4x64x16xbf16>
    %143 = vector.shape_cast %142 : vector<1x4x64x16xbf16> to vector<4x64x16xbf16>
    %c1_69 = arith.constant 1 : index
    %c0_70 = arith.constant 0 : index
    %c0_71 = arith.constant 0 : index
    %c0_72 = arith.constant 0 : index
    %144 = vector.load %arg8[%c1_69, %c0_70, %c0_71, %c0_72] : memref<2x4x64x16xbf16, #tpu.memory_space<vmem>>, vector<1x4x64x16xbf16>
    %145 = vector.shape_cast %144 : vector<1x4x64x16xbf16> to vector<4x64x16xbf16>
    %c1_73 = arith.constant 1 : index
    %c0_74 = arith.constant 0 : index
    %c0_75 = arith.constant 0 : index
    %c0_76 = arith.constant 0 : index
    %146 = vector.load %arg9[%c1_73, %c0_74, %c0_75, %c0_76] : memref<2x8x16x64xbf16, #tpu.memory_space<vmem>>, vector<1x8x16x64xbf16>
    %147 = vector.shape_cast %146 : vector<1x8x16x64xbf16> to vector<8x16x64xbf16>
    %c1_77 = arith.constant 1 : index
    %c0_78 = arith.constant 0 : index
    %c0_79 = arith.constant 0 : index
    %148 = vector.load %arg10[%c1_77, %c0_78, %c0_79] : memref<2x1x64xf32, #tpu.memory_space<vmem>>, vector<1x1x64xf32>
    %149 = vector.shape_cast %148 : vector<1x1x64xf32> to vector<1x64xf32>
    %c1_80 = arith.constant 1 : index
    %c0_81 = arith.constant 0 : index
    %c0_82 = arith.constant 0 : index
    %150 = vector.load %arg11[%c1_80, %c0_81, %c0_82] : memref<2x64x256xbf16, #tpu.memory_space<vmem>>, vector<1x64x256xbf16>
    %151 = vector.shape_cast %150 : vector<1x64x256xbf16> to vector<64x256xbf16>
    %c1_83 = arith.constant 1 : index
    %c0_84 = arith.constant 0 : index
    %c0_85 = arith.constant 0 : index
    %152 = vector.load %arg12[%c1_83, %c0_84, %c0_85] : memref<2x64x256xbf16, #tpu.memory_space<vmem>>, vector<1x64x256xbf16>
    %153 = vector.shape_cast %152 : vector<1x64x256xbf16> to vector<64x256xbf16>
    %c1_86 = arith.constant 1 : index
    %c0_87 = arith.constant 0 : index
    %c0_88 = arith.constant 0 : index
    %154 = vector.load %arg13[%c1_86, %c0_87, %c0_88] : memref<2x256x64xbf16, #tpu.memory_space<vmem>>, vector<1x256x64xbf16>
    %155 = vector.shape_cast %154 : vector<1x256x64xbf16> to vector<256x64xbf16>
    %156 = arith.mulf %137, %137 : vector<16x64xf32>
    %cst_89 = arith.constant dense<0.000000e+00> : vector<16xf32>
    %157 = vector.multi_reduction <add>, %156, %cst_89 [1] : vector<16x64xf32> to vector<16xf32>
    %158 = vector.shape_cast %157 : vector<16xf32> to vector<16x1xf32>
    %cst_90 = arith.constant 6.400000e+01 : f32
    %159 = vector.broadcast %cst_90 : f32 to vector<16x1xf32>
    %160 = arith.divf %158, %159 : vector<16x1xf32>
    %cst_91 = arith.constant 1.1920929E-7 : f32
    %161 = vector.broadcast %cst_91 : f32 to vector<16x1xf32>
    %162 = arith.addf %160, %161 : vector<16x1xf32>
    %163 = math.rsqrt %162 : vector<16x1xf32>
    %164 = vector.broadcast %163 : vector<16x1xf32> to vector<16x64xf32>
    %165 = arith.mulf %137, %164 : vector<16x64xf32>
    %166 = vector.broadcast %139 : vector<1x64xf32> to vector<16x64xf32>
    %167 = arith.mulf %165, %166 : vector<16x64xf32>
    %168 = arith.truncf %167 : vector<16x64xf32> to vector<16x64xbf16>
    %169 = vector.shape_cast %168 : vector<16x64xbf16> to vector<1x16x64xbf16>
    %170 = vector.shape_cast %169 : vector<1x16x64xbf16> to vector<1x16x64xbf16>
    %171 = vector.broadcast %170 : vector<1x16x64xbf16> to vector<8x16x64xbf16>
    %172 = vector.shape_cast %168 : vector<16x64xbf16> to vector<1x16x64xbf16>
    %173 = vector.shape_cast %172 : vector<1x16x64xbf16> to vector<1x16x64xbf16>
    %174 = vector.broadcast %173 : vector<1x16x64xbf16> to vector<4x16x64xbf16>
    "tpu.trace_start"() <{level = 10 : i32, message = "hte,hed->htd"}> : () -> ()
    %cst_92 = arith.constant dense<0.000000e+00> : vector<8x16x16xf32>
    %175 = tpu.matmul %171, %141, %cst_92 {dimension_numbers = #tpu.dot_dimension_numbers<[2], [1], [1], [2], [0, 0, 0, 1, 1, 2], [0], [0]>} : vector<8x16x64xbf16>, vector<8x64x16xbf16>, vector<8x16x16xf32> -> vector<8x16x16xf32>
    "tpu.trace_stop"() : () -> ()
    "tpu.trace_start"() <{level = 10 : i32, message = "gte,ged->gtd"}> : () -> ()
    %cst_93 = arith.constant dense<0.000000e+00> : vector<4x16x16xf32>
    %176 = tpu.matmul %174, %143, %cst_93 {dimension_numbers = #tpu.dot_dimension_numbers<[2], [1], [1], [2], [0, 0, 0, 1, 1, 2], [0], [0]>} : vector<4x16x64xbf16>, vector<4x64x16xbf16>, vector<4x16x16xf32> -> vector<4x16x16xf32>
    %cst_94 = arith.constant dense<0.000000e+00> : vector<4x16x16xf32>
    %177 = tpu.matmul %174, %145, %cst_94 {dimension_numbers = #tpu.dot_dimension_numbers<[2], [1], [1], [2], [0, 0, 0, 1, 1, 2], [0], [0]>} : vector<4x16x64xbf16>, vector<4x64x16xbf16>, vector<4x16x16xf32> -> vector<4x16x16xf32>
    "tpu.trace_stop"() : () -> ()
    %178 = vector.extract_strided_slice %175 {offsets = [0, 0, 0], sizes = [8, 16, 8], strides = [1, 1, 1]} : vector<8x16x16xf32> to vector<8x16x8xf32>
    %179 = vector.extract_strided_slice %175 {offsets = [0, 0, 8], sizes = [8, 16, 8], strides = [1, 1, 1]} : vector<8x16x16xf32> to vector<8x16x8xf32>
    %180 = vector.extract_strided_slice %176 {offsets = [0, 0, 0], sizes = [4, 16, 8], strides = [1, 1, 1]} : vector<4x16x16xf32> to vector<4x16x8xf32>
    %181 = vector.extract_strided_slice %176 {offsets = [0, 0, 8], sizes = [4, 16, 8], strides = [1, 1, 1]} : vector<4x16x16xf32> to vector<4x16x8xf32>
    %182 = vector.shape_cast %3 : vector<16x8xf32> to vector<1x16x8xf32>
    %183 = vector.shape_cast %4 : vector<16x8xf32> to vector<1x16x8xf32>
    %184 = vector.broadcast %182 : vector<1x16x8xf32> to vector<8x16x8xf32>
    %185 = arith.mulf %178, %184 : vector<8x16x8xf32>
    %186 = vector.broadcast %183 : vector<1x16x8xf32> to vector<8x16x8xf32>
    %187 = arith.mulf %179, %186 : vector<8x16x8xf32>
    %188 = arith.subf %185, %187 : vector<8x16x8xf32>
    %189 = arith.truncf %188 : vector<8x16x8xf32> to vector<8x16x8xbf16>
    %190 = vector.broadcast %182 : vector<1x16x8xf32> to vector<8x16x8xf32>
    %191 = arith.mulf %179, %190 : vector<8x16x8xf32>
    %192 = vector.broadcast %183 : vector<1x16x8xf32> to vector<8x16x8xf32>
    %193 = arith.mulf %178, %192 : vector<8x16x8xf32>
    %194 = arith.addf %191, %193 : vector<8x16x8xf32>
    %195 = arith.truncf %194 : vector<8x16x8xf32> to vector<8x16x8xbf16>
    %196 = vector.broadcast %182 : vector<1x16x8xf32> to vector<4x16x8xf32>
    %197 = arith.mulf %180, %196 : vector<4x16x8xf32>
    %198 = vector.broadcast %183 : vector<1x16x8xf32> to vector<4x16x8xf32>
    %199 = arith.mulf %181, %198 : vector<4x16x8xf32>
    %200 = arith.subf %197, %199 : vector<4x16x8xf32>
    %201 = arith.truncf %200 : vector<4x16x8xf32> to vector<4x16x8xbf16>
    %202 = vector.broadcast %182 : vector<1x16x8xf32> to vector<4x16x8xf32>
    %203 = arith.mulf %181, %202 : vector<4x16x8xf32>
    %204 = vector.broadcast %183 : vector<1x16x8xf32> to vector<4x16x8xf32>
    %205 = arith.mulf %180, %204 : vector<4x16x8xf32>
    %206 = arith.addf %203, %205 : vector<4x16x8xf32>
    %207 = arith.truncf %206 : vector<4x16x8xf32> to vector<4x16x8xbf16>
    %208 = vector.shape_cast %201 : vector<4x16x8xbf16> to vector<4x1x16x8xbf16>
    %209 = vector.shape_cast %208 : vector<4x1x16x8xbf16> to vector<4x1x16x8xbf16>
    %210 = vector.broadcast %209 : vector<4x1x16x8xbf16> to vector<4x2x16x8xbf16>
    %211 = vector.shape_cast %210 : vector<4x2x16x8xbf16> to vector<8x16x8xbf16>
    %212 = vector.shape_cast %207 : vector<4x16x8xbf16> to vector<4x1x16x8xbf16>
    %213 = vector.shape_cast %212 : vector<4x1x16x8xbf16> to vector<4x1x16x8xbf16>
    %214 = vector.broadcast %213 : vector<4x1x16x8xbf16> to vector<4x2x16x8xbf16>
    %215 = vector.shape_cast %214 : vector<4x2x16x8xbf16> to vector<8x16x8xbf16>
    %216 = arith.truncf %177 : vector<4x16x16xf32> to vector<4x16x16xbf16>
    %217 = vector.shape_cast %216 : vector<4x16x16xbf16> to vector<4x1x16x16xbf16>
    %218 = vector.shape_cast %217 : vector<4x1x16x16xbf16> to vector<4x1x16x16xbf16>
    %219 = vector.broadcast %218 : vector<4x1x16x16xbf16> to vector<4x2x16x16xbf16>
    %220 = vector.shape_cast %219 : vector<4x2x16x16xbf16> to vector<8x16x16xbf16>
    "tpu.trace_start"() <{level = 10 : i32, message = "hqd,hkd->hqk"}> : () -> ()
    %cst_95 = arith.constant dense<0.000000e+00> : vector<8x16x16xf32>
    %221 = tpu.matmul %189, %211, %cst_95 {dimension_numbers = #tpu.dot_dimension_numbers<[2], [2], [1], [1], [0, 0, 0, 1, 1, 1], [0], [0]>} : vector<8x16x8xbf16>, vector<8x16x8xbf16>, vector<8x16x16xf32> -> vector<8x16x16xf32>
    %cst_96 = arith.constant dense<0.000000e+00> : vector<8x16x16xf32>
    %222 = tpu.matmul %195, %215, %cst_96 {dimension_numbers = #tpu.dot_dimension_numbers<[2], [2], [1], [1], [0, 0, 0, 1, 1, 1], [0], [0]>} : vector<8x16x8xbf16>, vector<8x16x8xbf16>, vector<8x16x16xf32> -> vector<8x16x16xf32>
    "tpu.trace_stop"() : () -> ()
    %223 = arith.addf %221, %222 : vector<8x16x16xf32>
    %cst_97 = arith.constant 2.500000e-01 : f32
    %224 = vector.broadcast %cst_97 : f32 to vector<8x16x16xf32>
    %225 = arith.mulf %223, %224 : vector<8x16x16xf32>
    %226 = vector.shape_cast %5 : vector<16x16xf32> to vector<1x16x16xf32>
    %227 = vector.broadcast %226 : vector<1x16x16xf32> to vector<8x16x16xf32>
    %228 = arith.addf %225, %227 : vector<8x16x16xf32>
    %cst_98 = arith.constant dense<0xFF800000> : vector<8x16xf32>
    %229 = vector.multi_reduction <maximumf>, %228, %cst_98 [2] : vector<8x16x16xf32> to vector<8x16xf32>
    %230 = vector.shape_cast %229 : vector<8x16xf32> to vector<8x16x1xf32>
    %231 = vector.broadcast %230 : vector<8x16x1xf32> to vector<8x16x16xf32>
    %232 = arith.subf %228, %231 : vector<8x16x16xf32>
    %233 = math.exp %232 : vector<8x16x16xf32>
    %cst_99 = arith.constant dense<0.000000e+00> : vector<8x16xf32>
    %234 = vector.multi_reduction <add>, %233, %cst_99 [2] : vector<8x16x16xf32> to vector<8x16xf32>
    %235 = vector.shape_cast %234 : vector<8x16xf32> to vector<8x16x1xf32>
    %236 = tpu.reciprocal %235 {approx = true} : vector<8x16x1xf32> -> vector<8x16x1xf32>
    %237 = vector.broadcast %236 : vector<8x16x1xf32> to vector<8x16x16xf32>
    %238 = arith.mulf %233, %237 : vector<8x16x16xf32>
    %239 = arith.truncf %238 : vector<8x16x16xf32> to vector<8x16x16xbf16>
    "tpu.trace_start"() <{level = 10 : i32, message = "hqk,hkd->hqd"}> : () -> ()
    %cst_100 = arith.constant dense<0.000000e+00> : vector<8x16x16xf32>
    %240 = tpu.matmul %239, %220, %cst_100 {dimension_numbers = #tpu.dot_dimension_numbers<[2], [1], [1], [2], [0, 0, 0, 1, 1, 2], [0], [0]>} : vector<8x16x16xbf16>, vector<8x16x16xbf16>, vector<8x16x16xf32> -> vector<8x16x16xf32>
    "tpu.trace_stop"() : () -> ()
    %241 = arith.truncf %240 : vector<8x16x16xf32> to vector<8x16x16xbf16>
    "tpu.trace_start"() <{level = 10 : i32, message = "htc,hce->hte"}> : () -> ()
    %cst_101 = arith.constant dense<0.000000e+00> : vector<8x16x64xf32>
    %242 = tpu.matmul %241, %147, %cst_101 {dimension_numbers = #tpu.dot_dimension_numbers<[2], [1], [1], [2], [0, 0, 0, 1, 1, 2], [0], [0]>} : vector<8x16x16xbf16>, vector<8x16x64xbf16>, vector<8x16x64xf32> -> vector<8x16x64xf32>
    "tpu.trace_stop"() : () -> ()
    %cst_102 = arith.constant dense<0.000000e+00> : vector<16x64xf32>
    %243 = vector.multi_reduction <add>, %242, %cst_102 [0] : vector<8x16x64xf32> to vector<16x64xf32>
    %244 = arith.addf %137, %243 : vector<16x64xf32>
    %245 = arith.mulf %244, %244 : vector<16x64xf32>
    %cst_103 = arith.constant dense<0.000000e+00> : vector<16xf32>
    %246 = vector.multi_reduction <add>, %245, %cst_103 [1] : vector<16x64xf32> to vector<16xf32>
    %247 = vector.shape_cast %246 : vector<16xf32> to vector<16x1xf32>
    %cst_104 = arith.constant 6.400000e+01 : f32
    %248 = vector.broadcast %cst_104 : f32 to vector<16x1xf32>
    %249 = arith.divf %247, %248 : vector<16x1xf32>
    %cst_105 = arith.constant 1.1920929E-7 : f32
    %250 = vector.broadcast %cst_105 : f32 to vector<16x1xf32>
    %251 = arith.addf %249, %250 : vector<16x1xf32>
    %252 = math.rsqrt %251 : vector<16x1xf32>
    %253 = vector.broadcast %252 : vector<16x1xf32> to vector<16x64xf32>
    %254 = arith.mulf %244, %253 : vector<16x64xf32>
    %255 = vector.broadcast %149 : vector<1x64xf32> to vector<16x64xf32>
    %256 = arith.mulf %254, %255 : vector<16x64xf32>
    %257 = arith.truncf %256 : vector<16x64xf32> to vector<16x64xbf16>
    %cst_106 = arith.constant dense<0.000000e+00> : vector<16x256xf32>
    %258 = tpu.matmul %257, %151, %cst_106 {dimension_numbers = #tpu.dot_dimension_numbers<[1], [0], [0], [1], [0, 0, 1, 1], [], []>} : vector<16x64xbf16>, vector<64x256xbf16>, vector<16x256xf32> -> vector<16x256xf32>
    %cst_107 = arith.constant dense<0.000000e+00> : vector<16x256xf32>
    %259 = tpu.matmul %257, %153, %cst_107 {dimension_numbers = #tpu.dot_dimension_numbers<[1], [0], [0], [1], [0, 0, 1, 1], [], []>} : vector<16x64xbf16>, vector<64x256xbf16>, vector<16x256xf32> -> vector<16x256xf32>
    %260 = arith.negf %258 : vector<16x256xf32>
    %261 = math.exp %260 : vector<16x256xf32>
    %cst_108 = arith.constant 1.000000e+00 : f32
    %262 = vector.broadcast %cst_108 : f32 to vector<16x256xf32>
    %263 = arith.addf %262, %261 : vector<16x256xf32>
    %264 = arith.divf %262, %263 : vector<16x256xf32>
    %265 = arith.mulf %258, %264 : vector<16x256xf32>
    %266 = arith.mulf %265, %259 : vector<16x256xf32>
    %267 = arith.truncf %266 : vector<16x256xf32> to vector<16x256xbf16>
    %cst_109 = arith.constant dense<0.000000e+00> : vector<16x64xf32>
    %268 = tpu.matmul %267, %155, %cst_109 {dimension_numbers = #tpu.dot_dimension_numbers<[1], [0], [0], [1], [0, 0, 1, 1], [], []>} : vector<16x256xbf16>, vector<256x64xbf16>, vector<16x64xf32> -> vector<16x64xf32>
    %269 = arith.addf %244, %268 : vector<16x64xf32>
    %c0_110 = arith.constant 0 : index
    %c0_111 = arith.constant 0 : index
    %270 = vector.load %arg14[%c0_110, %c0_111] : memref<1x64xf32, #tpu.memory_space<vmem>>, vector<1x64xf32>
    %271 = arith.mulf %269, %269 : vector<16x64xf32>
    %cst_112 = arith.constant dense<0.000000e+00> : vector<16xf32>
    %272 = vector.multi_reduction <add>, %271, %cst_112 [1] : vector<16x64xf32> to vector<16xf32>
    %273 = vector.shape_cast %272 : vector<16xf32> to vector<16x1xf32>
    %cst_113 = arith.constant 6.400000e+01 : f32
    %274 = vector.broadcast %cst_113 : f32 to vector<16x1xf32>
    %275 = arith.divf %273, %274 : vector<16x1xf32>
    %cst_114 = arith.constant 1.1920929E-7 : f32
    %276 = vector.broadcast %cst_114 : f32 to vector<16x1xf32>
    %277 = arith.addf %275, %276 : vector<16x1xf32>
    %278 = math.rsqrt %277 : vector<16x1xf32>
    %279 = vector.broadcast %278 : vector<16x1xf32> to vector<16x64xf32>
    %280 = arith.mulf %269, %279 : vector<16x64xf32>
    %281 = vector.broadcast %270 : vector<1x64xf32> to vector<16x64xf32>
    %282 = arith.mulf %280, %281 : vector<16x64xf32>
    %283 = arith.truncf %282 : vector<16x64xf32> to vector<16x64xbf16>
    %c0_115 = arith.constant 0 : index
    %c0_116 = arith.constant 0 : index
    %284 = vector.load %arg15[%c0_115, %c0_116] : memref<64x256xbf16, #tpu.memory_space<vmem>>, vector<64x256xbf16>
    %cst_117 = arith.constant dense<0.000000e+00> : vector<16x256xf32>
    %285 = tpu.matmul %283, %284, %cst_117 {dimension_numbers = #tpu.dot_dimension_numbers<[1], [0], [0], [1], [0, 0, 1, 1], [], []>} : vector<16x64xbf16>, vector<64x256xbf16>, vector<16x256xf32> -> vector<16x256xf32>
    %c0_118 = arith.constant 0 : index
    %c0_119 = arith.constant 0 : index
    %286 = vector.load %arg16[%c0_118, %c0_119] : memref<1x256xf32, #tpu.memory_space<vmem>>, vector<1x256xf32>
    %287 = vector.broadcast %286 : vector<1x256xf32> to vector<16x256xf32>
    %288 = arith.addf %285, %287 : vector<16x256xf32>
    %c0_120 = arith.constant 0 : index
    %c0_121 = arith.constant 0 : index
    %c0_122 = arith.constant 0 : index
    %289 = vector.load %arg17[%c0_120, %c0_121, %c0_122] : memref<1x16x256xf32, #tpu.memory_space<vmem>>, vector<1x16x256xf32>
    %290 = vector.shape_cast %289 : vector<1x16x256xf32> to vector<16x256xf32>
    %291 = vector.shape_cast %288 : vector<16x256xf32> to vector<1x16x256xf32>
    tpu.vector_store %arg17[%c0_120, %c0_121, %c0_122], %291 {strides = array<i32>} : memref<1x16x256xf32, #tpu.memory_space<vmem>>, vector<1x16x256xf32>,
    return
  }
  func.func @transform_0(%arg0: i32) -> (i32, i32, i32) {
    %c0_i32 = arith.constant 0 : i32
    %c0_i32_0 = arith.constant 0 : i32
    %c0_i32_1 = arith.constant 0 : i32
    return %arg0, %c0_i32, %c0_i32_0 : i32, i32, i32
  }
  func.func @transform_1(%arg0: i32) -> (i32, i32) {
    %c0_i32 = arith.constant 0 : i32
    %c0_i32_0 = arith.constant 0 : i32
    %c0_i32_1 = arith.constant 0 : i32
    return %c0_i32, %c0_i32_0 : i32, i32
  }
  func.func @transform_2(%arg0: i32) -> (i32, i32) {
    %c0_i32 = arith.constant 0 : i32
    %c0_i32_0 = arith.constant 0 : i32
    %c0_i32_1 = arith.constant 0 : i32
    return %c0_i32, %c0_i32_0 : i32, i32
  }
  func.func @transform_3(%arg0: i32) -> (i32, i32) {
    %c0_i32 = arith.constant 0 : i32
    %c0_i32_0 = arith.constant 0 : i32
    %c0_i32_1 = arith.constant 0 : i32
    return %c0_i32, %c0_i32_0 : i32, i32
  }
  func.func @transform_4(%arg0: i32) -> (i32, i32, i32) {
    %c0_i32 = arith.constant 0 : i32
    %c0_i32_0 = arith.constant 0 : i32
    %c0_i32_1 = arith.constant 0 : i32
    %c0_i32_2 = arith.constant 0 : i32
    return %c0_i32, %c0_i32_0, %c0_i32_1 : i32, i32, i32
  }
  func.func @transform_5(%arg0: i32) -> (i32, i32, i32, i32) {
    %c0_i32 = arith.constant 0 : i32
    %c0_i32_0 = arith.constant 0 : i32
    %c0_i32_1 = arith.constant 0 : i32
    %c0_i32_2 = arith.constant 0 : i32
    %c0_i32_3 = arith.constant 0 : i32
    return %c0_i32, %c0_i32_0, %c0_i32_1, %c0_i32_2 : i32, i32, i32, i32
  }
  func.func @transform_6(%arg0: i32) -> (i32, i32, i32, i32) {
    %c0_i32 = arith.constant 0 : i32
    %c0_i32_0 = arith.constant 0 : i32
    %c0_i32_1 = arith.constant 0 : i32
    %c0_i32_2 = arith.constant 0 : i32
    %c0_i32_3 = arith.constant 0 : i32
    return %c0_i32, %c0_i32_0, %c0_i32_1, %c0_i32_2 : i32, i32, i32, i32
  }
  func.func @transform_7(%arg0: i32) -> (i32, i32, i32, i32) {
    %c0_i32 = arith.constant 0 : i32
    %c0_i32_0 = arith.constant 0 : i32
    %c0_i32_1 = arith.constant 0 : i32
    %c0_i32_2 = arith.constant 0 : i32
    %c0_i32_3 = arith.constant 0 : i32
    return %c0_i32, %c0_i32_0, %c0_i32_1, %c0_i32_2 : i32, i32, i32, i32
  }
  func.func @transform_8(%arg0: i32) -> (i32, i32, i32, i32) {
    %c0_i32 = arith.constant 0 : i32
    %c0_i32_0 = arith.constant 0 : i32
    %c0_i32_1 = arith.constant 0 : i32
    %c0_i32_2 = arith.constant 0 : i32
    %c0_i32_3 = arith.constant 0 : i32
    return %c0_i32, %c0_i32_0, %c0_i32_1, %c0_i32_2 : i32, i32, i32, i32
  }
  func.func @transform_9(%arg0: i32) -> (i32, i32, i32) {
    %c0_i32 = arith.constant 0 : i32
    %c0_i32_0 = arith.constant 0 : i32
    %c0_i32_1 = arith.constant 0 : i32
    %c0_i32_2 = arith.constant 0 : i32
    return %c0_i32, %c0_i32_0, %c0_i32_1 : i32, i32, i32
  }
  func.func @transform_10(%arg0: i32) -> (i32, i32, i32) {
    %c0_i32 = arith.constant 0 : i32
    %c0_i32_0 = arith.constant 0 : i32
    %c0_i32_1 = arith.constant 0 : i32
    %c0_i32_2 = arith.constant 0 : i32
    return %c0_i32, %c0_i32_0, %c0_i32_1 : i32, i32, i32
  }
  func.func @transform_11(%arg0: i32) -> (i32, i32, i32) {
    %c0_i32 = arith.constant 0 : i32
    %c0_i32_0 = arith.constant 0 : i32
    %c0_i32_1 = arith.constant 0 : i32
    %c0_i32_2 = arith.constant 0 : i32
    return %c0_i32, %c0_i32_0, %c0_i32_1 : i32, i32, i32
  }
  func.func @transform_12(%arg0: i32) -> (i32, i32, i32) {
    %c0_i32 = arith.constant 0 : i32
    %c0_i32_0 = arith.constant 0 : i32
    %c0_i32_1 = arith.constant 0 : i32
    %c0_i32_2 = arith.constant 0 : i32
    return %c0_i32, %c0_i32_0, %c0_i32_1 : i32, i32, i32
  }
  func.func @transform_13(%arg0: i32) -> (i32, i32) {
    %c0_i32 = arith.constant 0 : i32
    %c0_i32_0 = arith.constant 0 : i32
    %c0_i32_1 = arith.constant 0 : i32
    return %c0_i32, %c0_i32_0 : i32, i32
  }
  func.func @transform_14(%arg0: i32) -> (i32, i32) {
    %c0_i32 = arith.constant 0 : i32
    %c0_i32_0 = arith.constant 0 : i32
    %c0_i32_1 = arith.constant 0 : i32
    return %c0_i32, %c0_i32_0 : i32, i32
  }
  func.func @transform_15(%arg0: i32) -> (i32, i32) {
    %c0_i32 = arith.constant 0 : i32
    %c0_i32_0 = arith.constant 0 : i32
    %c0_i32_1 = arith.constant 0 : i32
    return %c0_i32, %c0_i32_0 : i32, i32
  }
  func.func @transform_16(%arg0: i32) -> (i32, i32, i32) {
    %c0_i32 = arith.constant 0 : i32
    %c0_i32_0 = arith.constant 0 : i32
    %c0_i32_1 = arith.constant 0 : i32
    return %arg0, %c0_i32, %c0_i32_0 : i32, i32, i32
  }
}

</mosaic_0001>

<bundles_post_ra>
// kernel: llama_forward.1
= control target key start
LH: loop header
LB: loop body
LE: loop exit
PB: predicated region body
PF: predicated region fallthrough
CT: control target
= control target key end

     0   :  { %s10419_s0 = inlined_call_operand.vmem [shape: bf16[2,16,64], index: 0, kind: input, shape index: {}]   ;;  %s10420_s1 = inlined_call_operand.vmem [shape: f32[16,8], index: 1, kind: input, shape index: {}]   ;;  %s10421_s2 = inlined_call_operand.vmem [shape: f32[16,8], index: 2, kind: input, shape index: {}]   ;;  %s10422_s3 = inlined_call_operand.vmem [shape: f32[16,16], index: 3, kind: input, shape index: {}]   ;;  %s10423_s4 = inlined_call_operand.vmem [shape: f32[2,1,64], index: 4, kind: input, shape index: {}]   ;;  %s10424_s5 = inlined_call_operand.vmem [shape: bf16[2,8,64,16], index: 5, kind: input, shape index: {}]   ;;  %s10425_s6 = inlined_call_operand.vmem [shape: bf16[2,4,64,16], index: 6, kind: input, shape index: {}]   ;;  %s10426_s7 = inlined_call_operand.vmem [shape: bf16[2,4,64,16], index: 7, kind: input, shape index: {}]   ;;  %s10427_s8 = inlined_call_operand.vmem [shape: bf16[2,8,16,64], index: 8, kind: input, shape index: {}]   ;;  %s10428_s9 = inlined_call_operand.vmem [shape: f32[2,1,64], index: 9, kind: input, shape index: {}]   ;;  %s10429_s10 = inlined_call_operand.vmem [shape: bf16[2,64,256], index: 10, kind: input, shape index: {}]   ;;  %s10430_s11 = inlined_call_operand.vmem [shape: bf16[2,64,256], index: 11, kind: input, shape index: {}]   ;;  %s10431_s12 = inlined_call_operand.vmem [shape: bf16[2,256,64], index: 12, kind: input, shape index: {}]   ;;  %s10432_s13 = inlined_call_operand.vmem [shape: f32[1,64], index: 13, kind: input, shape index: {}]   ;;  %s10433_s14 = inlined_call_operand.vmem [shape: bf16[64,256], index: 14, kind: input, shape index: {}]   ;;  %s10434_s15 = inlined_call_operand.vmem [shape: f32[1,256], index: 15, kind: input, shape index: {}]   ;;  %s10435_s16 = inlined_call_operand.hbm [shape: f32[2,16,256], index: 16, kind: output, shape index: {}]  }
   0x1   :  { %10446 = sst [smem:[#allocation11_spill]] %s10419_s0 }
   0x2   :  { %10447 = sst [smem:[#allocation12_spill]] %s10420_s1 }
   0x3   :  { %10448 = sst [smem:[#allocation13_spill]] %s10421_s2 }
   0x4   :  { %21 = vsyncpa [#allocation3], 0 }
   0x5   :  { %23 = vsyncpa [#allocation3 + $0x1], 0  ;;  %s8113_s21 = smov 0   ;;  %s8115_s22 = smov 0  }
   0x6   :  { %s8117_s23 = smov 0   ;;  %s8119_s24 = smov 0  }
   0x7 LB: > { %10449 = sst [smem:[#allocation5_spill]] %s8009_s21  ;;  %s8134_s25 = sadd.s32 4294967295, %s8021_s24   ;;  %s8021_s24 = sphi %s8119_s24, %s10473_s24   ;;  %s8017_s23 = sphi %s8117_s23, %s10475_s23   ;;  %s8013_s22 = sphi %s8115_s22, %s10477_s22   ;;  %s8009_s21 = sphi %s8113_s21, %s10476_s21  }
   0x8   : > { %10450 = sst [smem:[#allocation6_spill]] %s8017_s23  ;;  %s6314_s26 = sadd.s32 4294967294, %s8021_s24  }
   0x9   : > { %10451 = sst [smem:[#allocation7_spill]] %s8021_s24  ;;  %s8138_s27 = sadd.s32 1, %s8021_s24  }
   0xa   : > { %10452 = sst [smem:[#allocation8_spill]] %s8138_s27  ;;  %s377_s28 = sadd.s32 1, %s8017_s23 }
   0xb   : > { %s374_s29 = ssub.s32 %s8021_s24, %s8138_s27  ;;  %p387_p0 = scmp.ne.s32.totalorder %s8017_s23, %s8013_s22 }
   0xc   : > { %p375_p1 = scmp.eq.s32.totalorder %s374_s29, 0  ;;  %p388_p2 = scmp.eq.s32.totalorder %s8134_s25, 1 }
   0xd   : > { %p393_p3 = scmp.ne.s32.totalorder %s8013_s22, %s8009_s21  ;;  %p394_p4 = scmp.eq.s32.totalorder %s6314_s26, 1 }
   0xe   : > { %s8149_s30 = scalar_select %p375_p1, %s8017_s23, %s377_s28  }
   0xf   : > { %p8151_p5 = por %p388_p2, %p387_p0  ;;  %p8155_p6 = por %p394_p4, %p393_p3 }
  0x10   : > { %10453 = sst [smem:[#allocation9_spill]] %s8149_s30  ;;  %p6317_p7 = scmp.ge.s32.totalorder %s8021_s24, 1 }
  0x11   : > { %s10455_s17 = scalar_select %p8155_p6, 1, 0 }
  0x12   : > { %p465_p8 = scmp.lt.s32.totalorder %s8021_s24, 3 }
  0x13   : > { %10456 = sst [smem:[#allocation10_spill]] %s10455_s17 }
  0x14   : > { %p466_p9 = pnand %p6317_p7, %p465_p8 }
  0x15   : > { %p515_p10 = scmp.lt.s32.totalorder (!%p466_p9), %s8134_s25, 1  ;;  %s10457_s28 = sld [smem:[#allocation11_spill]] (!%p466_p9) }
  0x16   : > { %469 = sbr.rel (%p466_p9) target bundleno = 3904 (0xf40), region = 84  ;;  %s10458_s1 = sld [smem:[#allocation12_spill]] (!%p466_p9) }
  0x17   : > { %s10440_s23 = smov (!%p466_p9), 8   ;;  %s10459_s2 = sld [smem:[#allocation13_spill]] (!%p466_p9) }
  0x18   : > { %s10442_s20 = smov (!%p466_p9), 120   ;;  %s7715_s26 = sshll.u32 (!%p466_p9), %s8134_s25, 5 }
  0x19   : > { %s6248_s27 = scalar_lea.hbm (!%p466_p9), %s10435_s16, %s7715_s26  ;;  %s7979_s26 = scalar_lea.hbm (!%p466_p9), %s10435_s16, 64 }
  0x1a   : > { %s6251_s21 = sshll.u32 (!%p466_p9), %s6248_s27, 4  ;;  %s6252_s21 = int_to_ptr.hbm [resolvable:$true] %s6251_s21 }
  0x1b   : > { %s516_s18 = scalar_select %p515_p10, %s8134_s25, 1  ;;  %vm727_vm0 = vcmask 523264   ;;  %v8023_v7 = vmov 64.0   ;;  %v7502_v12 = vld [vmem:[%s10424_s5 + $0x18] sm:$0xff]  ;;  %v7501_v17 = vld [vmem:[%s10424_s5 + $0x10] sm:$0xff]  ;;  %v7500_v23 = vld [vmem:[%s10424_s5 + $0x8] sm:$0xff] }
  0x1c   : > { %7769 = vrcp.f32 %v8023_v7  ;;  %v7506_v13 = vld [vmem:[%s10424_s5 + $0x38] sm:$0xff]  ;;  %810 = vmatpush.bf16.msra.mxu0 %v7502_v12  ;;  %v7505_v18 = vld [vmem:[%s10424_s5 + $0x30] sm:$0xff]  ;;  %v7504_v24 = vld [vmem:[%s10424_s5 + $0x28] sm:$0xff]  ;;  %vm1812_vm8 = vcmask 64512   ;;  %vm2271_vm9 = vcmask 130048  }
  0x1d   : > { %s7498_s19 = sshll.u32 %s516_s18, 3  ;;  %v7510_v14 = vld [vmem:[%s10424_s5 + $0x58] sm:$0xff]  ;;  %848 = vmatpush.bf16.msra.mxu1 %v7506_v13  ;;  %v7509_v19 = vld [vmem:[%s10424_s5 + $0x50] sm:$0xff]  ;;  %v7508_v25 = vld [vmem:[%s10424_s5 + $0x48] sm:$0xff] }
  0x1e   : > { %s519_s29 = scalar_lea.vmem %s10457_s28, %s7498_s19  ;;  %v7514_v15 = vld [vmem:[%s10424_s5 + $0x78] sm:$0xff]  ;;  %886 = vmatpush.bf16.msra.mxu2 %v7510_v14  ;;  %v7513_v20 = vld [vmem:[%s10424_s5 + $0x70] sm:$0xff]  ;;  %v7512_v27 = vld [vmem:[%s10424_s5 + $0x68] sm:$0xff]  ;;  %s10460_s19 = smov 8  }
  0x1f   : > { %v7717_v0 = vld [vmem:[%s519_s29] sm:$0xff]   ;;  %924 = vmatpush.bf16.msra.mxu3 %v7514_v15  ;;  %v7518_v35 = vld [vmem:[%s10424_s5 + $0x98] sm:$0xff]  ;;  %v7517_v42 = vld [vmem:[%s10424_s5 + $0x90] sm:$0xff] }
  0x20   : > { %v8166_v1 = vunpack.c.l.bf16 %v7717_v0  ;;  %v8170_v3 = vunpack.c.h.bf16 %v7717_v0  ;;  %811 = vmatpush.bf16.msra.mxu0 %v7501_v17  ;;  %v7499_v29 = vld [vmem:[%s10424_s5] sm:$0xff]  ;;  %v7522_v36 = vld [vmem:[%s10424_s5 + $0xb8] sm:$0xff]  ;;  %v7521_v43 = vld [vmem:[%s10424_s5 + $0xb0] sm:$0xff] }
  0x21   : > { %849 = vmatpush.bf16.msra.mxu1 %v7505_v18  ;;  %v7503_v30 = vld [vmem:[%s10424_s5 + $0x20] sm:$0xff]  ;;  %v7526_v37 = vld [vmem:[%s10424_s5 + $0xd8] sm:$0xff]  ;;  %v7525_v45 = vld [vmem:[%s10424_s5 + $0xd0] sm:$0xff] }
  0x22   : > { %v725_v2 = vmul.f32 %v8166_v1, %v8166_v1  ;;  %v726_v5 = vmul.f32 %v8170_v3, %v8170_v3  ;;  %v7770_v8 = vpop.eup %7769  ;;  %887 = vmatpush.bf16.msra.mxu2 %v7509_v19  ;;  %v7507_v31 = vld [vmem:[%s10424_s5 + $0x40] sm:$0xff]  ;;  %v7530_v38 = vld [vmem:[%s10424_s5 + $0xf8] sm:$0xff]  ;;  %v7529_v46 = vld [vmem:[%s10424_s5 + $0xf0] sm:$0xff] }
  0x23   : > { %v735_v9 = vmul.f32 64.0, %v7770_v8  ;;  %vm739_vm1 = vweird.f32 %v7770_v8  ;;  %925 = vmatpush.bf16.msra.mxu3 %v7513_v20  ;;  %v7511_v32 = vld [vmem:[%s10424_s5 + $0x60] sm:$0xff]  ;;  %v7516_v49 = vld [vmem:[%s10424_s5 + $0x88] sm:$0xff]  ;;  %v7534_v18 = vld [vmem:[%s10425_s6 + $0x18] sm:$0xff] }
  0x24   : > { %v728_v4 = vsel %vm727_vm0, %v725_v2, 0.0  ;;  %v731_v6 = vsel %vm727_vm0, %v726_v5, 0.0  ;;  %812 = vmatpush.bf16.msra.mxu0 %v7500_v23  ;;  %v8243_v39 = vld [vmem:[%s10458_s1] sm:$0xff]  ;;  %v7520_v50 = vld [vmem:[%s10424_s5 + $0xa8] sm:$0xff]  ;;  %v7538_v19 = vld [vmem:[%s10425_s6 + $0x38] sm:$0xff] }
  0x25   : > { %729 = vadd.xlane.f32.xlu0 %v728_v4  ;;  %v736_v10 = vsub.f32 1.0, %v735_v9  ;;  %850 = vmatpush.bf16.msra.mxu1 %v7504_v24  ;;  %v8262_v48 = vld [vmem:[%s10459_s2] sm:$0xff]  ;;  %v7524_v52 = vld [vmem:[%s10424_s5 + $0xc8] sm:$0xff]  ;;  %v7542_v20 = vld [vmem:[%s10425_s6 + $0x58] sm:$0xff] }
  0x26   : > { %888 = vmatpush.bf16.msra.mxu2 %v7508_v25  ;;  %1528 = vrot.lane.b32.xlu1 %v8243_v39, %s10440_s23  ;;  %v7528_v53 = vld [vmem:[%s10424_s5 + $0xe8] sm:$0xff]  ;;  %v7515_v57 = vld [vmem:[%s10424_s5 + $0x80] sm:$0xff]  ;;  %v7533_v23 = vld [vmem:[%s10425_s6 + $0x10] sm:$0xff] }
  0x27   : > { %v737_v11 = vmul.f32 %v7770_v8, %v736_v10  ;;  %926 = vmatpush.bf16.msra.mxu3 %v7512_v27  ;;  %v8281_v55 = vld [vmem:[%s10458_s1 + $0x8] sm:$0xff]  ;;  %v7519_v58 = vld [vmem:[%s10424_s5 + $0xa0] sm:$0xff]  ;;  %v7537_v24 = vld [vmem:[%s10425_s6 + $0x30] sm:$0xff] }
  0x28   : > { %813 = vmatpush.bf16.msra.mxu0 %v7499_v29  ;;  %v7523_v61 = vld [vmem:[%s10424_s5 + $0xc0] sm:$0xff]  ;;  %v8304_v7 = vld [vmem:[%s10459_s2 + $0x8] sm:$0xff]  ;;  %v7541_v25 = vld [vmem:[%s10425_s6 + $0x50] sm:$0xff] }
  0x29   : > { %v738_v16 = vadd.f32 %v7770_v8, %v737_v11  ;;  %851 = vmatpush.bf16.msra.mxu1 %v7503_v30  ;;  %v7527_v62 = vld [vmem:[%s10424_s5 + $0xe0] sm:$0xff]  ;;  %v7532_v27 = vld [vmem:[%s10425_s6 + $0x8] sm:$0xff] }
  0x2a   : > { %889 = vmatpush.bf16.msra.mxu2 %v7507_v31  ;;  %v7764_v4 = vld [vmem:[%s10423_s4] ss:$0 sm:$0xff]  ;;  %v7540_v29 = vld [vmem:[%s10425_s6 + $0x48] sm:$0xff] }
  0x2b   : > { %v8200_v21 = vsel %vm739_vm1, %v7770_v8, %v738_v16  ;;  %927 = vmatpush.bf16.msra.mxu3 %v7511_v32  ;;  %v7544_v30 = vld [vmem:[%s10425_s6 + $0x68] sm:$0xff]  ;;  %v7531_v31 = vld [vmem:[%s10425_s6] sm:$0xff] }
  0x2c   : > { %962 = vmatpush.bf16.msrb.mxu0 %v7518_v35  ;;  %v7535_v32 = vld [vmem:[%s10425_s6 + $0x20] sm:$0xff]  ;;  %v7550_v35 = vld [vmem:[%s10426_s7 + $0x18] sm:$0xff] }
  0x2d   : > { %732 = vadd.xlane.f32.xlu0 %v731_v6  ;;  %1000 = vmatpush.bf16.msrb.mxu1 %v7522_v36  ;;  %v7554_v36 = vld [vmem:[%s10426_s7 + $0x38] sm:$0xff] }
  0x2e   : > { %1038 = vmatpush.bf16.msrb.mxu2 %v7526_v37  ;;  %1530 = vrot.lane.b32.xlu1 %v8281_v55, %s10440_s23  ;;  %v7558_v37 = vld [vmem:[%s10426_s7 + $0x58] sm:$0xff] }
  0x2f   : > { %1076 = vmatpush.bf16.msrb.mxu3 %v7530_v38  ;;  %v7562_v38 = vld [vmem:[%s10426_s7 + $0x78] sm:$0xff] }
  0x30   : > { %963 = vmatpush.bf16.msrb.mxu0 %v7517_v42  ;;  %v7557_v42 = vld [vmem:[%s10426_s7 + $0x50] sm:$0xff] }
  0x31   : > { %1001 = vmatpush.bf16.msrb.mxu1 %v7521_v43  ;;  %v7561_v43 = vld [vmem:[%s10426_s7 + $0x70] sm:$0xff] }
  0x32   : > { %1039 = vmatpush.bf16.msrb.mxu2 %v7525_v45  ;;  %v7552_v45 = vld [vmem:[%s10426_s7 + $0x28] sm:$0xff] }
  0x33   : > { %1077 = vmatpush.bf16.msrb.mxu3 %v7529_v46  ;;  %v7556_v46 = vld [vmem:[%s10426_s7 + $0x48] sm:$0xff] }
  0x34   : > { %964 = vmatpush.bf16.msrb.mxu0 %v7516_v49  ;;  %v7547_v49 = vld [vmem:[%s10426_s7] sm:$0xff] }
  0x35   : > { %1002 = vmatpush.bf16.msrb.mxu1 %v7520_v50  ;;  %v7551_v50 = vld [vmem:[%s10426_s7 + $0x20] sm:$0xff] }
  0x36   : > { %1040 = vmatpush.bf16.msrb.mxu2 %v7524_v52  ;;  %1410 = vrot.lane.b32.xlu1 %v8304_v7, %s10440_s23  ;;  %v7559_v52 = vld [vmem:[%s10426_s7 + $0x60] sm:$0xff] }
  0x37   : > { %1078 = vmatpush.bf16.msrb.mxu3 %v7528_v53 }
  0x38   : > { %965 = vmatpush.bf16.msrb.mxu0 %v7515_v57 }
  0x39   : > { %1003 = vmatpush.bf16.msrb.mxu1 %v7519_v58 }
  0x3a   : > { %1041 = vmatpush.bf16.msrb.mxu2 %v7523_v61 }
  0x3b   : > { %1079 = vmatpush.bf16.msrb.mxu3 %v7527_v62 }
  0x41   : > { %1408 = vrot.lane.b32.xlu0 %v8262_v48, %s10440_s23 }
  0x98   : > { %v730_v22 = vpop.xlane.xlu0 %729 }
  0x99   : > { %v741_v26 = vmul.f32 %v8200_v21, %v730_v22  ;;  %v7546_v22 = vld [vmem:[%s10425_s6 + $0x78] sm:$0xff] }
  0x9b   : > { %v743_v28 = vadd.f32 1.1920929e-07, %v741_v26  ;;  %v7545_v26 = vld [vmem:[%s10425_s6 + $0x70] sm:$0xff] }
  0x9d   : > { %7771 = vrsqrt.f32 %v743_v28  ;;  %vm751_vm3 = vweird.f32 %v743_v28 }
  0xa0   : > { %v733_v33 = vpop.xlane.xlu0 %732 }
  0xa1   : > { %v742_v34 = vmul.f32 %v8200_v21, %v733_v33  ;;  %v7539_v33 = vld [vmem:[%s10425_s6 + $0x40] sm:$0xff] }
  0xa3   : > { %v7772_v40 = vpop.eup %7771  ;;  %v744_v41 = vadd.f32 1.1920929e-07, %v742_v34  ;;  %v7543_v34 = vld [vmem:[%s10425_s6 + $0x60] sm:$0xff] }
  0xa4   : > { %v746_v44 = vmul.f32 %v7772_v40, %v743_v28  ;;  %vm752_vm2 = vweird.f32 %v7772_v40  ;;  %v7536_v28 = vld [vmem:[%s10425_s6 + $0x28] sm:$0xff] }
  0xa5   : > { %7773 = vrsqrt.f32 %v744_v41  ;;  %vm753_vm4 = vmor %vm751_vm3, %vm752_vm2  ;;  %vm761_vm6 = vweird.f32 %v744_v41 }
  0xa6   : > { %v747_v47 = vmul.f32 %v7772_v40, %v746_v44  ;;  %v7548_v44 = vld [vmem:[%s10426_s7 + $0x8] sm:$0xff] }
  0xa8   : > { %v748_v51 = vmul.f32 0.5, %v747_v47  ;;  %v7560_v47 = vld [vmem:[%s10426_s7 + $0x68] sm:$0xff] }
  0xaa   : > { %v749_v54 = vsub.f32 1.5, %v748_v51  ;;  %v7555_v51 = vld [vmem:[%s10426_s7 + $0x40] sm:$0xff] }
  0xab   : > { %v7774_v56 = vpop.eup %7773 }
  0xac   : > { %v750_v59 = vmul.f32 %v7772_v40, %v749_v54  ;;  %v756_v60 = vmul.f32 %v7774_v56, %v744_v41  ;;  %vm762_vm5 = vweird.f32 %v7774_v56  ;;  %v7553_v41 = vld [vmem:[%s10426_s7 + $0x30] sm:$0xff] }
  0xad   : > { %vm763_vm7 = vmor %vm761_vm6, %vm762_vm5 }
  0xae   : > { %v754_v63 = vsel %vm753_vm4, %v7772_v40, %v750_v59  ;;  %v757_v0 = vmul.f32 %v7774_v56, %v756_v60  ;;  %v7549_v40 = vld [vmem:[%s10426_s7 + $0x10] sm:$0xff] }
  0xaf   : > { %v765_v5 = vmul.f32 %v8166_v1, %v754_v63 }
  0xb0   : > { %v758_v2 = vmul.f32 0.5, %v757_v0 }
  0xb1   : > { %v770_v9 = vmul.f32 %v7764_v4, %v765_v5 }
  0xb2   : > { %v759_v6 = vsub.f32 1.5, %v758_v2 }
  0xb3   : > { %v772_v12 = vpack.c.bf16 %v770_v9, %v770_v9 }
  0xb4   : > { %v760_v8 = vmul.f32 %v7774_v56, %v759_v6 }
  0xb5   : > { %v776_v15 = vunpack.c.l.b16 %v772_v12 }
  0xb6   : > { %v764_v10 = vsel %vm763_vm7, %v7774_v56, %v760_v8 }
  0xb7   : > { %v766_v11 = vmul.f32 %v8170_v3, %v764_v10 }
  0xb9   : > { %v771_v13 = vmul.f32 %v7764_v4, %v766_v11 }
  0xbb   : > { %v773_v14 = vpack.c.bf16 %v771_v13, %v771_v13 }
  0xbd   : > { %v777_v16 = vunpack.c.l.b16 %v773_v14 }
  0xbf   : > { %v8309_v17 = vpack.c.b16 %v777_v16, %v776_v15  ;;  %v8493_v16 = vpop.permute.xlu1 %1528 }
  0xc1   : > { %6337 = vmatmul.msk.bf16.vlgmr.msra.gmra.mxu0 %vm727_vm0, %v8309_v17  ;;  %6354 = vmatmul.msk.bf16.vlgmr.msra.gmra.mxu1 %vm727_vm0, %v8309_v17 }
  0xc2   : > { %6371 = vmatmul.msk.bf16.vlgmr.msra.gmra.mxu2 %vm727_vm0, %v8309_v17  ;;  %6388 = vmatmul.msk.bf16.vlgmr.msra.gmra.mxu3 %vm727_vm0, %v8309_v17 }
  0xc3   : > { %1114 = vmatpush.bf16.msra.mxu0 %v7534_v18  ;;  %1152 = vmatpush.bf16.msra.mxu1 %v7538_v19 }
  0xc4   : > { %1190 = vmatpush.bf16.msra.mxu2 %v7542_v20  ;;  %1228 = vmatpush.bf16.msra.mxu3 %v7546_v22 }
  0xc7   : > { %1115 = vmatpush.bf16.msra.mxu0 %v7533_v23  ;;  %1153 = vmatpush.bf16.msra.mxu1 %v7537_v24 }
  0xc8   : > { %1191 = vmatpush.bf16.msra.mxu2 %v7541_v25  ;;  %1229 = vmatpush.bf16.msra.mxu3 %v7545_v26  ;;  %v8513_v25 = vpop.permute.xlu1 %1530 }
  0xcb   : > { %1116 = vmatpush.bf16.msra.mxu0 %v7532_v27  ;;  %1154 = vmatpush.bf16.msra.mxu1 %v7536_v28 }
  0xcc   : > { %1192 = vmatpush.bf16.msra.mxu2 %v7540_v29  ;;  %1230 = vmatpush.bf16.msra.mxu3 %v7544_v30 }
  0xcf   : > { %1117 = vmatpush.bf16.msra.mxu0 %v7531_v31  ;;  %1155 = vmatpush.bf16.msra.mxu1 %v7535_v32 }
  0xd0   : > { %1193 = vmatpush.bf16.msra.mxu2 %v7539_v33  ;;  %1231 = vmatpush.bf16.msra.mxu3 %v7543_v34  ;;  %v8530_v32 = vpop.permute.xlu1 %1410 }
  0xd1   : > { %6405 = vmatmul.msk.bf16.vlgmr.msrb.gmra.mxu0 %vm727_vm0, %v8309_v17  ;;  %6422 = vmatmul.msk.bf16.vlgmr.msrb.gmra.mxu1 %vm727_vm0, %v8309_v17 }
  0xd2   : > { %6439 = vmatmul.msk.bf16.vlgmr.msrb.gmra.mxu2 %vm727_vm0, %v8309_v17  ;;  %6456 = vmatmul.msk.bf16.vlgmr.msrb.gmra.mxu3 %vm727_vm0, %v8309_v17 }
  0xd3   : > { %1266 = vmatpush.bf16.msrb.mxu0 %v7550_v35  ;;  %1304 = vmatpush.bf16.msrb.mxu1 %v7554_v36 }
  0xd4   : > { %1342 = vmatpush.bf16.msrb.mxu2 %v7558_v37  ;;  %1380 = vmatpush.bf16.msrb.mxu3 %v7562_v38 }
  0xd7   : > { %1267 = vmatpush.bf16.msrb.mxu0 %v7549_v40  ;;  %1305 = vmatpush.bf16.msrb.mxu1 %v7553_v41 }
  0xd8   : > { %1343 = vmatpush.bf16.msrb.mxu2 %v7557_v42  ;;  %1381 = vmatpush.bf16.msrb.mxu3 %v7561_v43  ;;  %v8554_v42 = vpop.permute.xlu0 %1408 }
  0xdb   : > { %1268 = vmatpush.bf16.msrb.mxu0 %v7548_v44  ;;  %1306 = vmatpush.bf16.msrb.mxu1 %v7552_v45 }
  0xdc   : > { %1344 = vmatpush.bf16.msrb.mxu2 %v7556_v46  ;;  %1382 = vmatpush.bf16.msrb.mxu3 %v7560_v47 }
  0xdf   : > { %1269 = vmatpush.bf16.msrb.mxu0 %v7547_v49  ;;  %1307 = vmatpush.bf16.msrb.mxu1 %v7551_v50 }
  0xe0   : > { %1345 = vmatpush.bf16.msrb.mxu2 %v7555_v51  ;;  %1383 = vmatpush.bf16.msrb.mxu3 %v7559_v52 }
  0xe1   : > { %6473 = vmatmul.msk.bf16.vlgmr.msra.gmra.mxu0 %vm727_vm0, %v8309_v17  ;;  %6490 = vmatmul.msk.bf16.vlgmr.msra.gmra.mxu1 %vm727_vm0, %v8309_v17 }
  0xe2   : > { %6507 = vmatmul.msk.bf16.vlgmr.msra.gmra.mxu2 %vm727_vm0, %v8309_v17  ;;  %6524 = vmatmul.msk.bf16.vlgmr.msra.gmra.mxu3 %vm727_vm0, %v8309_v17 }
  0xf1   : > { %6541 = vmatmul.msk.bf16.vlgmr.msrb.gmra.mxu0 %vm727_vm0, %v8309_v17  ;;  %6558 = vmatmul.msk.bf16.vlgmr.msrb.gmra.mxu1 %vm727_vm0, %v8309_v17 }
  0xf2   : > { %6575 = vmatmul.msk.bf16.vlgmr.msrb.gmra.mxu2 %vm727_vm0, %v8309_v17  ;;  %6592 = vmatmul.msk.bf16.vlgmr.msrb.gmra.mxu3 %vm727_vm0, %v8309_v17 }
 0x13e   : > { %v8439_v53 = vpop.f32.mrf.mxu0  ;;  %v8441_v54 = vpop.f32.mrf.mxu1 }
 0x13f   : > { %v1552_v56 = vmul.f32 %v8441_v54, %v8262_v48  ;;  %v1550_v57 = vmul.f32 %v8439_v53, %v8262_v48 }
 0x141   : > { %1586 = vrot.lane.b32.xlu0 %v1552_v56, %s10460_s19  ;;  %1582 = vrot.lane.b32.xlu1 %v1550_v57, %s10460_s19 }
 0x145   : > { %v8449_v58 = vpop.f32.mrf.mxu2  ;;  %v8451_v59 = vpop.f32.mrf.mxu3 }
 0x146   : > { %v8453_v60 = vpop.f32.mrf.mxu0  ;;  %v8455_v61 = vpop.f32.mrf.mxu1  ;;  %v1556_v62 = vmul.f32 %v8451_v59, %v8262_v48  ;;  %v1554_v63 = vmul.f32 %v8449_v58, %v8262_v48  ;;  %v1420_v45 = vmul.f32 %v8554_v42, %v8451_v59  ;;  %v1418_v52 = vmul.f32 %v8554_v42, %v8449_v58 }
 0x147   : > { %v1553_v0 = vmul.f32 %v8455_v61, %v8304_v7  ;;  %v1551_v8 = vmul.f32 %v8453_v60, %v8304_v7  ;;  %v1535_v57 = vmul.f32 %v8513_v25, %v8453_v60 }
 0x148   : > { %1594 = vrot.lane.b32.xlu2 %v1556_v62, %s10460_s19 }
 0x149   : > { %1590 = vrot.lane.b32.xlu0 %v1554_v63, %s10460_s19  ;;  %1588 = vrot.lane.b32.xlu1 %v1553_v0, %s10460_s19 }
 0x14d   : > { %v8466_v2 = vpop.f32.mrf.mxu2  ;;  %v8468_v4 = vpop.f32.mrf.mxu3 }
 0x14e   : > { %v8470_v5 = vpop.f32.mrf.mxu0  ;;  %v8472_v6 = vpop.f32.mrf.mxu1  ;;  %v1555_v9 = vmul.f32 %v8466_v2, %v8304_v7  ;;  %v1557_v14 = vmul.f32 %v8468_v4, %v8304_v7  ;;  %v1419_v43 = vmul.f32 %v8530_v32, %v8466_v2 }
 0x14f   : > { %v1560_v26 = vmul.f32 %v8472_v6, %v8262_v48  ;;  %v1558_v28 = vmul.f32 %v8470_v5, %v8262_v48 }
 0x150   : > { %1584 = vrot.lane.b32.xlu2 %v1551_v8, %s10460_s19 }
 0x151   : > { %1592 = vrot.lane.b32.xlu1 %v1555_v9, %s10460_s19 }
 0x155   : > { %v8480_v10 = vpop.f32.mrf.mxu2  ;;  %v8482_v11 = vpop.f32.mrf.mxu3 }
 0x156   : > { %v1562_v12 = vmul.f32 %v8480_v10, %v8262_v48  ;;  %v8486_v13 = vpop.f32.mrf.mxu1  ;;  %v8490_v15 = vpop.f32.mrf.mxu0  ;;  %v1564_v22 = vmul.f32 %v8482_v11, %v8262_v48 }
 0x157   : > { %v1561_v40 = vmul.f32 %v8486_v13, %v8304_v7  ;;  %v1559_v50 = vmul.f32 %v8490_v15, %v8304_v7 }
 0x158   : > { %1606 = vrot.lane.b32.xlu2 %v1562_v12, %s10460_s19 }
 0x159   : > { %1596 = vrot.lane.b32.xlu1 %v1557_v14, %s10460_s19 }
 0x15d   : > { %v8496_v17 = vpop.f32.mrf.mxu2  ;;  %v8498_v18 = vpop.f32.mrf.mxu3 }
 0x15e   : > { %v1563_v19 = vmul.f32 %v8496_v17, %v8304_v7  ;;  %v1565_v20 = vmul.f32 %v8498_v18, %v8304_v7  ;;  %v8508_v23 = vpop.f32.mrf.mxu1  ;;  %v8511_v24 = vpop.f32.mrf.mxu0 }
 0x15f   : > { %v1736_v27 = vmul.f32 %v8508_v23, %v8262_v48  ;;  %v1734_v34 = vmul.f32 %v8511_v24, %v8262_v48  ;;  %v1672_v51 = vmul.f32 %v8554_v42, %v8508_v23 }
 0x160   : > { %1608 = vrot.lane.b32.xlu0 %v1563_v19, %s10460_s19  ;;  %1612 = vrot.lane.b32.xlu2 %v1565_v20, %s10460_s19  ;;  %v1536_v19 = vmul.f32 %v8493_v16, %v8441_v54 }
 0x161   : > { %1610 = vrot.lane.b32.xlu1 %v1564_v22, %s10460_s19 }
 0x165   : > { %v8523_v29 = vpop.f32.mrf.mxu3  ;;  %v8551_v41 = vpop.f32.mrf.mxu2 }
 0x166   : > { %v8526_v30 = vpop.f32.mrf.mxu1  ;;  %v8528_v31 = vpop.f32.mrf.mxu0  ;;  %v1740_v38 = vmul.f32 %v8523_v29, %v8262_v48  ;;  %v1738_v49 = vmul.f32 %v8551_v41, %v8262_v48 }
 0x167   : > { %v1673_v33 = vmul.f32 %v8530_v32, %v8526_v30  ;;  %v1735_v35 = vmul.f32 %v8528_v31, %v8304_v7  ;;  %v1737_v44 = vmul.f32 %v8526_v30, %v8304_v7 }
 0x168   : > { %1602 = vrot.lane.b32.xlu0 %v1560_v26, %s10460_s19  ;;  %1754 = vrot.lane.b32.xlu2 %v1736_v27, %s10460_s19 }
 0x169   : > { %1598 = vrot.lane.b32.xlu1 %v1558_v28, %s10460_s19  ;;  %v1537_v28 = vmul.f32 %v8513_v25, %v8455_v61 }
 0x16d   : > { %v8541_v36 = vpop.f32.mrf.mxu3  ;;  %v8565_v46 = vpop.f32.mrf.mxu2 }
 0x16e   : > { %v1741_v37 = vmul.f32 %v8541_v36, %v8304_v7  ;;  %v1739_v47 = vmul.f32 %v8565_v46, %v8304_v7  ;;  %v1534_v7 = vmul.f32 %v8493_v16, %v8439_v53 }
 0x170   : > { %1692 = vrot.lane.b32.xlu0 %v1673_v33, %s10442_s20  ;;  %1750 = vrot.lane.b32.xlu2 %v1734_v34, %s10460_s19 }
 0x171   : > { %1752 = vrot.lane.b32.xlu1 %v1735_v35, %s10460_s19 }
 0x178   : > { %1764 = vrot.lane.b32.xlu0 %v1741_v37, %s10460_s19  ;;  %1762 = vrot.lane.b32.xlu2 %v1740_v38, %s10460_s19 }
 0x179   : > { %1604 = vrot.lane.b32.xlu1 %v1561_v40, %s10460_s19 }
 0x180   : > { %1456 = vrot.lane.b32.xlu0 %v1419_v43, %s10442_s20  ;;  %1756 = vrot.lane.b32.xlu2 %v1737_v44, %s10460_s19  ;;  %v1538_v43 = vmul.f32 %v8493_v16, %v8449_v58 }
 0x181   : > { %1458 = vrot.lane.b32.xlu1 %v1420_v45, %s10442_s20 }
 0x188   : > { %1760 = vrot.lane.b32.xlu0 %v1739_v47, %s10460_s19  ;;  %1758 = vrot.lane.b32.xlu2 %v1738_v49, %s10460_s19 }
 0x190   : > { %1600 = vrot.lane.b32.xlu2 %v1559_v50, %s10460_s19  ;;  %v1539_v50 = vmul.f32 %v8513_v25, %v8466_v2 }
 0x198   : > { %1690 = vrot.lane.b32.xlu2 %v1672_v51, %s10442_s20 }
 0x1a0   : > { %1454 = vrot.lane.b32.xlu2 %v1418_v52, %s10442_s20 }
 0x1a2   : > { %v1595_v48 = vpop.permute.xlu2 %1594 }
 0x1aa   : > { %v1585_v56 = vpop.permute.xlu2 %1584 }
 0x1ab   : > { %v1631_v62 = vadd.f32 %v1585_v56, %v1535_v57 }
 0x1ad   : > { %v1647_v9 = vpack.c.bf16 %v1631_v62, %v1631_v62  ;;  %v1540_v62 = vmul.f32 %v8493_v16, %v8451_v59 }
 0x1af   : > { %v1801_v20 = vunpack.c.l.b16 %v1647_v9 }
 0x1b2   : > { %v1607_v63 = vpop.permute.xlu2 %1606 }
 0x1b3   : > { %v1583_v0 = vpop.permute.xlu1 %1582  ;;  %v1587_v8 = vpop.permute.xlu0 %1586 }
 0x1b4   : > { %v1630_v12 = vadd.f32 %v1583_v0, %v1534_v7  ;;  %v1632_v26 = vadd.f32 %v1587_v8, %v1536_v19  ;;  %v1636_v0 = vadd.f32 %v1595_v48, %v1540_v62 }
 0x1b6   : > { %v1646_v14 = vpack.c.bf16 %v1630_v12, %v1630_v12  ;;  %v1648_v35 = vpack.c.bf16 %v1632_v26, %v1632_v26 }
 0x1b8   : > { %v1800_v22 = vunpack.c.l.b16 %v1646_v14  ;;  %v1835_v44 = vunpack.c.l.b16 %v1648_v35  ;;  %v1541_v14 = vmul.f32 %v8513_v25, %v8468_v4 }
 0x1ba   : > { %v1613_v27 = vpop.permute.xlu2 %1612  ;;  %v1802_v33 = vpack.c.b16 %v1801_v20, %v1800_v22  ;;  %v1652_v22 = vpack.c.bf16 %v1636_v0, %v1636_v0 }
 0x1bb   : > { %v1589_v34 = vpop.permute.xlu1 %1588  ;;  %v1591_v38 = vpop.permute.xlu0 %1590 }
 0x1bc   : > { %v1633_v37 = vadd.f32 %v1589_v34, %v1537_v28  ;;  %1803 = vrot.lane.b32.xlu1 %v1802_v33, %s10442_s20  ;;  %v1634_v47 = vadd.f32 %v1591_v38, %v1538_v43  ;;  %v1546_v28 = vmul.f32 %v8493_v16, %v8480_v10  ;;  %v1549_v33 = vmul.f32 %v8513_v25, %v8498_v18 }
 0x1bd   : > { %v1893_v35 = vunpack.c.l.b16 %v1652_v22 }
 0x1be   : > { %v1649_v40 = vpack.c.bf16 %v1633_v37, %v1633_v37  ;;  %v1650_v56 = vpack.c.bf16 %v1634_v47, %v1634_v47  ;;  %v1642_v48 = vadd.f32 %v1607_v63, %v1546_v28  ;;  %v1645_v37 = vadd.f32 %v1613_v27, %v1549_v33 }
 0x1bf   : > { %v1728_v63 = vmul.f32 %v8493_v16, %v8508_v23  ;;  %v1671_v28 = vmul.f32 %v8530_v32, %v8528_v31 }
 0x1c0   : > { %v1836_v45 = vunpack.c.l.b16 %v1649_v40  ;;  %v1859_v8 = vunpack.c.l.b16 %v1650_v56  ;;  %v1547_v40 = vmul.f32 %v8513_v25, %v8496_v17  ;;  %v1661_v56 = vpack.c.bf16 %v1645_v37, %v1645_v37 }
 0x1c2   : > { %v1755_v49 = vpop.permute.xlu2 %1754  ;;  %v1837_v51 = vpack.c.b16 %v1836_v45, %v1835_v44  ;;  %v1548_v45 = vmul.f32 %v8493_v16, %v8482_v11 }
 0x1c3   : > { %v1593_v52 = vpop.permute.xlu1 %1592  ;;  %v1776_v0 = vadd.f32 %v1755_v49, %v1728_v63 }
 0x1c4   : > { %v1635_v57 = vadd.f32 %v1593_v52, %v1539_v50  ;;  %1838 = vrot.lane.b32.xlu1 %v1837_v51, %s10442_s20  ;;  %v1658_v50 = vpack.c.bf16 %v1642_v48, %v1642_v48 }
 0x1c6   : > { %v1651_v7 = vpack.c.bf16 %v1635_v57, %v1635_v57 }
 0x1c8   : > { %v1860_v9 = vunpack.c.l.b16 %v1651_v7  ;;  %v1975_v7 = vunpack.c.l.b16 %v1658_v50  ;;  %v1670_v50 = vmul.f32 %v8554_v42, %v8511_v24 }
 0x1ca   : > { %v1751_v12 = vpop.permute.xlu2 %1750  ;;  %v1861_v19 = vpack.c.b16 %v1860_v9, %v1859_v8  ;;  %v2010_v9 = vunpack.c.l.b16 %v1661_v56  ;;  %v1726_v56 = vmul.f32 %v8493_v16, %v8511_v24 }
 0x1cb   : > { %v1597_v20 = vpop.permute.xlu1 %1596 }
 0x1cc   : > { %v1637_v26 = vadd.f32 %v1597_v20, %v1541_v14  ;;  %1862 = vrot.lane.b32.xlu0 %v1861_v19, %s10442_s20  ;;  %v1729_v19 = vmul.f32 %v8513_v25, %v8526_v30 }
 0x1ce   : > { %v1653_v34 = vpack.c.bf16 %v1637_v26, %v1637_v26 }
 0x1d0   : > { %v1894_v38 = vunpack.c.l.b16 %v1653_v34  ;;  %v1784_v34 = vpack.c.bf16 %v1776_v0, %v1776_v0  ;;  %v1733_v0 = vmul.f32 %v8513_v25, %v8541_v36 }
 0x1d2   : > { %v1763_v43 = vpop.permute.xlu2 %1762  ;;  %v1609_v44 = vpop.permute.xlu0 %1608  ;;  %v1895_v47 = vpack.c.b16 %v1894_v38, %v1893_v35  ;;  %v1866_v37 = vunpack.c.l.b16 %v1784_v34 }
 0x1d3   : > { %v1643_v51 = vadd.f32 %v1609_v44, %v1547_v40  ;;  %v1611_v52 = vpop.permute.xlu1 %1610 }
 0x1d4   : > { %v1644_v57 = vadd.f32 %v1611_v52, %v1548_v45  ;;  %1896 = vrot.lane.b32.xlu1 %v1895_v47, %s10442_s20  ;;  %v1677_v47 = vmul.f32 %v8530_v32, %v8541_v36  ;;  %v1727_v52 = vmul.f32 %v8513_v25, %v8528_v31 }
 0x1d5   : > { %v1659_v27 = vpack.c.bf16 %v1643_v51, %v1643_v51 }
 0x1d6   : > { %v1660_v62 = vpack.c.bf16 %v1644_v57, %v1644_v57  ;;  %v1732_v57 = vmul.f32 %v8493_v16, %v8523_v29 }
 0x1d7   : > { %v1976_v8 = vunpack.c.l.b16 %v1659_v27  ;;  %v1774_v27 = vadd.f32 %v1751_v12, %v1726_v56  ;;  %v1542_v12 = vmul.f32 %v8493_v16, %v8470_v5 }
 0x1d8   : > { %v2009_v14 = vunpack.c.l.b16 %v1660_v62  ;;  %v1780_v62 = vadd.f32 %v1763_v43, %v1732_v57  ;;  %v1545_v57 = vmul.f32 %v8513_v25, %v8486_v13 }
 0x1d9   : > { %v1977_v20 = vpack.c.b16 %v1976_v8, %v1975_v7  ;;  %v1421_v8 = vmul.f32 %v8530_v32, %v8468_v4 }
 0x1da   : > { %v1757_v22 = vpop.permute.xlu2 %1756  ;;  %v1603_v26 = vpop.permute.xlu0 %1602  ;;  %v2011_v33 = vpack.c.b16 %v2010_v9, %v2009_v14 }
 0x1db   : > { %v1777_v48 = vadd.f32 %v1757_v22, %v1729_v19  ;;  %1978 = vrot.lane.b32.xlu2 %v1977_v20, %s10442_s20  ;;  %v1599_v35 = vpop.permute.xlu1 %1598  ;;  %v1782_v19 = vpack.c.bf16 %v1774_v27, %v1774_v27  ;;  %v1788_v20 = vpack.c.bf16 %v1780_v62, %v1780_v62  ;;  %v1543_v22 = vmul.f32 %v8513_v25, %v8490_v15 }
 0x1dc   : > { %1688 = vrot.lane.b32.xlu1 %v1671_v28, %s10442_s20  ;;  %2012 = vrot.lane.b32.xlu0 %v2011_v33, %s10442_s20 }
 0x1dd   : > { %v1785_v49 = vpack.c.bf16 %v1777_v48, %v1777_v48  ;;  %v1807_v48 = vunpack.c.l.b16 %v1782_v19 }
 0x1df   : > { %v1867_v38 = vunpack.c.l.b16 %v1785_v49  ;;  %v1982_v49 = vunpack.c.l.b16 %v1788_v20  ;;  %v1676_v20 = vmul.f32 %v8554_v42, %v8523_v29 }
 0x1e1   : > { %v1868_v40 = vpack.c.b16 %v1867_v38, %v1866_v37  ;;  %v1638_v37 = vadd.f32 %v1599_v35, %v1542_v12  ;;  %v1730_v35 = vmul.f32 %v8493_v16, %v8551_v41 }
 0x1e2   : > { %v1759_v44 = vpop.permute.xlu2 %1758  ;;  %v8619_v45 = vpop.permute.xlu0 %1692 }
 0x1e3   : > { %1869 = vrot.lane.b32.xlu2 %v1868_v40, %s10442_s20  ;;  %v1753_v51 = vpop.permute.xlu1 %1752  ;;  %v1654_v56 = vpack.c.bf16 %v1638_v37, %v1638_v37  ;;  %v1414_v37 = vmul.f32 %v8554_v42, %v8439_v53 }
 0x1e4   : > { %1700 = vrot.lane.b32.xlu1 %v1677_v47, %s10442_s20  ;;  %1686 = vrot.lane.b32.xlu0 %v1670_v50, %s10442_s20  ;;  %v1775_v63 = vadd.f32 %v1753_v51, %v1727_v52 }
 0x1e6   : > { %v1783_v7 = vpack.c.bf16 %v1775_v63, %v1775_v63  ;;  %v1544_v63 = vmul.f32 %v8493_v16, %v8472_v6 }
 0x1e8   : > { %v1808_v43 = vunpack.c.l.b16 %v1783_v7  ;;  %v1640_v7 = vadd.f32 %v1603_v26, %v1544_v63  ;;  %v1674_v63 = vmul.f32 %v8554_v42, %v8551_v41 }
 0x1ea   : > { %v1601_v9 = vpop.permute.xlu2 %1600  ;;  %v1765_v14 = vpop.permute.xlu0 %1764  ;;  %v1809_v47 = vpack.c.b16 %v1808_v43, %v1807_v48 }
 0x1eb   : > { %v1781_v28 = vadd.f32 %v1765_v14, %v1733_v0  ;;  %1460 = vrot.lane.b32.xlu2 %v1421_v8, %s10442_s20  ;;  %v1639_v33 = vadd.f32 %v1601_v9, %v1543_v22  ;;  %v1605_v51 = vpop.permute.xlu1 %1604  ;;  %v1917_v0 = vunpack.c.l.b16 %v1654_v56  ;;  %v1778_v8 = vadd.f32 %v1759_v44, %v1730_v35 }
 0x1ec   : > { %v1641_v62 = vadd.f32 %v1605_v51, %v1545_v57  ;;  %v1731_v14 = vmul.f32 %v8513_v25, %v8565_v46  ;;  %v1427_v51 = vmul.f32 %v8530_v32, %v8496_v17  ;;  %v1428_v56 = vmul.f32 %v8554_v42, %v8482_v11 }
 0x1ed   : > { %v1789_v34 = vpack.c.bf16 %v1781_v28, %v1781_v28  ;;  %v1655_v40 = vpack.c.bf16 %v1639_v33, %v1639_v33  ;;  %v1656_v28 = vpack.c.bf16 %v1640_v7, %v1640_v7  ;;  %v1786_v12 = vpack.c.bf16 %v1778_v8, %v1778_v8 }
 0x1ee   : > { %v1657_v9 = vpack.c.bf16 %v1641_v62, %v1641_v62  ;;  %v1426_v57 = vmul.f32 %v8554_v42, %v8480_v10  ;;  %v1675_v35 = vmul.f32 %v8530_v32, %v8565_v46  ;;  %v1423_v62 = vmul.f32 %v8530_v32, %v8490_v15 }
 0x1ef   : > { %v1983_v38 = vunpack.c.l.b16 %v1789_v34  ;;  %v1918_v27 = vunpack.c.l.b16 %v1655_v40  ;;  %v1951_v34 = vunpack.c.l.b16 %v1656_v28  ;;  %v1924_v44 = vunpack.c.l.b16 %v1786_v12 }
 0x1f0   : > { %v1952_v33 = vunpack.c.l.b16 %v1657_v9  ;;  %v1416_v40 = vmul.f32 %v8554_v42, %v8441_v54  ;;  %v1424_v7 = vmul.f32 %v8554_v42, %v8472_v6  ;;  %v1425_v9 = vmul.f32 %v8530_v32, %v8486_v13 }
 0x1f1   : > { %v1984_v50 = vpack.c.b16 %v1983_v38, %v1982_v49  ;;  %v1919_v19 = vpack.c.b16 %v1918_v27, %v1917_v0  ;;  %v1429_v27 = vmul.f32 %v8530_v32, %v8498_v18  ;;  %v1422_v0 = vmul.f32 %v8554_v42, %v8470_v5 }
 0x1f2   : > { %v8643_v52 = vpop.permute.xlu0 %1456  ;;  %v1953_v49 = vpack.c.b16 %v1952_v33, %v1951_v34  ;;  %v1691_v8 = vpop.permute.xlu2 %1690 }
 0x1f3   : > { %1810 = vrot.lane.b32.xlu2 %v1809_v47, %s10442_s20  ;;  %1985 = vrot.lane.b32.xlu0 %v1984_v50, %s10442_s20  ;;  %v1417_v47 = vmul.f32 %v8530_v32, %v8455_v61  ;;  %v1415_v50 = vmul.f32 %v8530_v32, %v8453_v60 }
 0x1fa   : > { %v1761_v22 = vpop.permute.xlu0 %1760 }
 0x1fb   : > { %v1779_v43 = vadd.f32 %v1761_v22, %v1731_v14  ;;  %1920 = vrot.lane.b32.xlu2 %v1919_v19, %s10442_s20  ;;  %1698 = vrot.lane.b32.xlu0 %v1676_v20, %s10442_s20  ;;  %v8702_v14 = vpop.permute.xlu1 %1458  ;;  %v1455_v19 = vpop.permute.xlu2 %1454 }
 0x1fd   : > { %v1787_v26 = vpack.c.bf16 %v1779_v43, %v1779_v43 }
 0x1ff   : > { %v1925_v48 = vunpack.c.l.b16 %v1787_v26 }
 0x201   : > { %v1926_v38 = vpack.c.b16 %v1925_v48, %v1924_v44 }
 0x203   : > { %1954 = vrot.lane.b32.xlu2 %v1953_v49, %s10442_s20  ;;  %1446 = vrot.lane.b32.xlu0 %v1414_v37, %s10442_s20  ;;  %v1664_v37 = vmul.f32 %v8508_v23, %v8243_v39 }
 0x204   : > { %1927 = vrot.lane.b32.xlu1 %v1926_v38, %s10442_s20  ;;  %v1665_v38 = vmul.f32 %v8526_v30, %v8281_v55 }
 0x20b   : > { %1450 = vrot.lane.b32.xlu2 %v1416_v40, %s10442_s20  ;;  %1452 = vrot.lane.b32.xlu0 %v1417_v47, %s10442_s20  ;;  %v1712_v40 = vsub.f32 %v1664_v37, %v1691_v8  ;;  %v1713_v47 = vsub.f32 %v1665_v38, %v8619_v45  ;;  %v1663_v45 = vmul.f32 %v8528_v31, %v8281_v55 }
 0x20c   : > { %1448 = vrot.lane.b32.xlu1 %v1415_v50, %s10442_s20  ;;  %v1669_v8 = vmul.f32 %v8541_v36, %v8281_v55  ;;  %v1397_v31 = vmul.f32 %v8468_v4, %v8281_v55 }
 0x20d   : > { %v1720_v50 = vpack.c.bf16 %v1712_v40, %v1712_v40  ;;  %v1395_v40 = vmul.f32 %v8466_v2, %v8281_v55 }
 0x20f   : > { %v1499_v4 = vsub.f32 %v1395_v40, %v8643_v52  ;;  %v1393_v40 = vmul.f32 %v8455_v61, %v8281_v55  ;;  %v1403_v61 = vmul.f32 %v8496_v17, %v8281_v55 }
 0x213   : > { %1472 = vrot.lane.b32.xlu2 %v1427_v51, %s10442_s20  ;;  %1474 = vrot.lane.b32.xlu0 %v1428_v56, %s10442_s20  ;;  %v1721_v51 = vpack.c.bf16 %v1713_v47, %v1713_v47 }
 0x214   : > { %1470 = vrot.lane.b32.xlu1 %v1426_v57, %s10442_s20 }
 0x21b   : > { %1694 = vrot.lane.b32.xlu2 %v1674_v63, %s10442_s20  ;;  %1696 = vrot.lane.b32.xlu0 %v1675_v35, %s10442_s20  ;;  %v2090_v35 = vunpack.c.l.b16 %v1720_v50 }
 0x21c   : > { %1476 = vrot.lane.b32.xlu1 %v1429_v27, %s10442_s20  ;;  %v2091_v27 = vunpack.c.l.b16 %v1721_v51 }
 0x223   : > { %1464 = vrot.lane.b32.xlu2 %v1423_v62, %s10442_s20  ;;  %1466 = vrot.lane.b32.xlu0 %v1424_v7, %s10442_s20  ;;  %v2092_v62 = vpack.c.b16 %v2091_v27, %v2090_v35  ;;  %v1662_v7 = vmul.f32 %v8511_v24, %v8243_v39 }
 0x224   : > { %1462 = vrot.lane.b32.xlu1 %v1422_v0, %s10442_s20 }
 0x225   : > { %v2097_v30 = vsel %vm1812_vm8, %v2092_v62, 0 }
 0x22c   : > { %1468 = vrot.lane.b32.xlu1 %v1425_v9, %s10442_s20  ;;  %s10465_s20 = smov 120  }
 0x22e   : > { %v1804_v20 = vpop.permute.xlu1 %1803 }
 0x235   : > { %v1979_v22 = vpop.permute.xlu2 %1978 }
 0x236   : > { %v1839_v12 = vpop.permute.xlu1 %1838 }
 0x23d   : > { %v1870_v28 = vpop.permute.xlu2 %1869 }
 0x23e   : > { %v1875_v43 = vsel %vm1812_vm8, %v1870_v28, 0  ;;  %v1863_v33 = vpop.permute.xlu0 %1862 }
 0x23f   : > { %1884 = vmatpush.bf16.xpose.msra.mxu2 %v1875_v43  ;;  %1908 = vmatpush.bf16.xpose.msra.mxu3 %v1875_v43 }
 0x245   : > { %v1461_v26 = vpop.permute.xlu2 %1460 }
 0x246   : > { %6595 = vmatmul.msk.bf16.vlgmr.msra.gmra.mxu2 %vm1812_vm8, %v1863_v33  ;;  %v1897_v34 = vpop.permute.xlu1 %1896  ;;  %v1501_v50 = vsub.f32 %v1397_v31, %v1461_v26 }
 0x247   : > { %6596 = vmatmul.msk.bf16.vlgmr.msra.gmra.mxu3 %vm1812_vm8, %v1897_v34  ;;  %v1668_v34 = vmul.f32 %v8523_v29, %v8243_v39  ;;  %v1396_v29 = vmul.f32 %v8451_v59, %v8243_v39 }
 0x24d   : > { %v1811_v44 = vpop.permute.xlu2 %1810 }
 0x24e   : > { %v1817_v48 = vsel %vm1812_vm8, %v1811_v44, 0  ;;  %v2013_v49 = vpop.permute.xlu0 %2012  ;;  %v1689_v56 = vpop.permute.xlu1 %1688  ;;  %v1394_v44 = vmul.f32 %v8449_v58, %v8243_v39  ;;  %v1515_v39 = vpack.c.bf16 %v1499_v4, %v1499_v4 }
 0x24f   : > { %1826 = vmatpush.bf16.xpose.msra.mxu0 %v1817_v48  ;;  %1850 = vmatpush.bf16.xpose.msra.mxu1 %v1817_v48  ;;  %v1711_v24 = vsub.f32 %v1663_v45, %v1689_v56  ;;  %v1500_v56 = vsub.f32 %v1396_v29, %v8702_v14  ;;  %v8758_v29 = vld [vmem:[%s10458_s1] sm:$0xff] }
 0x250   : > { %v1498_v47 = vsub.f32 %v1394_v44, %v1455_v19 }
 0x251   : > { %v1719_v36 = vpack.c.bf16 %v1711_v24, %v1711_v24  ;;  %v1516_v59 = vpack.c.bf16 %v1500_v56, %v1500_v56 }
 0x255   : > { %v8716_v63 = vpop.permute.xlu2 %1920 }
 0x256   : > { %6593 = vmatmul.msk.bf16.vlgmr.msra.gmra.mxu0 %vm1812_vm8, %v1804_v20  ;;  %6594 = vmatmul.msk.bf16.vlgmr.msra.gmra.mxu1 %vm1812_vm8, %v1839_v12  ;;  %v1687_v57 = vpop.permute.xlu0 %1686  ;;  %v1701_v9 = vpop.permute.xlu1 %1700 }
 0x257   : > { %v1710_v20 = vsub.f32 %v1662_v7, %v1687_v57  ;;  %v1309_v12 = vpop.f32.mrf.mxu1  ;;  %v1717_v43 = vsub.f32 %v1669_v8, %v1701_v9  ;;  %v2039_v57 = vunpack.c.l.b16 %v1719_v36 }
 0x258   : > { %v1792_v14 = vpack.c.bf16 %v1309_v12, %v1309_v12  ;;  %v1391_v12 = vmul.f32 %v8453_v60, %v8281_v55  ;;  %v8762_v60 = vpop.f32.mrf.mxu0 }
 0x259   : > { %v1718_v33 = vpack.c.bf16 %v1710_v20, %v1710_v20  ;;  %v1725_v37 = vpack.c.bf16 %v1717_v43, %v1717_v43  ;;  %v1385_v20 = vpop.f32.mrf.mxu3  ;;  %v2086_v43 = vunpack.c.l.b16 %v1515_v39 }
 0x25b   : > { %v2038_v58 = vunpack.c.l.b16 %v1718_v33  ;;  %v2195_v35 = vunpack.c.l.b16 %v1725_v37  ;;  %v2115_v33 = vunpack.c.l.b16 %v1516_v59 }
 0x25d   : > { %v8726_v28 = vpop.permute.xlu2 %1954  ;;  %v2040_v7 = vpack.c.b16 %v2039_v57, %v2038_v58 }
 0x25f   : > { %v1311_v62 = vpop.f32.mrf.mxu1  ;;  %v2045_v8 = vsel %vm1812_vm8, %v2040_v7, 0 }
 0x260   : > { %v1793_v9 = vpack.c.bf16 %v1311_v62, %v1311_v62 }
 0x262   : > { %v2522_v24 = vunpack.c.l.b16 %v1793_v9  ;;  %v1796_v9 = vpack.c.bf16 %v1385_v20, %v1385_v20 }
 0x264   : > { %v2621_v20 = vunpack.c.l.b16 %v1796_v9 }
 0x265   : > { %v1986_v23 = vpop.permute.xlu0 %1985  ;;  %v1451_v27 = vpop.permute.xlu2 %1450 }
 0x266   : > { %v1991_v0 = vsel %vm1812_vm8, %v1986_v23, 0  ;;  %v1517_v23 = vpack.c.bf16 %v1501_v50, %v1501_v50 }
 0x267   : > { %2000 = vmatpush.bf16.xpose.msrb.mxu2 %v1991_v0  ;;  %2024 = vmatpush.bf16.xpose.msrb.mxu3 %v1991_v0 }
 0x268   : > { %v2116_v45 = vunpack.c.l.b16 %v1517_v23 }
 0x26a   : > { %v2117_v31 = vpack.c.b16 %v2116_v45, %v2115_v33 }
 0x26d   : > { %v1699_v48 = vpop.permute.xlu0 %1698 }
 0x26e   : > { %v1716_v38 = vsub.f32 %v1668_v34, %v1699_v48  ;;  %6599 = vmatmul.msk.bf16.vlgmr.msrb.gmra.mxu2 %vm1812_vm8, %v1979_v22  ;;  %6600 = vmatmul.msk.bf16.vlgmr.msrb.gmra.mxu3 %vm1812_vm8, %v2013_v49  ;;  %v1514_v49 = vpack.c.bf16 %v1498_v47, %v1498_v47  ;;  %v2521_v34 = vunpack.c.l.b16 %v1792_v14  ;;  %v1473_v48 = vpop.permute.xlu2 %1472  ;;  %v1392_v47 = vmul.f32 %v8758_v29, %v8441_v54  ;;  %v1273_v14 = vpop.f32.mrf.mxu0 }
 0x26f   : > { %2106 = vmatpush.bf16.xpose.msra.mxu2 %v2097_v30  ;;  %2128 = vmatpush.bf16.xpose.msra.mxu3 %v2097_v30  ;;  %v1507_v4 = vsub.f32 %v1403_v61, %v1473_v48  ;;  %v1402_v54 = vmul.f32 %v8758_v29, %v8480_v10  ;;  %v1791_v48 = vpack.c.bf16 %v1273_v14, %v1273_v14 }
 0x270   : > { %v1724_v51 = vpack.c.bf16 %v1716_v38, %v1716_v38  ;;  %v2085_v30 = vunpack.c.l.b16 %v1514_v49  ;;  %v2523_v37 = vpack.c.b16 %v2522_v24, %v2521_v34  ;;  %v1496_v58 = vsub.f32 %v1392_v47, %v1451_v27 }
 0x271   : > { %v1523_v55 = vpack.c.bf16 %v1507_v4, %v1507_v4  ;;  %v1404_v27 = vmul.f32 %v8758_v29, %v8482_v11 }
 0x272   : > { %v2194_v22 = vunpack.c.l.b16 %v1724_v51  ;;  %v2087_v44 = vpack.c.b16 %v2086_v43, %v2085_v30  ;;  %v1387_v51 = vpop.f32.mrf.mxu3  ;;  %v1512_v49 = vpack.c.bf16 %v1496_v58, %v1496_v58 }
 0x273   : > { %v1797_v62 = vpack.c.bf16 %v1387_v51, %v1387_v51  ;;  %v2190_v30 = vunpack.c.l.b16 %v1523_v55  ;;  %v2472_v51 = vunpack.c.l.b16 %v1791_v48 }
 0x274   : > { %v2196_v2 = vpack.c.b16 %v2195_v35, %v2194_v22 }
 0x275   : > { %v1447_v0 = vpop.permute.xlu0 %1446 }
 0x276   : > { %v1928_v19 = vpop.permute.xlu1 %1927  ;;  %v2201_v26 = vsel %vm1812_vm8, %v2196_v2, 0  ;;  %v1695_v23 = vpop.permute.xlu2 %1694 }
 0x277   : > { %v1933_v52 = vsel %vm1812_vm8, %v1928_v19, 0  ;;  %2210 = vmatpush.bf16.xpose.msrb.mxu2 %v2201_v26  ;;  %2232 = vmatpush.bf16.xpose.msrb.mxu3 %v2201_v26  ;;  %v2622_v19 = vunpack.c.l.b16 %v1797_v62  ;;  %v2063_v26 = vunpack.c.l.b16 %v1512_v49  ;;  %v1398_v49 = vmul.f32 %v8758_v29, %v8470_v5 }
 0x278   : > { %1942 = vmatpush.bf16.xpose.msrb.mxu0 %v1933_v52  ;;  %1966 = vmatpush.bf16.xpose.msrb.mxu1 %v1933_v52  ;;  %v1400_v5 = vmul.f32 %v8758_v29, %v8472_v6 }
 0x27d   : > { %v1453_v36 = vpop.permute.xlu0 %1452 }
 0x27e   : > { %v1449_v38 = vpop.permute.xlu1 %1448  ;;  %6603 = vmatmul.msk.bf16.vlgmr.msra.gmra.mxu2 %vm1812_vm8, %v2087_v44  ;;  %6604 = vmatmul.msk.bf16.vlgmr.msra.gmra.mxu3 %vm1812_vm8, %v2117_v31  ;;  %v1465_v61 = vpop.permute.xlu2 %1464 }
 0x27f   : > { %6597 = vmatmul.msk.bf16.vlgmr.msrb.gmra.mxu0 %vm1812_vm8, %v8716_v63  ;;  %6598 = vmatmul.msk.bf16.vlgmr.msrb.gmra.mxu1 %vm1812_vm8, %v8726_v28  ;;  %v1390_v63 = vmul.f32 %v8758_v29, %v8439_v53  ;;  %v1495_v50 = vsub.f32 %v1391_v12, %v1449_v38  ;;  %v1497_v28 = vsub.f32 %v1393_v40, %v1453_v36 }
 0x280   : > { %2054 = vmatpush.bf16.xpose.msra.mxu0 %v2045_v8  ;;  %2076 = vmatpush.bf16.xpose.msra.mxu1 %v2045_v8  ;;  %v1666_v53 = vmul.f32 %v8758_v29, %v8551_v41  ;;  %v7952_v41 = vld [vmem:[%s10458_s1 + $0x8] sm:$0xff]  ;;  %v2623_v12 = vpack.c.b16 %v2622_v19, %v2621_v20 }
 0x281   : > { %2535 = vmatpush.bf16.msra.mxu2 %v2523_v37  ;;  %2557 = vmatpush.bf16.msra.mxu3 %v2523_v37  ;;  %v1494_v56 = vsub.f32 %v1390_v63, %v1447_v0  ;;  %v1511_v57 = vpack.c.bf16 %v1495_v50, %v1495_v50  ;;  %v1513_v35 = vpack.c.bf16 %v1497_v28, %v1497_v28  ;;  %v8774_v0 = vpop.f32.mrf.mxu2 }
 0x282   : > { %v1714_v52 = vsub.f32 %v1666_v53, %v1695_v23  ;;  %v1405_v11 = vmul.f32 %v7952_v41, %v8498_v18  ;;  %v1667_v43 = vmul.f32 %v7952_v41, %v8565_v46  ;;  %v1790_v46 = vpack.c.bf16 %v8762_v60, %v8762_v60 }
 0x283   : > { %v1510_v17 = vpack.c.bf16 %v1494_v56, %v1494_v56  ;;  %v2034_v39 = vunpack.c.l.b16 %v1511_v57  ;;  %v2064_v59 = vunpack.c.l.b16 %v1513_v35  ;;  %v1399_v63 = vmul.f32 %v7952_v41, %v8490_v15 }
 0x284   : > { %v1722_v36 = vpack.c.bf16 %v1714_v52, %v1714_v52  ;;  %v1401_v52 = vmul.f32 %v7952_v41, %v8486_v13 }
 0x285   : > { %v1475_v22 = vpop.permute.xlu0 %1474  ;;  %v2033_v45 = vunpack.c.l.b16 %v1510_v17  ;;  %v2065_v34 = vpack.c.b16 %v2064_v59, %v2063_v26  ;;  %v1503_v56 = vsub.f32 %v1399_v63, %v1465_v61  ;;  %v8805_v61 = vld [vmem:[%s10422_s3] sm:$0xff] }
 0x286   : > { %v1471_v7 = vpop.permute.xlu1 %1470  ;;  %v1508_v24 = vsub.f32 %v1404_v27, %v1475_v22  ;;  %v2142_v28 = vunpack.c.l.b16 %v1722_v36  ;;  %v2471_v22 = vunpack.c.l.b16 %v1790_v46 }
 0x287   : > { %v1506_v2 = vsub.f32 %v1402_v54, %v1471_v7  ;;  %v2035_v33 = vpack.c.b16 %v2034_v39, %v2033_v45  ;;  %v1519_v55 = vpack.c.bf16 %v1503_v56, %v1503_v56 }
 0x288   : > { %v1524_v40 = vpack.c.bf16 %v1508_v24, %v1508_v24  ;;  %v2473_v15 = vpack.c.b16 %v2472_v51, %v2471_v22 }
 0x289   : > { %v1522_v10 = vpack.c.bf16 %v1506_v2, %v1506_v2  ;;  %v1349_v4 = vpop.f32.mrf.mxu2  ;;  %v1794_v2 = vpack.c.bf16 %v8774_v0, %v8774_v0  ;;  %v2138_v39 = vunpack.c.l.b16 %v1519_v55 }
 0x28a   : > { %v2219_v57 = vunpack.c.l.b16 %v1524_v40  ;;  %v1795_v23 = vpack.c.bf16 %v1349_v4, %v1349_v4 }
 0x28b   : > { %v2189_v8 = vunpack.c.l.b16 %v1522_v10  ;;  %v2571_v19 = vunpack.c.l.b16 %v1794_v2 }
 0x28c   : > { %v2572_v9 = vunpack.c.l.b16 %v1795_v23 }
 0x28d   : > { %v2191_v44 = vpack.c.b16 %v2190_v30, %v2189_v8  ;;  %v1697_v31 = vpop.permute.xlu0 %1696 }
 0x28e   : > { %v1477_v37 = vpop.permute.xlu1 %1476  ;;  %v1715_v38 = vsub.f32 %v1667_v43, %v1697_v31  ;;  %v2573_v14 = vpack.c.b16 %v2572_v9, %v2571_v19  ;;  %v530_v9 = vld [vmem:[%s10422_s3 + $0x8] sm:$0xff] }
 0x28f   : > { %v1509_v47 = vsub.f32 %v1405_v11, %v1477_v37  ;;  %6601 = vmatmul.msk.bf16.vlgmr.msra.gmra.mxu0 %vm1812_vm8, %v2035_v33  ;;  %6602 = vmatmul.msk.bf16.vlgmr.msra.gmra.mxu1 %vm1812_vm8, %v2065_v34 }
 0x290   : > { %v1723_v18 = vpack.c.bf16 %v1715_v38, %v1715_v38  ;;  %6607 = vmatmul.msk.bf16.vlgmr.msrb.gmra.mxu2 %vm1812_vm8, %v2191_v44 }
 0x291   : > { %v1525_v50 = vpack.c.bf16 %v1509_v47, %v1509_v47  ;;  %2635 = vmatpush.bf16.msrb.mxu2 %v2623_v12 }
 0x292   : > { %v2143_v58 = vunpack.c.l.b16 %v1723_v18 }
 0x293   : > { %v2220_v35 = vunpack.c.l.b16 %v1525_v50 }
 0x294   : > { %v2144_v54 = vpack.c.b16 %v2143_v58, %v2142_v28 }
 0x295   : > { %v2221_v62 = vpack.c.b16 %v2220_v35, %v2219_v57  ;;  %v1467_v53 = vpop.permute.xlu0 %1466 }
 0x296   : > { %v1463_v7 = vpop.permute.xlu1 %1462  ;;  %v2149_v60 = vsel %vm1812_vm8, %v2144_v54, 0  ;;  %v1504_v10 = vsub.f32 %v1400_v5, %v1467_v53 }
 0x297   : > { %v1502_v17 = vsub.f32 %v1398_v49, %v1463_v7  ;;  %6608 = vmatmul.msk.bf16.vlgmr.msrb.gmra.mxu3 %vm1812_vm8, %v2221_v62  ;;  %2158 = vmatpush.bf16.xpose.msrb.mxu0 %v2149_v60 }
 0x298   : > { %2657 = vmatpush.bf16.msrb.mxu3 %v2623_v12  ;;  %2180 = vmatpush.bf16.xpose.msrb.mxu1 %v2149_v60  ;;  %v1520_v0 = vpack.c.bf16 %v1504_v10, %v1504_v10 }
 0x299   : > { %v1518_v27 = vpack.c.bf16 %v1502_v17, %v1502_v17 }
 0x29a   : > { %v2167_v24 = vunpack.c.l.b16 %v1520_v0 }
 0x29b   : > { %v2137_v59 = vunpack.c.l.b16 %v1518_v27 }
 0x29d   : > { %v2139_v26 = vpack.c.b16 %v2138_v39, %v2137_v59 }
 0x29e   : > { %v1469_v30 = vpop.permute.xlu1 %1468 }
 0x29f   : > { %2485 = vmatpush.bf16.msra.mxu0 %v2473_v15  ;;  %v1505_v45 = vsub.f32 %v1401_v52, %v1469_v30 }
 0x2a0   : > { %2507 = vmatpush.bf16.msra.mxu1 %v2473_v15  ;;  %6605 = vmatmul.msk.bf16.vlgmr.msrb.gmra.mxu0 %vm1812_vm8, %v2139_v26 }
 0x2a1   : > { %v1521_v8 = vpack.c.bf16 %v1505_v45, %v1505_v45 }
 0x2a3   : > { %2585 = vmatpush.bf16.msrb.mxu0 %v2573_v14  ;;  %v2168_v6 = vunpack.c.l.b16 %v1521_v8 }
 0x2a5   : > { %v2169_v29 = vpack.c.b16 %v2168_v6, %v2167_v24 }
 0x2a7   : > { %6606 = vmatmul.msk.bf16.vlgmr.msrb.gmra.mxu1 %vm1812_vm8, %v2169_v29 }
 0x2a8   : > { %2607 = vmatpush.bf16.msrb.mxu1 %v2573_v14 }
 0x2c9   : > { %v1886_v11 = vpop.f32.mrf.mxu2 }
 0x2ca   : > { %v1910_v43 = vpop.f32.mrf.mxu3 }
 0x2d1   : > { %v1888_v20 = vpop.f32.mrf.mxu2 }
 0x2d2   : > { %v1912_v13 = vpop.f32.mrf.mxu3 }
 0x2d3   : > { %v1828_v33 = vpop.f32.mrf.mxu0  ;;  %v1852_v34 = vpop.f32.mrf.mxu1 }
 0x2db   : > { %v1830_v44 = vpop.f32.mrf.mxu0  ;;  %v1854_v31 = vpop.f32.mrf.mxu1 }
 0x2f1   : > { %v2002_v41 = vpop.f32.mrf.mxu2  ;;  %v2026_v48 = vpop.f32.mrf.mxu3 }
 0x2f9   : > { %v2004_v36 = vpop.f32.mrf.mxu2  ;;  %v8800_v12 = vpop.f32.mrf.mxu3 }
 0x2fc   : > { %v1944_v37 = vpop.f32.mrf.mxu0  ;;  %v8798_v38 = vpop.f32.mrf.mxu1 }
 0x301   : > { %v2108_v40 = vpop.f32.mrf.mxu2  ;;  %v2130_v28 = vpop.f32.mrf.mxu3 }
 0x302   : > { %v2109_v47 = vadd.f32 %v2108_v40, %v1886_v11  ;;  %v2131_v49 = vadd.f32 %v2130_v28, %v1910_v43 }
 0x304   : > { %v2243_v18 = vmul.f32 0.25, %v2109_v47  ;;  %v8807_v46 = vpop.f32.mrf.mxu0  ;;  %v8809_v63 = vpop.f32.mrf.mxu1  ;;  %v2245_v53 = vmul.f32 0.25, %v2131_v49 }
 0x306   : > { %v8812_v50 = vadd.f32 %v2243_v18, %v8805_v61  ;;  %v8832_v52 = vadd.f32 %v2245_v53, %v8805_v61 }
 0x308   : > { %v2284_v58 = vsel %vm2271_vm9, %v8812_v50, -inf  ;;  %v2290_v11 = vsel %vm2271_vm9, %v8832_v52, -inf }
 0x309   : > { %v2110_v51 = vpop.f32.mrf.mxu2  ;;  %2285 = vmax.xlane.f32.xlu2 %v2284_v58  ;;  %v2132_v60 = vpop.f32.mrf.mxu3 }
 0x30a   : > { %v2111_v54 = vadd.f32 %v2110_v51, %v1888_v20  ;;  %v2133_v59 = vadd.f32 %v2132_v60, %v1912_v13 }
 0x30c   : > { %v2056_v4 = vpop.f32.mrf.mxu0  ;;  %v2078_v56 = vpop.f32.mrf.mxu1  ;;  %v2244_v15 = vmul.f32 0.25, %v2111_v54  ;;  %v2246_v0 = vmul.f32 0.25, %v2133_v59 }
 0x30d   : > { %v2057_v57 = vadd.f32 %v2056_v4, %v1828_v33  ;;  %v2079_v35 = vadd.f32 %v2078_v56, %v1852_v34 }
 0x30e   : > { %v8829_v26 = vadd.f32 %v2244_v15, %v530_v9  ;;  %v8842_v13 = vadd.f32 %v2246_v0, %v530_v9 }
 0x30f   : > { %v2239_v22 = vmul.f32 0.25, %v2057_v57  ;;  %v2241_v62 = vmul.f32 0.25, %v2079_v35 }
 0x310   : > { %v2287_v6 = vsel %vm2271_vm9, %v8829_v26, -inf  ;;  %v2293_v28 = vsel %vm2271_vm9, %v8842_v13, -inf }
 0x311   : > { %v8817_v23 = vadd.f32 %v2239_v22, %v8805_v61  ;;  %v8820_v7 = vadd.f32 %v2241_v62, %v8805_v61 }
 0x313   : > { %v2212_v55 = vpop.f32.mrf.mxu2  ;;  %v2272_v17 = vsel %vm2271_vm9, %v8817_v23, -inf  ;;  %v2278_v2 = vsel %vm2271_vm9, %v8820_v7, -inf }
 0x314   : > { %v2058_v27 = vpop.f32.mrf.mxu0  ;;  %2273 = vmax.xlane.f32.xlu0 %v2272_v17  ;;  %v2080_v5 = vpop.f32.mrf.mxu1  ;;  %2279 = vmax.xlane.f32.xlu1 %v2278_v2  ;;  %v2213_v33 = vadd.f32 %v2212_v55, %v2002_v41 }
 0x315   : > { %v2059_v39 = vadd.f32 %v2058_v27, %v1830_v44  ;;  %v2081_v19 = vadd.f32 %v2080_v5, %v1854_v31 }
 0x316   : > { %v2251_v47 = vmul.f32 0.25, %v2213_v33 }
 0x317   : > { %v2240_v10 = vmul.f32 0.25, %v2059_v39  ;;  %v2242_v45 = vmul.f32 0.25, %v2081_v19 }
 0x318   : > { %v8857_v57 = vadd.f32 %v2251_v47, %v8805_v61 }
 0x319   : > { %v8834_v14 = vadd.f32 %v2240_v10, %v530_v9  ;;  %v8844_v44 = vadd.f32 %v2242_v45, %v530_v9 }
 0x31a   : > { %v2234_v30 = vpop.f32.mrf.mxu3  ;;  %v2308_v49 = vsel %vm2271_vm9, %v8857_v57, -inf }
 0x31b   : > { %v2214_v8 = vpop.f32.mrf.mxu2  ;;  %v2275_v24 = vsel %vm2271_vm9, %v8834_v14, -inf  ;;  %v2235_v34 = vadd.f32 %v2234_v30, %v2026_v48  ;;  %v2281_v58 = vsel %vm2271_vm9, %v8844_v44, -inf }
 0x31c   : > { %v2215_v29 = vadd.f32 %v2214_v8, %v2004_v36  ;;  %2276 = vmax.xlane.f32.xlu2 %v2275_v24  ;;  %2288 = vmax.xlane.f32.xlu0 %v2287_v6 }
 0x31d   : > { %v2160_v43 = vpop.f32.mrf.mxu0  ;;  %2291 = vmax.xlane.f32.xlu1 %v2290_v11  ;;  %v2253_v18 = vmul.f32 0.25, %v2235_v34 }
 0x31e   : > { %v2252_v20 = vmul.f32 0.25, %v2215_v29  ;;  %v2161_v31 = vadd.f32 %v2160_v43, %v1944_v37 }
 0x31f   : > { %v8860_v35 = vadd.f32 %v2253_v18, %v8805_v61 }
 0x320   : > { %v8846_v40 = vadd.f32 %v2252_v20, %v530_v9  ;;  %v2247_v51 = vmul.f32 0.25, %v2161_v31 }
 0x321   : > { %v2314_v60 = vsel %vm2271_vm9, %v8860_v35, -inf }
 0x322   : > { %v2236_v36 = vpop.f32.mrf.mxu3  ;;  %v2311_v41 = vsel %vm2271_vm9, %v8846_v40, -inf  ;;  %v8863_v54 = vadd.f32 %v2247_v51, %v8805_v61 }
 0x323   : > { %v2237_v37 = vadd.f32 %v2236_v36, %v8800_v12 }
 0x324   : > { %2294 = vmax.xlane.f32.xlu2 %v2293_v28  ;;  %2282 = vmax.xlane.f32.xlu0 %v2281_v58  ;;  %v2182_v4 = vpop.f32.mrf.mxu1  ;;  %v2296_v12 = vsel %vm2271_vm9, %v8863_v54, -inf }
 0x325   : > { %v2162_v48 = vpop.f32.mrf.mxu0  ;;  %2312 = vmax.xlane.f32.xlu1 %v2311_v41  ;;  %v2254_v22 = vmul.f32 0.25, %v2237_v37  ;;  %v2183_v55 = vadd.f32 %v2182_v4, %v8798_v38 }
 0x326   : > { %v2163_v56 = vadd.f32 %v2162_v48, %v8807_v46 }
 0x327   : > { %v8873_v2 = vadd.f32 %v2254_v22, %v530_v9  ;;  %v2249_v5 = vmul.f32 0.25, %v2183_v55 }
 0x328   : > { %v2248_v62 = vmul.f32 0.25, %v2163_v56 }
 0x329   : > { %v2317_v39 = vsel %vm2271_vm9, %v8873_v2, -inf  ;;  %v8886_v38 = vadd.f32 %v2249_v5, %v8805_v61 }
 0x32a   : > { %v8875_v53 = vadd.f32 %v2248_v62, %v530_v9 }
 0x32c   : > { %2309 = vmax.xlane.f32.xlu2 %v2308_v49  ;;  %2315 = vmax.xlane.f32.xlu0 %v2314_v60  ;;  %v2184_v46 = vpop.f32.mrf.mxu1  ;;  %v2299_v59 = vsel %vm2271_vm9, %v8875_v53, -inf }
 0x32d   : > { %2297 = vmax.xlane.f32.xlu1 %v2296_v12  ;;  %v2185_v15 = vadd.f32 %v2184_v46, %v8809_v63  ;;  %v2302_v63 = vsel %vm2271_vm9, %v8886_v38, -inf }
 0x32f   : > { %v2250_v17 = vmul.f32 0.25, %v2185_v15 }
 0x331   : > { %v8877_v27 = vadd.f32 %v2250_v17, %v530_v9 }
 0x333   : > { %v2305_v10 = vsel %vm2271_vm9, %v8877_v27, -inf }
 0x334   : > { %2318 = vmax.xlane.f32.xlu2 %v2317_v39  ;;  %2300 = vmax.xlane.f32.xlu0 %v2299_v59 }
 0x335   : > { %2306 = vmax.xlane.f32.xlu1 %v2305_v10 }
 0x33c   : > { %2303 = vmax.xlane.f32.xlu2 %v2302_v63 }
 0x37c   : > { %v2286_v9 = vpop.xlane.xlu2 %2285 }
 0x37d   : > { %v2324_v8 = vsub.f32 %v8812_v50, %v2286_v9 }
 0x37f   : > { %v2344_v29 = vmul.f32 1.442695, %v2324_v8 }
 0x387   : > { %v2280_v19 = vpop.xlane.xlu1 %2279  ;;  %v2274_v30 = vpop.xlane.xlu0 %2273 }
 0x388   : > { %v2322_v0 = vsub.f32 %v8820_v7, %v2280_v19  ;;  %v2320_v45 = vsub.f32 %v8817_v23, %v2274_v30 }
 0x38a   : > { %v2340_v24 = vmul.f32 1.442695, %v2322_v0  ;;  %v2336_v6 = vmul.f32 1.442695, %v2320_v45 }
 0x38c   : > { %7775 = vpow2.f32 %v2340_v24 }
 0x38d   : > { %7777 = vpow2.f32 %v2336_v6 }
 0x38e   : > { %7779 = vpow2.f32 %v2344_v29 }
 0x38f   : > { %v2277_v61 = vpop.xlane.xlu2 %2276  ;;  %v2289_v11 = vpop.xlane.xlu0 %2288 }
 0x390   : > { %v2292_v43 = vpop.xlane.xlu1 %2291  ;;  %v2325_v20 = vsub.f32 %v8829_v26, %v2289_v11  ;;  %v2321_v50 = vsub.f32 %v8834_v14, %v2277_v61 }
 0x391   : > { %v2326_v33 = vsub.f32 %v8832_v52, %v2292_v43 }
 0x392   : > { %v8895_v34 = vpop.eup %7775  ;;  %v2346_v7 = vmul.f32 1.442695, %v2325_v20  ;;  %v2338_v26 = vmul.f32 1.442695, %v2321_v50 }
 0x393   : > { %v8897_v31 = vpop.eup %7777  ;;  %v2348_v23 = vmul.f32 1.442695, %v2326_v33  ;;  %v2374_v47 = vsel %vm2271_vm9, %v8895_v34, 0.0 }
 0x394   : > { %2375 = vadd.xlane.f32.xlu0 %v2374_v47  ;;  %v2368_v18 = vsel %vm2271_vm9, %v8897_v31, 0.0  ;;  %v8904_v28 = vpop.eup %7779 }
 0x395   : > { %7781 = vpow2.f32 %v2348_v23  ;;  %2369 = vadd.xlane.f32.xlu2 %v2368_v18  ;;  %v2380_v56 = vsel %vm2271_vm9, %v8904_v28, 0.0 }
 0x396   : > { %7783 = vpow2.f32 %v2346_v7 }
 0x397   : > { %v2295_v52 = vpop.xlane.xlu2 %2294  ;;  %v2283_v36 = vpop.xlane.xlu0 %2282  ;;  %7785 = vpow2.f32 %v2338_v26 }
 0x398   : > { %v2327_v58 = vsub.f32 %v8842_v13, %v2295_v52  ;;  %v2313_v51 = vpop.xlane.xlu1 %2312  ;;  %v2323_v14 = vsub.f32 %v8844_v44, %v2283_v36 }
 0x399   : > { %v2333_v48 = vsub.f32 %v8846_v40, %v2313_v51 }
 0x39a   : > { %v2350_v41 = vmul.f32 1.442695, %v2327_v58  ;;  %v2342_v4 = vmul.f32 1.442695, %v2323_v14 }
 0x39b   : > { %v8909_v37 = vpop.eup %7781  ;;  %v2362_v62 = vmul.f32 1.442695, %v2333_v48 }
 0x39c   : > { %v8913_v22 = vpop.eup %7783  ;;  %7787 = vpow2.f32 %v2350_v41  ;;  %2381 = vadd.xlane.f32.xlu0 %v2380_v56  ;;  %v2386_v13 = vsel %vm2271_vm9, %v8909_v37, 0.0 }
 0x39d   : > { %2387 = vadd.xlane.f32.xlu1 %v2386_v13  ;;  %v2383_v44 = vsel %vm2271_vm9, %v8913_v22, 0.0  ;;  %7789 = vpow2.f32 %v2342_v4  ;;  %v8921_v15 = vpop.eup %7785 }
 0x39e   : > { %2384 = vadd.xlane.f32.xlu2 %v2383_v44  ;;  %7791 = vpow2.f32 %v2362_v62 }
 0x39f   : > { %v2310_v40 = vpop.xlane.xlu2 %2309  ;;  %v2316_v49 = vpop.xlane.xlu0 %2315 }
 0x3a0   : > { %v2332_v60 = vsub.f32 %v8857_v57, %v2310_v40  ;;  %v2298_v12 = vpop.xlane.xlu1 %2297  ;;  %v2334_v46 = vsub.f32 %v8860_v35, %v2316_v49  ;;  %v2371_v57 = vsel %vm2271_vm9, %v8921_v15, 0.0 }
 0x3a1   : > { %v2328_v5 = vsub.f32 %v8863_v54, %v2298_v12 }
 0x3a2   : > { %v8923_v55 = vpop.eup %7787  ;;  %v2360_v17 = vmul.f32 1.442695, %v2332_v60  ;;  %v2364_v39 = vmul.f32 1.442695, %v2334_v46 }
 0x3a3   : > { %v2389_v59 = vsel %vm2271_vm9, %v8923_v55, 0.0  ;;  %v8928_v10 = vpop.eup %7789  ;;  %v2352_v63 = vmul.f32 1.442695, %v2328_v5 }
 0x3a4   : > { %7793 = vpow2.f32 %v2360_v17  ;;  %2390 = vadd.xlane.f32.xlu0 %v2389_v59  ;;  %v2377_v35 = vsel %vm2271_vm9, %v8928_v10, 0.0  ;;  %v8934_v19 = vpop.eup %7791 }
 0x3a5   : > { %2372 = vadd.xlane.f32.xlu1 %v2371_v57  ;;  %7795 = vpow2.f32 %v2364_v39  ;;  %v2407_v61 = vsel %vm2271_vm9, %v8934_v19, 0.0 }
 0x3a6   : > { %2378 = vadd.xlane.f32.xlu2 %v2377_v35  ;;  %7797 = vpow2.f32 %v2352_v63 }
 0x3a7   : > { %v2319_v9 = vpop.xlane.xlu2 %2318  ;;  %v2301_v54 = vpop.xlane.xlu0 %2300 }
 0x3a8   : > { %v2335_v30 = vsub.f32 %v8873_v2, %v2319_v9  ;;  %v2307_v0 = vpop.xlane.xlu1 %2306  ;;  %v2329_v45 = vsub.f32 %v8875_v53, %v2301_v54 }
 0x3a9   : > { %v2331_v6 = vsub.f32 %v8877_v27, %v2307_v0 }
 0x3aa   : > { %v8938_v8 = vpop.eup %7793  ;;  %v2366_v24 = vmul.f32 1.442695, %v2335_v30  ;;  %v2354_v29 = vmul.f32 1.442695, %v2329_v45 }
 0x3ab   : > { %v2404_v11 = vsel %vm2271_vm9, %v8938_v8, 0.0  ;;  %v8945_v43 = vpop.eup %7795  ;;  %v2358_v53 = vmul.f32 1.442695, %v2331_v6 }
 0x3ac   : > { %7799 = vpow2.f32 %v2366_v24  ;;  %2408 = vadd.xlane.f32.xlu0 %v2407_v61  ;;  %v2410_v2 = vsel %vm2271_vm9, %v8945_v43, 0.0  ;;  %v8949_v27 = vpop.eup %7797 }
 0x3ad   : > { %2405 = vadd.xlane.f32.xlu1 %v2404_v11  ;;  %7801 = vpow2.f32 %v2354_v29  ;;  %v2392_v23 = vsel %vm2271_vm9, %v8949_v27, 0.0 }
 0x3ae   : > { %2411 = vadd.xlane.f32.xlu2 %v2410_v2  ;;  %7803 = vpow2.f32 %v2358_v53 }
 0x3af   : > { %v2304_v20 = vpop.xlane.xlu2 %2303 }
 0x3b0   : > { %v2330_v33 = vsub.f32 %v8886_v38, %v2304_v20 }
 0x3b2   : > { %v8952_v7 = vpop.eup %7799  ;;  %v2356_v50 = vmul.f32 1.442695, %v2330_v33 }
 0x3b3   : > { %v2413_v47 = vsel %vm2271_vm9, %v8952_v7, 0.0  ;;  %v8958_v18 = vpop.eup %7801 }
 0x3b4   : > { %7805 = vpow2.f32 %v2356_v50  ;;  %2393 = vadd.xlane.f32.xlu0 %v2392_v23  ;;  %v2395_v26 = vsel %vm2271_vm9, %v8958_v18, 0.0  ;;  %v8962_v38 = vpop.eup %7803 }
 0x3b5   : > { %2414 = vadd.xlane.f32.xlu1 %v2413_v47  ;;  %v2401_v36 = vsel %vm2271_vm9, %v8962_v38, 0.0 }
 0x3b6   : > { %2396 = vadd.xlane.f32.xlu2 %v2395_v26 }
 0x3ba   : > { %v8964_v52 = vpop.eup %7805 }
 0x3bb   : > { %v2398_v58 = vsel %vm2271_vm9, %v8964_v52, 0.0 }
 0x3bc   : > { %2402 = vadd.xlane.f32.xlu0 %v2401_v36 }
 0x3bd   : > { %2399 = vadd.xlane.f32.xlu1 %v2398_v58 }
 0x407   : > { %v2376_v51 = vpop.xlane.xlu0 %2375 }
 0x408   : > { %v2370_v14 = vpop.xlane.xlu2 %2369 }
 0x40f   : > { %v2382_v41 = vpop.xlane.xlu0 %2381 }
 0x410   : > { %v2388_v48 = vpop.xlane.xlu1 %2387  ;;  %7807 = vrcp.f32 %v2382_v41 }
 0x411   : > { %7809 = vrcp.f32 %v2388_v48  ;;  %v2385_v4 = vpop.xlane.xlu2 %2384 }
 0x412   : > { %7811 = vrcp.f32 %v2385_v4 }
 0x413   : > { %7813 = vrcp.f32 %v2370_v14 }
 0x414   : > { %7815 = vrcp.f32 %v2376_v51 }
 0x416   : > { %v7808_v56 = vpop.eup %7807 }
 0x417   : > { %v7810_v13 = vpop.eup %7809  ;;  %v2436_v44 = vmul.f32 %v7808_v56, %v8904_v28  ;;  %v2391_v62 = vpop.xlane.xlu0 %2390 }
 0x418   : > { %v7812_v40 = vpop.eup %7811  ;;  %v2373_v49 = vpop.xlane.xlu1 %2372  ;;  %7817 = vrcp.f32 %v2391_v62  ;;  %v2438_v39 = vmul.f32 %v7810_v13, %v8909_v37 }
 0x419   : > { %v7814_v60 = vpop.eup %7813  ;;  %v2437_v12 = vmul.f32 %v7812_v40, %v8913_v22  ;;  %v2452_v46 = vpack.c.bf16 %v2436_v44, %v2436_v44  ;;  %7819 = vrcp.f32 %v2373_v49  ;;  %v2379_v17 = vpop.xlane.xlu2 %2378 }
 0x41a   : > { %v7816_v5 = vpop.eup %7815  ;;  %7821 = vrcp.f32 %v2379_v17  ;;  %v2432_v35 = vmul.f32 %v7814_v60, %v8897_v31  ;;  %v2454_v30 = vpack.c.bf16 %v2438_v39, %v2438_v39 }
 0x41b   : > { %v2453_v59 = vpack.c.bf16 %v2437_v12, %v2437_v12  ;;  %v2516_v57 = vunpack.c.l.b16 %v2452_v46  ;;  %v2434_v28 = vmul.f32 %v7816_v5, %v8895_v34 }
 0x41c   : > { %v2448_v6 = vpack.c.bf16 %v2432_v35, %v2432_v35  ;;  %v2544_v53 = vunpack.c.l.b16 %v2454_v30 }
 0x41d   : > { %v2517_v63 = vunpack.c.l.b16 %v2453_v59  ;;  %v2450_v37 = vpack.c.bf16 %v2434_v28, %v2434_v28 }
 0x41e   : > { %v7818_v9 = vpop.eup %7817 }
 0x41f   : > { %v7820_v54 = vpop.eup %7819  ;;  %v2518_v0 = vpack.c.b16 %v2517_v63, %v2516_v57  ;;  %v2439_v22 = vmul.f32 %v7818_v9, %v8923_v55  ;;  %v2409_v45 = vpop.xlane.xlu0 %2408  ;;  %v2466_v55 = vunpack.c.l.b16 %v2448_v6  ;;  %v2494_v23 = vunpack.c.l.b16 %v2450_v37 }
 0x420   : > { %v7822_v24 = vpop.eup %7821  ;;  %v2433_v29 = vmul.f32 %v7820_v54, %v8921_v15  ;;  %v2406_v61 = vpop.xlane.xlu1 %2405  ;;  %7823 = vrcp.f32 %v2409_v45 }
 0x421   : > { %v2435_v11 = vmul.f32 %v7822_v24, %v8928_v10  ;;  %v2455_v31 = vpack.c.bf16 %v2439_v22, %v2439_v22  ;;  %7825 = vrcp.f32 %v2406_v61  ;;  %v2412_v34 = vpop.xlane.xlu2 %2411  ;;  %6611 = vmatmul.msk.bf16.vlgmr.msra.gmra.mxu2 %vm2271_vm9, %v2518_v0 }
 0x422   : > { %v2449_v2 = vpack.c.bf16 %v2433_v29, %v2433_v29  ;;  %7827 = vrcp.f32 %v2412_v34  ;;  %v7569_v34 = vld [vmem:[%s10427_s8 + $0x30] sm:$0xff] }
 0x423   : > { %v2451_v20 = vpack.c.bf16 %v2435_v11, %v2435_v11  ;;  %v2545_v33 = vunpack.c.l.b16 %v2455_v31  ;;  %v7565_v11 = vld [vmem:[%s10427_s8 + $0x10] sm:$0xff]  ;;  %v7566_v31 = vld [vmem:[%s10427_s8 + $0x18] sm:$0xff] }
 0x424   : > { %v2467_v50 = vunpack.c.l.b16 %v2449_v2  ;;  %2757 = vmatpush.bf16.msra.mxu2 %v7565_v11  ;;  %v7567_v2 = vld [vmem:[%s10427_s8 + $0x20] sm:$0xff] }
 0x425   : > { %v2495_v47 = vunpack.c.l.b16 %v2451_v20  ;;  %v2546_v15 = vpack.c.b16 %v2545_v33, %v2544_v53 }
 0x426   : > { %v7824_v26 = vpop.eup %7823  ;;  %v2468_v36 = vpack.c.b16 %v2467_v50, %v2466_v55  ;;  %v7570_v55 = vld [vmem:[%s10427_s8 + $0x38] sm:$0xff]  ;;  %v7568_v50 = vld [vmem:[%s10427_s8 + $0x28] sm:$0xff] }
 0x427   : > { %v7826_v58 = vpop.eup %7825  ;;  %v2496_v51 = vpack.c.b16 %v2495_v47, %v2494_v23  ;;  %v2445_v10 = vmul.f32 %v7824_v26, %v8934_v19  ;;  %6612 = vmatmul.msk.bf16.vlgmr.msra.gmra.mxu3 %vm2271_vm9, %v2546_v15  ;;  %v2394_v14 = vpop.xlane.xlu0 %2393 }
 0x428   : > { %v2444_v41 = vmul.f32 %v7826_v58, %v8938_v8  ;;  %v2415_v48 = vpop.xlane.xlu1 %2414  ;;  %6609 = vmatmul.msk.bf16.vlgmr.msra.gmra.mxu0 %vm2271_vm9, %v2468_v36  ;;  %7829 = vrcp.f32 %v2394_v14  ;;  %v7828_v4 = vpop.eup %7827  ;;  %2785 = vmatpush.bf16.msra.mxu3 %v7566_v31 }
 0x429   : > { %v2461_v56 = vpack.c.bf16 %v2445_v10, %v2445_v10  ;;  %7831 = vrcp.f32 %v2415_v48  ;;  %v2397_v13 = vpop.xlane.xlu2 %2396  ;;  %6610 = vmatmul.msk.bf16.vlgmr.msra.gmra.mxu1 %vm2271_vm9, %v2496_v51  ;;  %v2446_v19 = vmul.f32 %v7828_v4, %v8945_v43 }
 0x42a   : > { %v2460_v44 = vpack.c.bf16 %v2444_v41, %v2444_v41  ;;  %7833 = vrcp.f32 %v2397_v13 }
 0x42b   : > { %v2617_v62 = vunpack.c.l.b16 %v2461_v56  ;;  %v2462_v5 = vpack.c.bf16 %v2446_v19, %v2446_v19 }
 0x42c   : > { %v2616_v40 = vunpack.c.l.b16 %v2460_v44 }
 0x42d   : > { %v2644_v9 = vunpack.c.l.b16 %v2462_v5 }
 0x42e   : > { %v7830_v49 = vpop.eup %7829  ;;  %v2618_v60 = vpack.c.b16 %v2617_v62, %v2616_v40 }
 0x42f   : > { %v7832_v12 = vpop.eup %7831  ;;  %v2440_v8 = vmul.f32 %v7830_v49, %v8949_v27  ;;  %v2403_v46 = vpop.xlane.xlu0 %2402 }
 0x430   : > { %v7834_v17 = vpop.eup %7833  ;;  %v2447_v39 = vmul.f32 %v7832_v12, %v8952_v7  ;;  %v2400_v59 = vpop.xlane.xlu1 %2399  ;;  %7835 = vrcp.f32 %v2403_v46 }
 0x431   : > { %v2441_v57 = vmul.f32 %v7834_v17, %v8958_v18  ;;  %v2456_v35 = vpack.c.bf16 %v2440_v8, %v2440_v8  ;;  %7837 = vrcp.f32 %v2400_v59  ;;  %6615 = vmatmul.msk.bf16.vlgmr.msrb.gmra.mxu2 %vm2271_vm9, %v2618_v60 }
 0x432   : > { %v2463_v28 = vpack.c.bf16 %v2447_v39, %v2447_v39  ;;  %2869 = vmatpush.bf16.msrb.mxu2 %v7569_v34 }
 0x433   : > { %v2457_v43 = vpack.c.bf16 %v2441_v57, %v2441_v57  ;;  %v2566_v63 = vunpack.c.l.b16 %v2456_v35 }
 0x434   : > { %v2645_v54 = vunpack.c.l.b16 %v2463_v28 }
 0x435   : > { %v2567_v30 = vunpack.c.l.b16 %v2457_v43 }
 0x436   : > { %v7836_v27 = vpop.eup %7835  ;;  %v2646_v0 = vpack.c.b16 %v2645_v54, %v2644_v9 }
 0x437   : > { %v7838_v22 = vpop.eup %7837  ;;  %v2568_v45 = vpack.c.b16 %v2567_v30, %v2566_v63  ;;  %v2443_v7 = vmul.f32 %v7836_v27, %v8962_v38  ;;  %v7563_v38 = vld [vmem:[%s10427_s8] sm:$0xff] }
 0x438   : > { %v2442_v24 = vmul.f32 %v7838_v22, %v8964_v52  ;;  %6616 = vmatmul.msk.bf16.vlgmr.msrb.gmra.mxu3 %vm2271_vm9, %v2646_v0  ;;  %v7564_v52 = vld [vmem:[%s10427_s8 + $0x8] sm:$0xff]  ;;  %2701 = vmatpush.bf16.msra.mxu0 %v7563_v38 }
 0x439   : > { %v2459_v18 = vpack.c.bf16 %v2443_v7, %v2443_v7  ;;  %6613 = vmatmul.msk.bf16.vlgmr.msrb.gmra.mxu0 %vm2271_vm9, %v2568_v45  ;;  %2729 = vmatpush.bf16.msra.mxu1 %v7564_v52 }
 0x43a   : > { %v2458_v6 = vpack.c.bf16 %v2442_v24, %v2442_v24  ;;  %2897 = vmatpush.bf16.msrb.mxu3 %v7570_v55 }
 0x43b   : > { %v2595_v29 = vunpack.c.l.b16 %v2459_v18 }
 0x43c   : > { %v2594_v61 = vunpack.c.l.b16 %v2458_v6  ;;  %2813 = vmatpush.bf16.msrb.mxu0 %v7567_v2 }
 0x43e   : > { %v2596_v37 = vpack.c.b16 %v2595_v29, %v2594_v61 }
 0x440   : > { %6614 = vmatmul.msk.bf16.vlgmr.msrb.gmra.mxu1 %vm2271_vm9, %v2596_v37 }
 0x441   : > { %2841 = vmatpush.bf16.msrb.mxu1 %v7568_v50 }
 0x4a4   : > { %v2537_v53 = vpop.f32.mrf.mxu2 }
 0x4a5   : > { %v2487_v20 = vpop.f32.mrf.mxu0  ;;  %v2668_v47 = vpack.c.bf16 %v2537_v53, %v2537_v53 }
 0x4a6   : > { %v2509_v33 = vpop.f32.mrf.mxu1  ;;  %v2664_v15 = vpack.c.bf16 %v2487_v20, %v2487_v20 }
 0x4a7   : > { %v2666_v36 = vpack.c.bf16 %v2509_v33, %v2509_v33  ;;  %v2738_v41 = vunpack.c.l.b16 %v2668_v47 }
 0x4a8   : > { %v2682_v56 = vunpack.c.l.b16 %v2664_v15 }
 0x4a9   : > { %v2710_v44 = vunpack.c.l.b16 %v2666_v36 }
 0x4aa   : > { %v2559_v23 = vpop.f32.mrf.mxu3 }
 0x4ab   : > { %v2670_v40 = vpack.c.bf16 %v2559_v23, %v2559_v23 }
 0x4ac   : > { %v2539_v26 = vpop.f32.mrf.mxu2 }
 0x4ad   : > { %v2669_v58 = vpack.c.bf16 %v2539_v26, %v2539_v26  ;;  %v2489_v51 = vpop.f32.mrf.mxu0  ;;  %v2766_v17 = vunpack.c.l.b16 %v2670_v40 }
 0x4ae   : > { %v2665_v10 = vpack.c.bf16 %v2489_v51, %v2489_v51  ;;  %v2511_v14 = vpop.f32.mrf.mxu1 }
 0x4af   : > { %v2739_v48 = vunpack.c.l.b16 %v2669_v58  ;;  %v2667_v4 = vpack.c.bf16 %v2511_v14, %v2511_v14 }
 0x4b0   : > { %v2683_v13 = vunpack.c.l.b16 %v2665_v10 }
 0x4b1   : > { %v2740_v62 = vpack.c.b16 %v2739_v48, %v2738_v41  ;;  %v2711_v19 = vunpack.c.l.b16 %v2667_v4 }
 0x4b2   : > { %v2684_v49 = vpack.c.b16 %v2683_v13, %v2682_v56  ;;  %v2561_v60 = vpop.f32.mrf.mxu3 }
 0x4b3   : > { %v2712_v12 = vpack.c.b16 %v2711_v19, %v2710_v44  ;;  %6631 = vmatmul.msk.bf16.vlgmr.msra.gmra.mxu2 %vm2271_vm9, %v2740_v62  ;;  %v2671_v8 = vpack.c.bf16 %v2561_v60, %v2561_v60 }
 0x4b4   : > { %v2637_v46 = vpop.f32.mrf.mxu2  ;;  %6621 = vmatmul.msk.bf16.vlgmr.msra.gmra.mxu0 %vm2271_vm9, %v2684_v49 }
 0x4b5   : > { %v2767_v5 = vunpack.c.l.b16 %v2671_v8  ;;  %6626 = vmatmul.msk.bf16.vlgmr.msra.gmra.mxu1 %vm2271_vm9, %v2712_v12  ;;  %v2676_v57 = vpack.c.bf16 %v2637_v46, %v2637_v46 }
 0x4b6   : > { %v2587_v39 = vpop.f32.mrf.mxu0 }
 0x4b7   : > { %v2768_v59 = vpack.c.b16 %v2767_v5, %v2766_v17  ;;  %v2672_v43 = vpack.c.bf16 %v2587_v39, %v2587_v39  ;;  %v2850_v30 = vunpack.c.l.b16 %v2676_v57 }
 0x4b9   : > { %6636 = vmatmul.msk.bf16.vlgmr.msra.gmra.mxu3 %vm2271_vm9, %v2768_v59  ;;  %v2794_v22 = vunpack.c.l.b16 %v2672_v43 }
 0x4bb   : > { %v2659_v35 = vpop.f32.mrf.mxu3 }
 0x4bc   : > { %v2639_v28 = vpop.f32.mrf.mxu2  ;;  %v2678_v24 = vpack.c.bf16 %v2659_v35, %v2659_v35 }
 0x4bd   : > { %v2677_v63 = vpack.c.bf16 %v2639_v28, %v2639_v28  ;;  %v2609_v9 = vpop.f32.mrf.mxu1 }
 0x4be   : > { %v2589_v54 = vpop.f32.mrf.mxu0  ;;  %v2674_v29 = vpack.c.bf16 %v2609_v9, %v2609_v9  ;;  %v2878_v11 = vunpack.c.l.b16 %v2678_v24 }
 0x4bf   : > { %v2851_v27 = vunpack.c.l.b16 %v2677_v63  ;;  %v2673_v0 = vpack.c.bf16 %v2589_v54, %v2589_v54 }
 0x4c0   : > { %v2822_v31 = vunpack.c.l.b16 %v2674_v29 }
 0x4c1   : > { %v2852_v45 = vpack.c.b16 %v2851_v27, %v2850_v30  ;;  %v2795_v7 = vunpack.c.l.b16 %v2673_v0 }
 0x4c3   : > { %v2796_v18 = vpack.c.b16 %v2795_v7, %v2794_v22  ;;  %6651 = vmatmul.msk.bf16.vlgmr.msrb.gmra.mxu2 %vm2271_vm9, %v2852_v45  ;;  %v2661_v6 = vpop.f32.mrf.mxu3 }
 0x4c4   : > { %v2679_v61 = vpack.c.bf16 %v2661_v6, %v2661_v6 }
 0x4c5   : > { %6641 = vmatmul.msk.bf16.vlgmr.msrb.gmra.mxu0 %vm2271_vm9, %v2796_v18  ;;  %v2611_v37 = vpop.f32.mrf.mxu1 }
 0x4c6   : > { %v2879_v38 = vunpack.c.l.b16 %v2679_v61  ;;  %v2675_v52 = vpack.c.bf16 %v2611_v37, %v2611_v37 }
 0x4c8   : > { %v2880_v34 = vpack.c.b16 %v2879_v38, %v2878_v11  ;;  %v2823_v2 = vunpack.c.l.b16 %v2675_v52  ;;  %v6683_v38 = vld [vmem:[%s10429_s10 + $0x30] sm:$0xf]  ;;  %v7578_v52 = vld [vmem:[%s10429_s10 + $0x34] sm:$0xf0] }
 0x4ca   : > { %v2824_v53 = vpack.c.b16 %v2823_v2, %v2822_v31  ;;  %6656 = vmatmul.msk.bf16.vlgmr.msrb.gmra.mxu3 %vm2271_vm9, %v2880_v34  ;;  %v7577_v31 = vld [vmem:[%s10429_s10 + $0x34] sm:$0xf]  ;;  %v6685_v34 = vld [vmem:[%s10429_s10 + $0x38] sm:$0xf0]  ;;  %v6717_v2 = vld [vmem:[%s10430_s11 + $0x30] sm:$0xf] }
 0x4cc   : > { %6646 = vmatmul.msk.bf16.vlgmr.msrb.gmra.mxu1 %vm2271_vm9, %v2824_v53  ;;  %v7586_v53 = vld [vmem:[%s10430_s11 + $0x34] sm:$0xf0] }
 0x531   : > { %v2703_v20 = vpop.f32.mrf.mxu0 }
 0x532   : > { %v2731_v55 = vpop.f32.mrf.mxu1  ;;  %v2904_v15 = vsel %vm727_vm0, %v2703_v20, 0.0  ;;  %v6688_v20 = vor.u32 %v7577_v31, %v6685_v34 }
 0x533   : > { %v2905_v26 = vsel %vm727_vm0, %v2731_v55, 0.0  ;;  %v7585_v55 = vld [vmem:[%s10430_s11 + $0x34] sm:$0xf] }
 0x534   : > { %v2906_v10 = vadd.f32 %v2905_v26, %v2904_v15  ;;  %3037 = vmatpush.bf16.msra.mxu1 %v6688_v20  ;;  %v7576_v15 = vld [vmem:[%s10429_s10 + $0x24] sm:$0xf0]  ;;  %v7575_v26 = vld [vmem:[%s10429_s10 + $0x24] sm:$0xf] }
 0x536   : > { %v2759_v33 = vpop.f32.mrf.mxu2 }
 0x537   : > { %v2907_v58 = vsel %vm727_vm0, %v2759_v33, 0.0  ;;  %v6718_v33 = vor.u32 %v7586_v53, %v6717_v2 }
 0x538   : > { %v2908_v48 = vadd.f32 %v2907_v58, %v2906_v10  ;;  %v6677_v58 = vld [vmem:[%s10429_s10 + $0x28] sm:$0xf0]  ;;  %v7584_v10 = vld [vmem:[%s10430_s11 + $0x24] sm:$0xf0] }
 0x539   : > { %v2705_v50 = vpop.f32.mrf.mxu0  ;;  %3091 = vmatpush.bf16.msra.mxu2 %v6718_v33 }
 0x53a   : > { %v2733_v36 = vpop.f32.mrf.mxu1  ;;  %v2919_v44 = vsel %vm727_vm0, %v2705_v50, 0.0  ;;  %v6719_v50 = vld [vmem:[%s10430_s11 + $0x38] sm:$0xf0] }
 0x53b   : > { %v2920_v62 = vsel %vm727_vm0, %v2733_v36, 0.0 }
 0x53c   : > { %v2787_v23 = vpop.f32.mrf.mxu3  ;;  %v2921_v12 = vadd.f32 %v2920_v62, %v2919_v44  ;;  %v7574_v44 = vld [vmem:[%s10429_s10 + $0x14] sm:$0xf0]  ;;  %v7573_v62 = vld [vmem:[%s10429_s10 + $0x14] sm:$0xf] }
 0x53d   : > { %v2909_v14 = vsel %vm727_vm0, %v2787_v23, 0.0  ;;  %v6722_v23 = vor.u32 %v7585_v55, %v6719_v50  ;;  %v7765_v50 = vld [vmem:[%s10428_s9] ss:$0 sm:$0xff] }
 0x53e   : > { %v2761_v47 = vpop.f32.mrf.mxu2  ;;  %v2910_v56 = vadd.f32 %v2909_v14, %v2908_v48  ;;  %v6680_v14 = vor.u32 %v7575_v26, %v6677_v58  ;;  %v7583_v48 = vld [vmem:[%s10430_s11 + $0x24] sm:$0xf] }
 0x53f   : > { %v2922_v49 = vsel %vm727_vm0, %v2761_v47, 0.0  ;;  %v6675_v47 = vld [vmem:[%s10429_s10 + $0x20] sm:$0xf]  ;;  %3105 = vmatpush.bf16.msra.mxu3 %v6722_v23 }
 0x540   : > { %v2923_v39 = vadd.f32 %v2922_v49, %v2921_v12  ;;  %v6676_v36 = vor.u32 %v7576_v15, %v6675_v47  ;;  %3038 = vmatpush.bf16.msra.mxu1 %v6680_v14  ;;  %v6701_v49 = vld [vmem:[%s10430_s11 + $0x10] sm:$0xf] }
 0x541   : > { %v7593_v14 = vld [vmem:[%s10431_s12 + $0x30] sm:$0xff] }
 0x542   : > { %v2815_v51 = vpop.f32.mrf.mxu0 }
 0x543   : > { %v2911_v4 = vsel %vm727_vm0, %v2815_v51, 0.0  ;;  %v6709_v51 = vld [vmem:[%s10430_s11 + $0x20] sm:$0xf] }
 0x544   : > { %v2789_v41 = vpop.f32.mrf.mxu3  ;;  %v2912_v40 = vadd.f32 %v2911_v4, %v2910_v56  ;;  %v6711_v4 = vld [vmem:[%s10430_s11 + $0x28] sm:$0xf0] }
 0x545   : > { %v2924_v17 = vsel %vm727_vm0, %v2789_v41, 0.0  ;;  %v6710_v41 = vor.u32 %v7584_v10, %v6709_v51  ;;  %v6714_v56 = vor.u32 %v7583_v48, %v6711_v4  ;;  %v7594_v51 = vld [vmem:[%s10431_s12 + $0x38] sm:$0xff]  ;;  %v7592_v48 = vld [vmem:[%s10431_s12 + $0x28] sm:$0xff] }
 0x546   : > { %v2871_v13 = vpop.f32.mrf.mxu2  ;;  %v2925_v43 = vadd.f32 %v2924_v17, %v2923_v39  ;;  %v6703_v17 = vld [vmem:[%s10430_s11 + $0x18] sm:$0xf0]  ;;  %v7600_v4 = vld [vmem:[%s10431_s12 + $0x68] sm:$0xff] }
 0x547   : > { %v2915_v5 = vsel %vm727_vm0, %v2871_v13, 0.0  ;;  %3092 = vmatpush.bf16.msra.mxu2 %v6710_v41  ;;  %v6667_v13 = vld [vmem:[%s10429_s10 + $0x10] sm:$0xf]  ;;  %3106 = vmatpush.bf16.msra.mxu3 %v6714_v56  ;;  %v7602_v10 = vld [vmem:[%s10431_s12 + $0x78] sm:$0xff]  ;;  %v7591_v56 = vld [vmem:[%s10431_s12 + $0x20] sm:$0xff] }
 0x548   : > { %v7601_v41 = vld [vmem:[%s10431_s12 + $0x70] sm:$0xff] }
 0x549   : > { %v2843_v19 = vpop.f32.mrf.mxu1 }
 0x54a   : > { %v2913_v60 = vsel %vm727_vm0, %v2843_v19, 0.0  ;;  %v2817_v8 = vpop.f32.mrf.mxu0  ;;  %v6669_v19 = vld [vmem:[%s10429_s10 + $0x18] sm:$0xf0] }
 0x54b   : > { %v2914_v46 = vadd.f32 %v2913_v60, %v2912_v40  ;;  %v2926_v35 = vsel %vm727_vm0, %v2817_v8, 0.0  ;;  %v6668_v40 = vor.u32 %v7574_v44, %v6667_v13  ;;  %v7582_v60 = vld [vmem:[%s10430_s11 + $0x14] sm:$0xf0]  ;;  %v6672_v12 = vor.u32 %v7573_v62, %v6669_v19  ;;  %v7599_v13 = vld [vmem:[%s10431_s12 + $0x60] sm:$0xff] }
 0x54c   : > { %v2927_v9 = vadd.f32 %v2926_v35, %v2925_v43  ;;  %v6702_v8 = vor.u32 %v7582_v60, %v6701_v49  ;;  %v7572_v35 = vld [vmem:[%s10429_s10 + $0x4] sm:$0xf0]  ;;  %v7590_v44 = vld [vmem:[%s10431_s12 + $0x18] sm:$0xff] }
 0x54d   : > { %v2899_v59 = vpop.f32.mrf.mxu3  ;;  %v2916_v57 = vadd.f32 %v2915_v5, %v2914_v46  ;;  %v7581_v46 = vld [vmem:[%s10430_s11 + $0x14] sm:$0xf]  ;;  %3039 = vmatpush.bf16.msra.mxu1 %v6672_v12  ;;  %v7598_v62 = vld [vmem:[%s10431_s12 + $0x58] sm:$0xff] }
 0x54e   : > { %v2917_v28 = vsel %vm727_vm0, %v2899_v59, 0.0  ;;  %v2873_v54 = vpop.f32.mrf.mxu2  ;;  %v6706_v39 = vor.u32 %v7581_v46, %v6703_v17  ;;  %3093 = vmatpush.bf16.msra.mxu2 %v6702_v8  ;;  %v7589_v12 = vld [vmem:[%s10431_s12 + $0x10] sm:$0xff]  ;;  %v7588_v46 = vld [vmem:[%s10431_s12 + $0x8] sm:$0xff] }
 0x54f   : > { %v2918_v63 = vadd.f32 %v2917_v28, %v2916_v57  ;;  %v2930_v7 = vsel %vm727_vm0, %v2873_v54, 0.0  ;;  %v6659_v57 = vld [vmem:[%s10429_s10] sm:$0xf]  ;;  %v7571_v28 = vld [vmem:[%s10429_s10 + $0x4] sm:$0xf]  ;;  %v7597_v8 = vld [vmem:[%s10431_s12 + $0x50] sm:$0xff] }
 0x550   : > { %3107 = vmatpush.bf16.msra.mxu3 %v6706_v39  ;;  %v6660_v43 = vor.u32 %v7572_v35, %v6659_v57  ;;  %v7580_v54 = vld [vmem:[%s10430_s11 + $0x4] sm:$0xf0] }
 0x551   : > { %v9040_v30 = vadd.f32 %v8166_v1, %v2918_v63  ;;  %v2845_v27 = vpop.f32.mrf.mxu1  ;;  %v6661_v63 = vld [vmem:[%s10429_s10 + $0x8] sm:$0xf0] }
 0x552   : > { %v2928_v0 = vsel %vm727_vm0, %v2845_v27, 0.0  ;;  %v7596_v17 = vld [vmem:[%s10431_s12 + $0x48] sm:$0xff] }
 0x553   : > { %v2929_v22 = vadd.f32 %v2928_v0, %v2927_v9  ;;  %v2936_v45 = vmul.f32 %v9040_v30, %v9040_v30  ;;  %v6693_v9 = vld [vmem:[%s10430_s11] sm:$0xf]  ;;  %v6664_v0 = vor.u32 %v7571_v28, %v6661_v63 }
 0x554   : > { %v7587_v63 = vld [vmem:[%s10431_s12] sm:$0xff] }
 0x555   : > { %v2901_v24 = vpop.f32.mrf.mxu3  ;;  %v2931_v18 = vadd.f32 %v2930_v7, %v2929_v22  ;;  %v2938_v6 = vsel %vm727_vm0, %v2936_v45, 0.0  ;;  %v6694_v22 = vor.u32 %v7580_v54, %v6693_v9  ;;  %v7579_v45 = vld [vmem:[%s10430_s11 + $0x4] sm:$0xf]  ;;  %v6695_v7 = vld [vmem:[%s10430_s11 + $0x8] sm:$0xf0]  ;;  %3040 = vmatpush.bf16.msra.mxu1 %v6664_v0 }
 0x556   : > { %v2932_v29 = vsel %vm727_vm0, %v2901_v24, 0.0  ;;  %2939 = vadd.xlane.f32.xlu2 %v2938_v6  ;;  %v6698_v24 = vor.u32 %v7579_v45, %v6695_v7  ;;  %v7595_v9 = vld [vmem:[%s10431_s12 + $0x40] sm:$0xff] }
 0x557   : > { %v2933_v61 = vadd.f32 %v2932_v29, %v2931_v18  ;;  %3094 = vmatpush.bf16.msra.mxu2 %v6694_v22 }
 0x558   : > { %3108 = vmatpush.bf16.msra.mxu3 %v6698_v24 }
 0x559   : > { %v9049_v1 = vadd.f32 %v8170_v3, %v2933_v61  ;;  %v6684_v3 = vor.u32 %v7578_v52, %v6683_v38  ;;  %3311 = vmatpush.bf16.msrb.mxu1 %v7602_v10 }
 0x55b   : > { %v2937_v37 = vmul.f32 %v9049_v1, %v9049_v1  ;;  %3023 = vmatpush.bf16.msra.mxu0 %v6684_v3 }
 0x55d   : > { %v2941_v11 = vsel %vm727_vm0, %v2937_v37, 0.0  ;;  %3312 = vmatpush.bf16.msrb.mxu1 %v7601_v41 }
 0x55e   : > { %2942 = vadd.xlane.f32.xlu1 %v2941_v11 }
 0x55f   : > { %3024 = vmatpush.bf16.msra.mxu0 %v6676_v36 }
 0x561   : > { %3313 = vmatpush.bf16.msrb.mxu1 %v7600_v4 }
 0x563   : > { %3025 = vmatpush.bf16.msra.mxu0 %v6668_v40 }
 0x565   : > { %3314 = vmatpush.bf16.msrb.mxu1 %v7599_v13 }
 0x567   : > { %3026 = vmatpush.bf16.msra.mxu0 %v6660_v43 }
 0x569   : > { %3315 = vmatpush.bf16.msrb.mxu1 %v7598_v62 }
 0x56b   : > { %3297 = vmatpush.bf16.msrb.mxu0 %v7594_v51 }
 0x56d   : > { %3316 = vmatpush.bf16.msrb.mxu1 %v7597_v8 }
 0x56f   : > { %3298 = vmatpush.bf16.msrb.mxu0 %v7593_v14 }
 0x571   : > { %3317 = vmatpush.bf16.msrb.mxu1 %v7596_v17 }
 0x573   : > { %3299 = vmatpush.bf16.msrb.mxu0 %v7592_v48 }
 0x575   : > { %3318 = vmatpush.bf16.msrb.mxu1 %v7595_v9 }
 0x577   : > { %3300 = vmatpush.bf16.msrb.mxu0 %v7591_v56 }
 0x57b   : > { %3301 = vmatpush.bf16.msrb.mxu0 %v7590_v44 }
 0x57f   : > { %3302 = vmatpush.bf16.msrb.mxu0 %v7589_v12 }
 0x583   : > { %3303 = vmatpush.bf16.msrb.mxu0 %v7588_v46 }
 0x587   : > { %3304 = vmatpush.bf16.msrb.mxu0 %v7587_v63 }
 0x5c9   : > { %v2940_v5 = vpop.xlane.xlu2 %2939 }
 0x5ca   : > { %v2944_v59 = vmul.f32 %v2940_v5, %v8200_v21 }
 0x5cc   : > { %v2946_v27 = vadd.f32 1.1920929e-07, %v2944_v59 }
 0x5ce   : > { %7839 = vrsqrt.f32 %v2946_v27  ;;  %vm2954_vm11 = vweird.f32 %v2946_v27 }
 0x5d1   : > { %v2943_v18 = vpop.xlane.xlu1 %2942 }
 0x5d2   : > { %v2945_v6 = vmul.f32 %v2943_v18, %v8200_v21 }
 0x5d4   : > { %v7840_v29 = vpop.eup %7839  ;;  %v2947_v61 = vadd.f32 1.1920929e-07, %v2945_v6 }
 0x5d5   : > { %v2949_v37 = vmul.f32 %v7840_v29, %v2946_v27  ;;  %vm2955_vm10 = vweird.f32 %v7840_v29 }
 0x5d6   : > { %7841 = vrsqrt.f32 %v2947_v61  ;;  %vm2956_vm12 = vmor %vm2954_vm11, %vm2955_vm10  ;;  %vm2964_vm14 = vweird.f32 %v2947_v61 }
 0x5d7   : > { %v2950_v11 = vmul.f32 %v7840_v29, %v2949_v37 }
 0x5d9   : > { %v2951_v38 = vmul.f32 0.5, %v2950_v11 }
 0x5db   : > { %v2952_v52 = vsub.f32 1.5, %v2951_v38 }
 0x5dc   : > { %v7842_v31 = vpop.eup %7841 }
 0x5dd   : > { %v2959_v3 = vmul.f32 %v7842_v31, %v2947_v61  ;;  %v2953_v34 = vmul.f32 %v7840_v29, %v2952_v52  ;;  %vm2965_vm13 = vweird.f32 %v7842_v31 }
 0x5de   : > { %vm2966_vm15 = vmor %vm2964_vm14, %vm2965_vm13 }
 0x5df   : > { %v2960_v2 = vmul.f32 %v7842_v31, %v2959_v3  ;;  %v2957_v20 = vsel %vm2956_vm12, %v7840_v29, %v2953_v34 }
 0x5e0   : > { %v2968_v23 = vmul.f32 %v2957_v20, %v9040_v30 }
 0x5e1   : > { %v2961_v53 = vmul.f32 0.5, %v2960_v2  ;;  %v7605_v2 = vld [vmem:[%s10424_s5 + $0x110] sm:$0xff] }
 0x5e2   : > { %v2973_v26 = vmul.f32 %v7765_v50, %v2968_v23 }
 0x5e3   : > { %v2962_v33 = vsub.f32 1.5, %v2961_v53 }
 0x5e5   : > { %v2963_v55 = vmul.f32 %v7842_v31, %v2962_v33 }
 0x5e7   : > { %v2967_v47 = vsel %vm2966_vm15, %v7842_v31, %v2963_v55 }
 0x5e8   : > { %v2969_v15 = vmul.f32 %v2967_v47, %v9049_v1 }
 0x5ea   : > { %v2974_v36 = vmul.f32 %v7765_v50, %v2969_v15 }
 0x5ec   : > { %v2975_v58 = vpack.c.bf16 %v2974_v36, %v2973_v26 }
 0x5ee   : > { %6689 = vmatmul.msk.bf16.vlgmr.msra.gmra.mxu0 %vm727_vm0, %v2975_v58  ;;  %6690 = vmatmul.msk.bf16.vlgmr.msra.gmra.mxu1 %vm727_vm0, %v2975_v58 }
 0x5ef   : > { %6723 = vmatmul.msk.bf16.vlgmr.msra.gmra.mxu2 %vm727_vm0, %v2975_v58  ;;  %6724 = vmatmul.msk.bf16.vlgmr.msra.gmra.mxu3 %vm727_vm0, %v2975_v58  ;;  %v7603_v58 = vld [vmem:[%s10424_s5 + $0x100] sm:$0xff] }
 0x66b   : > { %v9191_v40 = vpop.f32.mrf.mxu0  ;;  %v9193_v19 = vpop.f32.mrf.mxu1 }
 0x66c   : > { %v6725_v49 = vmul.f32 -1.442695, %v9191_v40  ;;  %v6726_v60 = vmul.f32 -1.442695, %v9193_v19 }
 0x66e   : > { %7843 = vpow2.f32 %v6725_v49 }
 0x66f   : > { %7845 = vpow2.f32 %v6726_v60 }
 0x672   : > { %v3096_v33 = vpop.f32.mrf.mxu2  ;;  %v3110_v51 = vpop.f32.mrf.mxu3 }
 0x673   : > { %v9209_v5 = vpop.f32.mrf.mxu0  ;;  %v9211_v39 = vpop.f32.mrf.mxu1 }
 0x674   : > { %v7844_v59 = vpop.eup %7843  ;;  %v6727_v57 = vmul.f32 -1.442695, %v9209_v5  ;;  %v6728_v43 = vmul.f32 -1.442695, %v9211_v39 }
 0x675   : > { %v7846_v35 = vpop.eup %7845  ;;  %v3127_v28 = vadd.f32 1.0, %v7844_v59 }
 0x676   : > { %v3128_v54 = vadd.f32 1.0, %v7846_v35  ;;  %7847 = vpow2.f32 %v6727_v57 }
 0x677   : > { %7849 = vrcp.f32 %v3127_v28  ;;  %v3142_v31 = vand.u32 2147483648, %v3127_v28  ;;  %vm3136_vm2 = vweird.f32 %v3127_v28  ;;  %v3140_v3 = vand.u32 2147483647, %v3127_v28 }
 0x678   : > { %7851 = vrcp.f32 %v3128_v54  ;;  %v3155_v20 = vand.u32 2147483647, %v3128_v54  ;;  %v3157_v23 = vand.u32 2147483648, %v3128_v54  ;;  %vm3151_vm5 = vweird.f32 %v3128_v54 }
 0x679   : > { %7853 = vpow2.f32 %v6728_v43  ;;  %v3143_v15 = vor.u32 1.1754944e-38, %v3142_v31  ;;  %vm3141_vm6 = vcmp.eq.f32.partialorder %v3140_v3, 8.507059e+37  ;;  %v7610_v3 = vld [vmem:[%s10424_s5 + $0x138] sm:$0xff] }
 0x67a   : > { %vm3156_vm11 = vcmp.eq.f32.partialorder %v3155_v20, 8.507059e+37  ;;  %v3158_v56 = vor.u32 1.1754944e-38, %v3157_v23  ;;  %v3098_v63 = vpop.f32.mrf.mxu2  ;;  %3645 = vmatpush.bf16.msrb.mxu3 %v7610_v3  ;;  %v7621_v20 = vld [vmem:[%s10424_s5 + $0x190] sm:$0xff]  ;;  %v7604_v23 = vld [vmem:[%s10424_s5 + $0x108] sm:$0xff] }
 0x67c   : > { %v7848_v27 = vpop.eup %7847 }
 0x67d   : > { %v7850_v0 = vpop.eup %7849  ;;  %v3129_v22 = vadd.f32 1.0, %v7848_v27 }
 0x67e   : > { %v7852_v45 = vpop.eup %7851  ;;  %v3132_v7 = vmul.f32 %v7850_v0, %v3127_v28  ;;  %vm3137_vm1 = vweird.f32 %v7850_v0 }
 0x67f   : > { %v7854_v24 = vpop.eup %7853  ;;  %v3147_v18 = vmul.f32 %v7852_v45, %v3128_v54  ;;  %7855 = vrcp.f32 %v3129_v22  ;;  %vm9221_vm3 = vmor %vm3136_vm2, %vm3137_vm1  ;;  %vm3152_vm4 = vweird.f32 %v7852_v45  ;;  %v3172_v26 = vand.u32 2147483648, %v3129_v22 }
 0x680   : > { %v3133_v6 = vsub.f32 1.0, %v3132_v7  ;;  %v3130_v29 = vadd.f32 1.0, %v7854_v24  ;;  %vm9227_vm7 = vmor %vm3151_vm5, %vm3152_vm4  ;;  %v3170_v14 = vand.u32 2147483647, %v3129_v22  ;;  %vm3166_vm12 = vweird.f32 %v3129_v22 }
 0x681   : > { %v3148_v61 = vsub.f32 1.0, %v3147_v18  ;;  %v3173_v62 = vor.u32 1.1754944e-38, %v3172_v26  ;;  %v7624_v26 = vld [vmem:[%s10424_s5 + $0x1a8] sm:$0xff] }
 0x682   : > { %v3134_v37 = vmul.f32 %v7850_v0, %v3133_v6  ;;  %7857 = vrcp.f32 %v3130_v29  ;;  %v3187_v44 = vand.u32 2147483648, %v3130_v29  ;;  %v3185_v60 = vand.u32 2147483647, %v3130_v29 }
 0x683   : > { %v3149_v11 = vmul.f32 %v7852_v45, %v3148_v61  ;;  %vm3171_vm15 = vcmp.eq.f32.partialorder %v3170_v14, 8.507059e+37  ;;  %vm3181_vm1 = vweird.f32 %v3130_v29  ;;  %v7623_v14 = vld [vmem:[%s10424_s5 + $0x1a0] sm:$0xff] }
 0x684   : > { %v3135_v38 = vadd.f32 %v7850_v0, %v3134_v37  ;;  %v3188_v35 = vor.u32 1.1754944e-38, %v3187_v44  ;;  %v7642_v44 = vld [vmem:[%s10425_s6 + $0xb8] sm:$0xff] }
 0x685   : > { %v7856_v52 = vpop.eup %7855  ;;  %v3150_v53 = vadd.f32 %v7852_v45, %v3149_v11 }
 0x686   : > { %v3162_v34 = vmul.f32 %v7856_v52, %v3129_v22  ;;  %v3139_v50 = vsel %vm9221_vm3, %v7850_v0, %v3135_v38  ;;  %vm3167_vm10 = vweird.f32 %v7856_v52  ;;  %vm3186_vm3 = vcmp.eq.f32.partialorder %v3185_v60, 8.507059e+37  ;;  %v3112_v22 = vpop.f32.mrf.mxu3  ;;  %v7613_v60 = vld [vmem:[%s10424_s5 + $0x150] sm:$0xff] }
 0x687   : > { %v3144_v41 = vsel %vm3141_vm6, %v3143_v15, %v3139_v50  ;;  %v3154_v48 = vsel %vm9227_vm7, %v7852_v45, %v3150_v53  ;;  %vm3168_vm13 = vmor %vm3166_vm12, %vm3167_vm10  ;;  %v7609_v53 = vld [vmem:[%s10424_s5 + $0x130] sm:$0xff]  ;;  %v7620_v15 = vld [vmem:[%s10424_s5 + $0x188] sm:$0xff] }
 0x688   : > { %v7858_v55 = vpop.eup %7857  ;;  %v3163_v47 = vsub.f32 1.0, %v3162_v34  ;;  %v3191_v12 = vmul.f32 %v3144_v41, %v9191_v40  ;;  %v3159_v8 = vsel %vm3156_vm11, %v3158_v56, %v3154_v48  ;;  %v7622_v34 = vld [vmem:[%s10424_s5 + $0x198] sm:$0xff]  ;;  %3646 = vmatpush.bf16.msrb.mxu3 %v7609_v53 }
 0x689   : > { %v3177_v36 = vmul.f32 %v7858_v55, %v3130_v29  ;;  %vm3182_vm14 = vweird.f32 %v7858_v55  ;;  %v3192_v28 = vmul.f32 %v3159_v8, %v9193_v19  ;;  %3759 = vmatpush.bf16.msra.mxu0 %v7622_v34  ;;  %v7618_v56 = vld [vmem:[%s10424_s5 + $0x178] sm:$0xff] }
 0x68a   : > { %v3164_v10 = vmul.f32 %v7856_v52, %v3163_v47  ;;  %vm3183_vm2 = vmor %vm3181_vm1, %vm3182_vm14  ;;  %v3195_v9 = vmul.f32 %v3191_v12, %v3096_v33  ;;  %v7625_v33 = vld [vmem:[%s10424_s5 + $0x1b0] sm:$0xff]  ;;  %v7608_v47 = vld [vmem:[%s10424_s5 + $0x128] sm:$0xff] }
 0x68b   : > { %v3178_v4 = vsub.f32 1.0, %v3177_v36  ;;  %v3196_v45 = vmul.f32 %v3192_v28, %v3110_v51  ;;  %v7607_v51 = vld [vmem:[%s10424_s5 + $0x120] sm:$0xff]  ;;  %v7617_v12 = vld [vmem:[%s10424_s5 + $0x170] sm:$0xff]  ;;  %v7630_v53 = vld [vmem:[%s10424_s5 + $0x1d8] sm:$0xff] }
 0x68c   : > { %v3165_v13 = vadd.f32 %v7856_v52, %v3164_v10  ;;  %3647 = vmatpush.bf16.msrb.mxu3 %v7608_v47  ;;  %v7619_v10 = vld [vmem:[%s10424_s5 + $0x180] sm:$0xff]  ;;  %v7653_v47 = vld [vmem:[%s10426_s7 + $0x90] sm:$0xff] }
 0x68d   : > { %v3179_v49 = vmul.f32 %v7858_v55, %v3178_v4  ;;  %3760 = vmatpush.bf16.msra.mxu0 %v7621_v20  ;;  %v7614_v4 = vld [vmem:[%s10424_s5 + $0x158] sm:$0xff] }
 0x68e   : > { %v3169_v46 = vsel %vm3168_vm13, %v7856_v52, %v3165_v13  ;;  %v7638_v13 = vld [vmem:[%s10425_s6 + $0x98] sm:$0xff] }
 0x68f   : > { %v3174_v17 = vsel %vm3171_vm15, %v3173_v62, %v3169_v46  ;;  %v3180_v59 = vadd.f32 %v7858_v55, %v3179_v49  ;;  %v7637_v46 = vld [vmem:[%s10425_s6 + $0x90] sm:$0xff]  ;;  %v7634_v20 = vld [vmem:[%s10424_s5 + $0x1f8] sm:$0xff] }
 0x690   : > { %v3193_v57 = vmul.f32 %v3174_v17, %v9209_v5  ;;  %3648 = vmatpush.bf16.msrb.mxu3 %v7607_v51  ;;  %v7641_v17 = vld [vmem:[%s10425_s6 + $0xb0] sm:$0xff]  ;;  %v7656_v51 = vld [vmem:[%s10426_s7 + $0xa8] sm:$0xff] }
 0x691   : > { %v3184_v43 = vsel %vm3183_vm2, %v7858_v55, %v3180_v59  ;;  %3761 = vmatpush.bf16.msra.mxu0 %v7620_v15  ;;  %v7657_v15 = vld [vmem:[%s10426_s7 + $0xb0] sm:$0xff] }
 0x692   : > { %v3189_v54 = vsel %vm3186_vm3, %v3188_v35, %v3184_v43  ;;  %v3197_v27 = vmul.f32 %v3193_v57, %v3098_v63  ;;  %v7612_v57 = vld [vmem:[%s10424_s5 + $0x148] sm:$0xff] }
 0x693   : > { %v3194_v40 = vmul.f32 %v3189_v54, %v9211_v39  ;;  %v7616_v35 = vld [vmem:[%s10424_s5 + $0x168] sm:$0xff] }
 0x694   : > { %v3199_v0 = vpack.c.bf16 %v3197_v27, %v3195_v9  ;;  %3721 = vmatpush.bf16.msra.mxu3 %v7618_v56  ;;  %v7636_v43 = vld [vmem:[%s10425_s6 + $0x88] sm:$0xff]  ;;  %v7611_v27 = vld [vmem:[%s10424_s5 + $0x140] sm:$0xff]  ;;  %v7650_v56 = vld [vmem:[%s10425_s6 + $0xf8] sm:$0xff] }
 0x695   : > { %v3198_v7 = vmul.f32 %v3194_v40, %v3112_v22  ;;  %3762 = vmatpush.bf16.msra.mxu0 %v7619_v10  ;;  %v7640_v63 = vld [vmem:[%s10425_s6 + $0xa8] sm:$0xff]  ;;  %v7615_v40 = vld [vmem:[%s10424_s5 + $0x160] sm:$0xff] }
 0x696   : > { %3305 = vmatmul.bf16.vlgmr.msrb.gmra.mxu0 %v3199_v0  ;;  %v7627_v10 = vld [vmem:[%s10424_s5 + $0x1c0] sm:$0xff] }
 0x697   : > { %v3200_v24 = vpack.c.bf16 %v3198_v7, %v3196_v45  ;;  %v7635_v45 = vld [vmem:[%s10425_s6 + $0x80] sm:$0xff] }
 0x698   : > { %3722 = vmatpush.bf16.msra.mxu3 %v7617_v12  ;;  %v7639_v7 = vld [vmem:[%s10425_s6 + $0xa0] sm:$0xff] }
 0x699   : > { %3319 = vmatmul.bf16.vlgmr.msrb.gmra.mxu1 %v3200_v24  ;;  %3911 = vmatpush.bf16.msrb.mxu0 %v7638_v13  ;;  %v7645_v13 = vld [vmem:[%s10425_s6 + $0xd0] sm:$0xff]  ;;  %v7647_v12 = vld [vmem:[%s10425_s6 + $0xe0] sm:$0xff] }
 0x69c   : > { %3723 = vmatpush.bf16.msra.mxu3 %v7616_v35  ;;  %v7664_v35 = vld [vmem:[%s10426_s7 + $0xe8] sm:$0xff] }
 0x69d   : > { %3912 = vmatpush.bf16.msrb.mxu0 %v7637_v46  ;;  %v7666_v46 = vld [vmem:[%s10426_s7 + $0xf8] sm:$0xff] }
 0x6a0   : > { %3724 = vmatpush.bf16.msra.mxu3 %v7615_v40 }
 0x6a1   : > { %3913 = vmatpush.bf16.msrb.mxu0 %v7636_v43  ;;  %v7663_v43 = vld [vmem:[%s10426_s7 + $0xe0] sm:$0xff] }
 0x6a5   : > { %3914 = vmatpush.bf16.msrb.mxu0 %v7635_v45 }
 0x713   : > { %v3306_v5 = vpop.f32.mrf.mxu0 }
 0x716   : > { %v3320_v18 = vpop.f32.mrf.mxu1 }
 0x717   : > { %v3321_v6 = vadd.f32 %v3320_v18, %v3306_v5 }
 0x719   : > { %v9238_v19 = vadd.f32 %v3321_v6, %v9040_v30  ;;  %v7606_v30 = vld [vmem:[%s10424_s5 + $0x118] sm:$0xff]  ;;  %v7766_v6 = vld [vmem:[%s10423_s4 + $0x1] ss:$0 sm:$0xff] }
 0x71a   : > { %3607 = vmatpush.bf16.msrb.mxu2 %v7606_v30 }
 0x71b   : > { %v3530_v29 = vmul.f32 %v9238_v19, %v9238_v19  ;;  %v3308_v61 = vpop.f32.mrf.mxu0 }
 0x71d   : > { %v3532_v37 = vsel %vm727_vm0, %v3530_v29, 0.0 }
 0x71e   : > { %v3322_v39 = vpop.f32.mrf.mxu1  ;;  %3533 = vadd.xlane.f32.xlu0 %v3532_v37  ;;  %3608 = vmatpush.bf16.msrb.mxu2 %v7605_v2 }
 0x71f   : > { %v3323_v11 = vadd.f32 %v3322_v39, %v3308_v61 }
 0x721   : > { %v9244_v38 = vadd.f32 %v3323_v11, %v9049_v1  ;;  %v7626_v1 = vld [vmem:[%s10424_s5 + $0x1b8] sm:$0xff] }
 0x722   : > { %3797 = vmatpush.bf16.msra.mxu1 %v7626_v1  ;;  %3609 = vmatpush.bf16.msrb.mxu2 %v7604_v23  ;;  %v7633_v23 = vld [vmem:[%s10424_s5 + $0x1f0] sm:$0xff] }
 0x723   : > { %v3531_v52 = vmul.f32 %v9244_v38, %v9244_v38 }
 0x725   : > { %v3535_v31 = vsel %vm727_vm0, %v3531_v52, 0.0 }
 0x726   : > { %3536 = vadd.xlane.f32.xlu2 %v3535_v31  ;;  %3798 = vmatpush.bf16.msra.mxu1 %v7625_v33  ;;  %v7654_v33 = vld [vmem:[%s10426_s7 + $0x98] sm:$0xff] }
 0x727   : > { %3610 = vmatpush.bf16.msrb.mxu2 %v7603_v58  ;;  %v7652_v58 = vld [vmem:[%s10426_s7 + $0x88] sm:$0xff] }
 0x72a   : > { %3799 = vmatpush.bf16.msra.mxu1 %v7624_v26  ;;  %v7628_v26 = vld [vmem:[%s10424_s5 + $0x1c8] sm:$0xff] }
 0x72b   : > { %3683 = vmatpush.bf16.msra.mxu2 %v7614_v4  ;;  %v7646_v4 = vld [vmem:[%s10425_s6 + $0xd8] sm:$0xff] }
 0x72e   : > { %3800 = vmatpush.bf16.msra.mxu1 %v7623_v14  ;;  %v7631_v14 = vld [vmem:[%s10424_s5 + $0x1e0] sm:$0xff] }
 0x72f   : > { %3684 = vmatpush.bf16.msra.mxu2 %v7613_v60  ;;  %v7643_v60 = vld [vmem:[%s10425_s6 + $0xc0] sm:$0xff] }
 0x732   : > { %3949 = vmatpush.bf16.msrb.mxu1 %v7642_v44  ;;  %v7649_v44 = vld [vmem:[%s10425_s6 + $0xf0] sm:$0xff] }
 0x733   : > { %3685 = vmatpush.bf16.msra.mxu2 %v7612_v57  ;;  %v7660_v57 = vld [vmem:[%s10426_s7 + $0xc8] sm:$0xff] }
 0x736   : > { %3950 = vmatpush.bf16.msrb.mxu1 %v7641_v17  ;;  %v7661_v17 = vld [vmem:[%s10426_s7 + $0xd0] sm:$0xff] }
 0x737   : > { %3686 = vmatpush.bf16.msra.mxu2 %v7611_v27 }
 0x73a   : > { %3951 = vmatpush.bf16.msrb.mxu1 %v7640_v63 }
 0x73e   : > { %3952 = vmatpush.bf16.msrb.mxu1 %v7639_v7 }
 0x791   : > { %v3534_v55 = vpop.xlane.xlu0 %3533 }
 0x792   : > { %v3538_v50 = vmul.f32 %v3534_v55, %v8200_v21  ;;  %v7658_v55 = vld [vmem:[%s10426_s7 + $0xb8] sm:$0xff] }
 0x794   : > { %v3540_v36 = vadd.f32 1.1920929e-07, %v3538_v50  ;;  %v7629_v50 = vld [vmem:[%s10424_s5 + $0x1d0] sm:$0xff] }
 0x796   : > { %7859 = vrsqrt.f32 %v3540_v36  ;;  %vm3548_vm5 = vweird.f32 %v3540_v36 }
 0x799   : > { %v3537_v41 = vpop.xlane.xlu2 %3536 }
 0x79a   : > { %v3539_v48 = vmul.f32 %v3537_v41, %v8200_v21  ;;  %v7651_v41 = vld [vmem:[%s10426_s7 + $0x80] sm:$0xff] }
 0x79c   : > { %v7860_v62 = vpop.eup %7859  ;;  %v3541_v49 = vadd.f32 1.1920929e-07, %v3539_v48  ;;  %v7655_v48 = vld [vmem:[%s10426_s7 + $0xa0] sm:$0xff] }
 0x79d   : > { %v3543_v8 = vmul.f32 %v7860_v62, %v3540_v36  ;;  %vm3549_vm4 = vweird.f32 %v7860_v62  ;;  %v7632_v36 = vld [vmem:[%s10424_s5 + $0x1e8] sm:$0xff] }
 0x79e   : > { %7861 = vrsqrt.f32 %v3541_v49  ;;  %vm3550_vm6 = vmor %vm3548_vm5, %vm3549_vm4  ;;  %vm3558_vm10 = vweird.f32 %v3541_v49 }
 0x79f   : > { %v3544_v59 = vmul.f32 %v7860_v62, %v3543_v8  ;;  %v7662_v8 = vld [vmem:[%s10426_s7 + $0xd8] sm:$0xff] }
 0x7a1   : > { %v3545_v28 = vmul.f32 0.5, %v3544_v59  ;;  %v7665_v59 = vld [vmem:[%s10426_s7 + $0xf0] sm:$0xff] }
 0x7a3   : > { %v3546_v9 = vsub.f32 1.5, %v3545_v28  ;;  %v7659_v28 = vld [vmem:[%s10426_s7 + $0xc0] sm:$0xff] }
 0x7a4   : > { %v7862_v54 = vpop.eup %7861 }
 0x7a5   : > { %v3547_v0 = vmul.f32 %v7860_v62, %v3546_v9  ;;  %v3553_v22 = vmul.f32 %v7862_v54, %v3541_v49  ;;  %vm3559_vm7 = vweird.f32 %v7862_v54  ;;  %v7648_v49 = vld [vmem:[%s10425_s6 + $0xe8] sm:$0xff] }
 0x7a6   : > { %vm3560_vm11 = vmor %vm3558_vm10, %vm3559_vm7 }
 0x7a7   : > { %v3551_v24 = vsel %vm3550_vm6, %v7860_v62, %v3547_v0  ;;  %v3554_v5 = vmul.f32 %v7862_v54, %v3553_v22  ;;  %v7644_v62 = vld [vmem:[%s10425_s6 + $0xc8] sm:$0xff] }
 0x7a8   : > { %v3562_v29 = vmul.f32 %v3551_v24, %v9238_v19 }
 0x7a9   : > { %v3555_v18 = vmul.f32 0.5, %v3554_v5  ;;  %v9511_v5 = vld [vmem:[%s10459_s2 + $0x8] sm:$0xff] }
 0x7aa   : > { %v3567_v39 = vmul.f32 %v7766_v6, %v3562_v29 }
 0x7ab   : > { %v3556_v61 = vsub.f32 1.5, %v3555_v18 }
 0x7ac   : > { %v3569_v31 = vpack.c.bf16 %v3567_v39, %v3567_v39 }
 0x7ad   : > { %v3557_v37 = vmul.f32 %v7862_v54, %v3556_v61 }
 0x7ae   : > { %v3573_v34 = vunpack.c.l.b16 %v3569_v31 }
 0x7af   : > { %v3561_v11 = vsel %vm3560_vm11, %v7862_v54, %v3557_v37  ;;  %v9489_v54 = vld [vmem:[%s10459_s2] sm:$0xff] }
 0x7b0   : > { %v3563_v52 = vmul.f32 %v3561_v11, %v9244_v38 }
 0x7b2   : > { %v3568_v30 = vmul.f32 %v7766_v6, %v3563_v52 }
 0x7b4   : > { %v3570_v3 = vpack.c.bf16 %v3568_v30, %v3568_v30 }
 0x7b6   : > { %v3574_v1 = vunpack.c.l.b16 %v3570_v3 }
 0x7b8   : > { %v9352_v2 = vpack.c.b16 %v3574_v1, %v3573_v34 }
 0x7ba   : > { %7003 = vmatmul.msk.bf16.vlgmr.msrb.gmra.mxu2 %vm727_vm0, %v9352_v2  ;;  %7020 = vmatmul.msk.bf16.vlgmr.msrb.gmra.mxu3 %vm727_vm0, %v9352_v2 }
 0x7bb   : > { %7071 = vmatmul.msk.bf16.vlgmr.msra.gmra.mxu0 %vm727_vm0, %v9352_v2  ;;  %7088 = vmatmul.msk.bf16.vlgmr.msra.gmra.mxu1 %vm727_vm0, %v9352_v2 }
 0x7bc   : > { %3835 = vmatpush.bf16.msrb.mxu2 %v7630_v53  ;;  %3873 = vmatpush.bf16.msrb.mxu3 %v7634_v20 }
 0x7bd   : > { %4063 = vmatpush.bf16.msra.mxu0 %v7654_v33  ;;  %4101 = vmatpush.bf16.msra.mxu1 %v7658_v55 }
 0x7c0   : > { %3836 = vmatpush.bf16.msrb.mxu2 %v7629_v50  ;;  %3874 = vmatpush.bf16.msrb.mxu3 %v7633_v23 }
 0x7c1   : > { %4064 = vmatpush.bf16.msra.mxu0 %v7653_v47  ;;  %4102 = vmatpush.bf16.msra.mxu1 %v7657_v15 }
 0x7c4   : > { %3837 = vmatpush.bf16.msrb.mxu2 %v7628_v26  ;;  %3875 = vmatpush.bf16.msrb.mxu3 %v7632_v36 }
 0x7c5   : > { %4065 = vmatpush.bf16.msra.mxu0 %v7652_v58  ;;  %4103 = vmatpush.bf16.msra.mxu1 %v7656_v51 }
 0x7c8   : > { %3838 = vmatpush.bf16.msrb.mxu2 %v7627_v10  ;;  %3876 = vmatpush.bf16.msrb.mxu3 %v7631_v14 }
 0x7c9   : > { %4066 = vmatpush.bf16.msra.mxu0 %v7651_v41  ;;  %4104 = vmatpush.bf16.msra.mxu1 %v7655_v48 }
 0x7ca   : > { %7037 = vmatmul.msk.bf16.vlgmr.msra.gmra.mxu2 %vm727_vm0, %v9352_v2  ;;  %7054 = vmatmul.msk.bf16.vlgmr.msra.gmra.mxu3 %vm727_vm0, %v9352_v2 }
 0x7cb   : > { %7139 = vmatmul.msk.bf16.vlgmr.msrb.gmra.mxu0 %vm727_vm0, %v9352_v2  ;;  %7156 = vmatmul.msk.bf16.vlgmr.msrb.gmra.mxu1 %vm727_vm0, %v9352_v2 }
 0x7cc   : > { %3987 = vmatpush.bf16.msra.mxu2 %v7646_v4  ;;  %4025 = vmatpush.bf16.msra.mxu3 %v7650_v56 }
 0x7d0   : > { %3988 = vmatpush.bf16.msra.mxu2 %v7645_v13  ;;  %4026 = vmatpush.bf16.msra.mxu3 %v7649_v44 }
 0x7d4   : > { %3989 = vmatpush.bf16.msra.mxu2 %v7644_v62  ;;  %4027 = vmatpush.bf16.msra.mxu3 %v7648_v49 }
 0x7d8   : > { %3990 = vmatpush.bf16.msra.mxu2 %v7643_v60  ;;  %4028 = vmatpush.bf16.msra.mxu3 %v7647_v12 }
 0x7da   : > { %7105 = vmatmul.msk.bf16.vlgmr.msrb.gmra.mxu2 %vm727_vm0, %v9352_v2  ;;  %7122 = vmatmul.msk.bf16.vlgmr.msrb.gmra.mxu3 %vm727_vm0, %v9352_v2 }
 0x7db   : > { %7207 = vmatmul.msk.bf16.vlgmr.msra.gmra.mxu0 %vm727_vm0, %v9352_v2  ;;  %7224 = vmatmul.msk.bf16.vlgmr.msra.gmra.mxu1 %vm727_vm0, %v9352_v2 }
 0x7dc   : > { %4139 = vmatpush.bf16.msrb.mxu2 %v7662_v8  ;;  %4177 = vmatpush.bf16.msrb.mxu3 %v7666_v46 }
 0x7e0   : > { %4140 = vmatpush.bf16.msrb.mxu2 %v7661_v17  ;;  %4178 = vmatpush.bf16.msrb.mxu3 %v7665_v59 }
 0x7e4   : > { %4141 = vmatpush.bf16.msrb.mxu2 %v7660_v57  ;;  %4179 = vmatpush.bf16.msrb.mxu3 %v7664_v35 }
 0x7e8   : > { %4142 = vmatpush.bf16.msrb.mxu2 %v7659_v28  ;;  %4180 = vmatpush.bf16.msrb.mxu3 %v7663_v43 }
 0x7ea   : > { %7173 = vmatmul.msk.bf16.vlgmr.msra.gmra.mxu2 %vm727_vm0, %v9352_v2  ;;  %7190 = vmatmul.msk.bf16.vlgmr.msra.gmra.mxu3 %vm727_vm0, %v9352_v2 }
 0x7fa   : > { %7241 = vmatmul.msk.bf16.vlgmr.msrb.gmra.mxu2 %vm727_vm0, %v9352_v2  ;;  %7258 = vmatmul.msk.bf16.vlgmr.msrb.gmra.mxu3 %vm727_vm0, %v9352_v2 }
 0x838   : > { %v9482_v63 = vpop.f32.mrf.mxu0  ;;  %v9484_v9 = vpop.f32.mrf.mxu1 }
 0x839   : > { %v4341_v27 = vmul.f32 %v9489_v54, %v9484_v9  ;;  %v4339_v40 = vmul.f32 %v9489_v54, %v9482_v63 }
 0x83b   : > { %4383 = vrot.lane.b32.xlu1 %v4341_v27, %s10460_s19  ;;  %4379 = vrot.lane.b32.xlu2 %v4339_v40, %s10460_s19 }
 0x83d   : > { %v9497_v0 = vpop.f32.mrf.mxu2  ;;  %v9499_v22 = vpop.f32.mrf.mxu3 }
 0x83e   : > { %v4333_v45 = vmul.f32 %v9489_v54, %v9499_v22  ;;  %v4331_v6 = vmul.f32 %v9489_v54, %v9497_v0 }
 0x840   : > { %v9503_v7 = vpop.f32.mrf.mxu1  ;;  %4367 = vrot.lane.b32.xlu0 %v4333_v45, %s10460_s19  ;;  %v9506_v24 = vpop.f32.mrf.mxu0 }
 0x841   : > { %v4342_v18 = vmul.f32 %v9511_v5, %v9503_v7  ;;  %v4340_v37 = vmul.f32 %v9511_v5, %v9506_v24 }
 0x843   : > { %4385 = vrot.lane.b32.xlu2 %v4342_v18, %s10460_s19  ;;  %4363 = vrot.lane.b32.xlu1 %v4331_v6, %s10460_s19 }
 0x845   : > { %v9519_v29 = vpop.f32.mrf.mxu2  ;;  %v9521_v61 = vpop.f32.mrf.mxu3 }
 0x846   : > { %v4334_v11 = vmul.f32 %v9511_v5, %v9521_v61  ;;  %v4332_v52 = vmul.f32 %v9511_v5, %v9519_v29  ;;  %v4316_v6 = vmul.f32 %v9519_v29, %v8513_v25 }
 0x848   : > { %4381 = vrot.lane.b32.xlu0 %v4340_v37, %s10460_s19  ;;  %v9526_v39 = vpop.f32.mrf.mxu1  ;;  %v9532_v31 = vpop.f32.mrf.mxu0 }
 0x849   : > { %v4515_v34 = vmul.f32 %v9489_v54, %v9532_v31  ;;  %v4517_v1 = vmul.f32 %v9489_v54, %v9526_v39  ;;  %v4453_v59 = vmul.f32 %v9526_v39, %v8554_v42  ;;  %v4451_v43 = vmul.f32 %v9532_v31, %v8554_v42 }
 0x84b   : > { %4369 = vrot.lane.b32.xlu1 %v4334_v11, %s10460_s19  ;;  %4365 = vrot.lane.b32.xlu2 %v4332_v52, %s10460_s19  ;;  %v4315_v52 = vmul.f32 %v9497_v0, %v8493_v16 }
 0x84d   : > { %v9536_v30 = vpop.f32.mrf.mxu2  ;;  %v9538_v3 = vpop.f32.mrf.mxu3 }
 0x84e   : > { %v4335_v2 = vmul.f32 %v9489_v54, %v9536_v30  ;;  %v4337_v50 = vmul.f32 %v9489_v54, %v9538_v3  ;;  %v4209_v46 = vmul.f32 %v9538_v3, %v8554_v42  ;;  %v4207_v28 = vmul.f32 %v9536_v30, %v8554_v42 }
 0x850   : > { %4531 = vrot.lane.b32.xlu0 %v4515_v34, %s10460_s19  ;;  %v9547_v53 = vpop.f32.mrf.mxu1  ;;  %v9568_v26 = vpop.f32.mrf.mxu0 }
 0x851   : > { %v4518_v55 = vmul.f32 %v9511_v5, %v9547_v53  ;;  %v4516_v58 = vmul.f32 %v9511_v5, %v9568_v26  ;;  %v4454_v62 = vmul.f32 %v9547_v53, %v8530_v32  ;;  %v4452_v57 = vmul.f32 %v9568_v26, %v8530_v32 }
 0x853   : > { %4535 = vrot.lane.b32.xlu1 %v4517_v1, %s10460_s19  ;;  %4371 = vrot.lane.b32.xlu2 %v4335_v2, %s10460_s19 }
 0x855   : > { %v9551_v20 = vpop.f32.mrf.mxu2  ;;  %v9553_v33 = vpop.f32.mrf.mxu3 }
 0x856   : > { %v4338_v23 = vmul.f32 %v9511_v5, %v9553_v33  ;;  %v4336_v36 = vmul.f32 %v9511_v5, %v9551_v20  ;;  %v4208_v8 = vmul.f32 %v9551_v20, %v8530_v32 }
 0x858   : > { %4537 = vrot.lane.b32.xlu0 %v4518_v55, %s10460_s19 }
 0x85b   : > { %4375 = vrot.lane.b32.xlu1 %v4337_v50, %s10460_s19  ;;  %4377 = vrot.lane.b32.xlu2 %v4338_v23, %s10460_s19  ;;  %v4317_v50 = vmul.f32 %v9499_v22, %v8493_v16 }
 0x85d   : > { %v9564_v47 = vpop.f32.mrf.mxu2  ;;  %v9566_v15 = vpop.f32.mrf.mxu3 }
 0x85e   : > { %v4343_v51 = vmul.f32 %v9489_v54, %v9564_v47  ;;  %v4345_v48 = vmul.f32 %v9489_v54, %v9566_v15 }
 0x860   : > { %4373 = vrot.lane.b32.xlu0 %v4336_v36, %s10460_s19 }
 0x863   : > { %4533 = vrot.lane.b32.xlu1 %v4516_v58, %s10460_s19  ;;  %4387 = vrot.lane.b32.xlu2 %v4343_v51, %s10460_s19 }
 0x865   : > { %v9579_v10 = vpop.f32.mrf.mxu2  ;;  %v9581_v14 = vpop.f32.mrf.mxu3 }
 0x866   : > { %v4344_v41 = vmul.f32 %v9511_v5, %v9579_v10  ;;  %v4346_v4 = vmul.f32 %v9511_v5, %v9581_v14 }
 0x868   : > { %4389 = vrot.lane.b32.xlu0 %v4344_v41, %s10460_s19 }
 0x86b   : > { %4391 = vrot.lane.b32.xlu1 %v4345_v48, %s10460_s19  ;;  %4393 = vrot.lane.b32.xlu2 %v4346_v4, %s10460_s19  ;;  %v4318_v4 = vmul.f32 %v9521_v61, %v8513_v25 }
 0x86d   : > { %v9592_v56 = vpop.f32.mrf.mxu2  ;;  %v9594_v13 = vpop.f32.mrf.mxu3 }
 0x86e   : > { %v4519_v44 = vmul.f32 %v9489_v54, %v9592_v56  ;;  %v4521_v49 = vmul.f32 %v9489_v54, %v9594_v13  ;;  %v4210_v54 = vmul.f32 %v9553_v33, %v8530_v32 }
 0x870   : > { %4539 = vrot.lane.b32.xlu0 %v4519_v44, %s10460_s19 }
 0x873   : > { %4473 = vrot.lane.b32.xlu1 %v4454_v62, %s10465_s20  ;;  %4543 = vrot.lane.b32.xlu2 %v4521_v49, %s10460_s19 }
 0x875   : > { %v9605_v60 = vpop.f32.mrf.mxu3  ;;  %v9616_v17 = vpop.f32.mrf.mxu2 }
 0x876   : > { %v4522_v12 = vmul.f32 %v9511_v5, %v9605_v60  ;;  %v4520_v35 = vmul.f32 %v9511_v5, %v9616_v17 }
 0x878   : > { %4545 = vrot.lane.b32.xlu0 %v4522_v12, %s10460_s19 }
 0x87b   : > { %4245 = vrot.lane.b32.xlu1 %v4208_v8, %s10465_s20  ;;  %4247 = vrot.lane.b32.xlu2 %v4209_v46, %s10465_s20 }
 0x880   : > { %4471 = vrot.lane.b32.xlu0 %v4453_v59, %s10465_s20 }
 0x883   : > { %4469 = vrot.lane.b32.xlu2 %v4452_v57, %s10465_s20  ;;  %4541 = vrot.lane.b32.xlu1 %v4520_v35, %s10460_s19  ;;  %s512_s19 = sand.u32 1, %s8013_s22  }
 0x884   : > { %s6318_s23 = sshll.u32 %s512_s19, 5  ;;  %s6237_s25 = scalar_lea.sflag [#allocation3], %s512_s19 }
 0x885   : > { %s514_s28 = scalar_lea.vmem [#allocation2], %s6318_s23 }
 0x886   : > { %s6249_s17 = sshll.u32 %s514_s28, 4  ;;  %s6250_s17 = int_to_ptr.vmem [resolvable:$true] %s6249_s17 }
 0x888   : > { %4243 = vrot.lane.b32.xlu0 %v4207_v28, %s10465_s20  ;;  %v4509_v28 = vmul.f32 %v9526_v39, %v8493_v16 }
 0x88b   : > { %4467 = vrot.lane.b32.xlu1 %v4451_v43, %s10465_s20 }
 0x890   : > { %4249 = vrot.lane.b32.xlu0 %v4210_v54, %s10465_s20 }
 0x895   : > { %v4380_v27 = vpop.permute.xlu2 %4379 }
 0x89d   : > { %v9636_v40 = vpop.permute.xlu2 %4385 }
 0x8a5   : > { %v4366_v45 = vpop.permute.xlu2 %4365 }
 0x8a6   : > { %v4412_v37 = vadd.f32 %v4366_v45, %v4316_v6  ;;  %v4322_v6 = vmul.f32 %v9553_v33, %v8513_v25 }
 0x8a8   : > { %v4428_v2 = vpack.c.bf16 %v4412_v37, %v4412_v37  ;;  %v4510_v37 = vmul.f32 %v9547_v53, %v8513_v25 }
 0x8aa   : > { %v4582_v36 = vunpack.c.l.b16 %v4428_v2 }
 0x8ad   : > { %v9638_v5 = vpop.permute.xlu1 %4383  ;;  %v4372_v18 = vpop.permute.xlu2 %4371 }
 0x8b2   : > { %v4368_v11 = vpop.permute.xlu0 %4367 }
 0x8b3   : > { %v4413_v58 = vadd.f32 %v4368_v11, %v4317_v50  ;;  %v4321_v50 = vmul.f32 %v9538_v3, %v8493_v16 }
 0x8b5   : > { %v4364_v34 = vpop.permute.xlu1 %4363  ;;  %v4378_v1 = vpop.permute.xlu2 %4377  ;;  %v4429_v49 = vpack.c.bf16 %v4413_v58, %v4413_v58 }
 0x8b6   : > { %v4411_v55 = vadd.f32 %v4364_v34, %v4315_v52  ;;  %v4418_v11 = vadd.f32 %v4378_v1, %v4322_v6  ;;  %v4324_v34 = vmul.f32 %v9506_v24, %v8513_v25 }
 0x8b7   : > { %v4615_v46 = vunpack.c.l.b16 %v4429_v49 }
 0x8b8   : > { %v4427_v23 = vpack.c.bf16 %v4411_v55, %v4411_v55  ;;  %v4434_v1 = vpack.c.bf16 %v4418_v11, %v4418_v11 }
 0x8ba   : > { %v4581_v51 = vunpack.c.l.b16 %v4427_v23  ;;  %v4382_v41 = vpop.permute.xlu0 %4381  ;;  %v4323_v23 = vmul.f32 %v9482_v63, %v8493_v16 }
 0x8bb   : > { %v4420_v58 = vadd.f32 %v4382_v41, %v4324_v34  ;;  %v4674_v41 = vunpack.c.l.b16 %v4434_v1 }
 0x8bc   : > { %v4583_v48 = vpack.c.b16 %v4582_v36, %v4581_v51  ;;  %v4319_v36 = vmul.f32 %v9536_v30, %v8493_v16  ;;  %v4419_v49 = vadd.f32 %v4380_v27, %v4323_v23 }
 0x8bd   : > { %v4370_v44 = vpop.permute.xlu1 %4369  ;;  %v9648_v62 = vpop.permute.xlu2 %4387 }
 0x8be   : > { %v4414_v12 = vadd.f32 %v4370_v44, %v4318_v4  ;;  %4584 = vrot.lane.b32.xlu2 %v4583_v48, %s10465_s20  ;;  %v4435_v34 = vpack.c.bf16 %v4419_v49, %v4419_v49 }
 0x8c0   : > { %v4430_v8 = vpack.c.bf16 %v4414_v12, %v4414_v12  ;;  %v4415_v12 = vadd.f32 %v4372_v18, %v4319_v36  ;;  %v4508_v18 = vmul.f32 %v9568_v26, %v8513_v25 }
 0x8c2   : > { %v4616_v59 = vunpack.c.l.b16 %v4430_v8  ;;  %v4532_v57 = vpop.permute.xlu0 %4531  ;;  %v4431_v11 = vpack.c.bf16 %v4415_v12, %v4415_v12 }
 0x8c4   : > { %v4617_v35 = vpack.c.b16 %v4616_v59, %v4615_v46  ;;  %v4507_v59 = vmul.f32 %v9532_v31, %v8493_v16  ;;  %v4639_v49 = vunpack.c.l.b16 %v4431_v11 }
 0x8c5   : > { %v4536_v43 = vpop.permute.xlu1 %4535  ;;  %v4394_v54 = vpop.permute.xlu2 %4393 }
 0x8c6   : > { %4618 = vrot.lane.b32.xlu2 %v4617_v35, %s10465_s20  ;;  %v4557_v45 = vadd.f32 %v4536_v43, %v4509_v28  ;;  %v4436_v28 = vpack.c.bf16 %v4420_v58, %v4420_v58  ;;  %v4555_v6 = vadd.f32 %v4532_v57, %v4507_v59 }
 0x8c8   : > { %v4565_v2 = vpack.c.bf16 %v4557_v45, %v4557_v45  ;;  %v4320_v45 = vmul.f32 %v9551_v20, %v8513_v25  ;;  %v4698_v57 = vunpack.c.l.b16 %v4436_v28 }
 0x8ca   : > { %v4538_v52 = vpop.permute.xlu0 %4537  ;;  %v4646_v8 = vunpack.c.l.b16 %v4565_v2  ;;  %v9678_v2 = vld [vmem:[%s10458_s1] sm:$0xff] }
 0x8cb   : > { %v4558_v55 = vadd.f32 %v4538_v52, %v4510_v37 }
 0x8cd   : > { %v4566_v51 = vpack.c.bf16 %v4558_v55, %v4558_v55  ;;  %v4376_v48 = vpop.permute.xlu1 %4375  ;;  %v9666_v4 = vpop.permute.xlu2 %4543 }
 0x8ce   : > { %v4417_v44 = vadd.f32 %v4376_v48, %v4321_v50  ;;  %v4193_v50 = vmul.f32 %v9678_v2, %v9538_v3 }
 0x8cf   : > { %v4647_v46 = vunpack.c.l.b16 %v4566_v51  ;;  %v4563_v51 = vpack.c.bf16 %v4555_v6, %v4555_v6 }
 0x8d0   : > { %v4433_v35 = vpack.c.bf16 %v4417_v44, %v4417_v44  ;;  %v4697_v44 = vunpack.c.l.b16 %v4435_v34  ;;  %v4327_v34 = vmul.f32 %v9564_v47, %v8493_v16 }
 0x8d1   : > { %v4648_v43 = vpack.c.b16 %v4647_v46, %v4646_v8  ;;  %v4330_v8 = vmul.f32 %v9581_v14, %v8513_v25  ;;  %v4588_v3 = vunpack.c.l.b16 %v4563_v51  ;;  %v4325_v51 = vmul.f32 %v9484_v9, %v8493_v16 }
 0x8d2   : > { %v4673_v37 = vunpack.c.l.b16 %v4433_v35  ;;  %v4374_v52 = vpop.permute.xlu0 %4373  ;;  %v4699_v59 = vpack.c.b16 %v4698_v57, %v4697_v44 }
 0x8d3   : > { %v4416_v55 = vadd.f32 %v4374_v52, %v4320_v45  ;;  %4649 = vrot.lane.b32.xlu0 %v4648_v43, %s10465_s20  ;;  %v4426_v28 = vadd.f32 %v4394_v54, %v4330_v8  ;;  %v4458_v52 = vmul.f32 %v9605_v60, %v8530_v32  ;;  %v4421_v8 = vadd.f32 %v9638_v5, %v4325_v51 }
 0x8d4   : > { %v4675_v27 = vpack.c.b16 %v4674_v41, %v4673_v37  ;;  %v4328_v41 = vmul.f32 %v9579_v10, %v8513_v25  ;;  %v4329_v37 = vmul.f32 %v9566_v15, %v8493_v16 }
 0x8d5   : > { %v4432_v23 = vpack.c.bf16 %v4416_v55, %v4416_v55  ;;  %v4534_v36 = vpop.permute.xlu1 %4533  ;;  %v4248_v58 = vpop.permute.xlu2 %4247  ;;  %v4442_v55 = vpack.c.bf16 %v4426_v28, %v4426_v28 }
 0x8d6   : > { %v4556_v48 = vadd.f32 %v4534_v36, %v4508_v18  ;;  %v9682_v1 = vsub.f32 %v4193_v50, %v4248_v58  ;;  %4676 = vrot.lane.b32.xlu2 %v4675_v27, %s10465_s20  ;;  %v4423_v18 = vadd.f32 %v9648_v62, %v4327_v34 }
 0x8d7   : > { %v4640_v12 = vunpack.c.l.b16 %v4432_v23  ;;  %v4790_v23 = vunpack.c.l.b16 %v4442_v55 }
 0x8d8   : > { %v4564_v46 = vpack.c.bf16 %v4556_v48, %v4556_v48  ;;  %v4439_v48 = vpack.c.bf16 %v4423_v18, %v4423_v18 }
 0x8d9   : > { %v4641_v35 = vpack.c.b16 %v4640_v12, %v4639_v49  ;;  %v9705_v49 = vld [vmem:[%s10458_s1 + $0x8] sm:$0xff]  ;;  %v4326_v12 = vmul.f32 %v9503_v7, %v8513_v25 }
 0x8da   : > { %v4589_v43 = vunpack.c.l.b16 %v4564_v46  ;;  %v4390_v45 = vpop.permute.xlu0 %4389  ;;  %v4446_v62 = vmul.f32 %v9705_v49, %v9547_v53  ;;  %v4513_v46 = vmul.f32 %v9594_v13, %v8493_v16 }
 0x8db   : > { %4700 = vrot.lane.b32.xlu0 %v4699_v59, %s10465_s20  ;;  %4642 = vrot.lane.b32.xlu1 %v4641_v35, %s10465_s20  ;;  %v4424_v54 = vadd.f32 %v4390_v45, %v4328_v41  ;;  %v4422_v28 = vadd.f32 %v9636_v40, %v4326_v12  ;;  %v4437_v41 = vpack.c.bf16 %v4421_v8, %v4421_v8 }
 0x8dc   : > { %v4590_v6 = vpack.c.b16 %v4589_v43, %v4588_v3  ;;  %v4755_v43 = vunpack.c.l.b16 %v4439_v48  ;;  %v4561_v45 = vadd.f32 %v9666_v4, %v4513_v46  ;;  %v4511_v4 = vmul.f32 %v9592_v56, %v8493_v16 }
 0x8dd   : > { %v4392_v11 = vpop.permute.xlu1 %4391  ;;  %v4440_v57 = vpack.c.bf16 %v4424_v54, %v4424_v54  ;;  %v4438_v5 = vpack.c.bf16 %v4422_v28, %v4422_v28  ;;  %v4731_v54 = vunpack.c.l.b16 %v4437_v41  ;;  %v4192_v12 = vmul.f32 %v9705_v49, %v9551_v20 }
 0x8de   : > { %v4425_v27 = vadd.f32 %v4392_v11, %v4329_v37  ;;  %4481 = vrot.lane.b32.xlu2 %v4458_v52, %s10465_s20  ;;  %v4569_v52 = vpack.c.bf16 %v4561_v45, %v4561_v45  ;;  %v4444_v28 = vmul.f32 %v9705_v49, %v9568_v26  ;;  %v4191_v45 = vmul.f32 %v9678_v2, %v9536_v30 }
 0x8df   : > { %v4756_v59 = vunpack.c.l.b16 %v4440_v57  ;;  %v4457_v41 = vmul.f32 %v9594_v13, %v8554_v42 }
 0x8e0   : > { %v4441_v50 = vpack.c.bf16 %v4425_v27, %v4425_v27  ;;  %v4732_v27 = vunpack.c.l.b16 %v4438_v5  ;;  %v4762_v18 = vunpack.c.l.b16 %v4569_v52 }
 0x8e1   : > { %v4757_v53 = vpack.c.b16 %v4756_v59, %v4755_v43 }
 0x8e2   : > { %v4789_v36 = vunpack.c.l.b16 %v4441_v50  ;;  %v4540_v58 = vpop.permute.xlu0 %4539  ;;  %v4733_v50 = vpack.c.b16 %v4732_v27, %v4731_v54  ;;  %v4443_v54 = vmul.f32 %v9678_v2, %v9532_v31  ;;  %v4216_v31 = vmul.f32 %v9579_v10, %v8530_v32 }
 0x8e3   : > { %4591 = vrot.lane.b32.xlu0 %v4590_v6, %s10465_s20  ;;  %v4514_v6 = vmul.f32 %v9605_v60, %v8513_v25 }
 0x8e4   : > { %v4791_v44 = vpack.c.b16 %v4790_v23, %v4789_v36  ;;  %v4445_v23 = vmul.f32 %v9678_v2, %v9526_v39  ;;  %v4559_v36 = vadd.f32 %v4540_v58, %v4511_v4 }
 0x8e5   : > { %v4474_v35 = vpop.permute.xlu1 %4473 }
 0x8e6   : > { %v4494_v3 = vsub.f32 %v4446_v62, %v4474_v35  ;;  %4792 = vrot.lane.b32.xlu1 %v4791_v44, %s10465_s20  ;;  %v4512_v62 = vmul.f32 %v9616_v17, %v8513_v25  ;;  %v4567_v46 = vpack.c.bf16 %v4559_v36, %v4559_v36  ;;  %v4470_v35 = vpop.permute.xlu2 %4469  ;;  %v4205_v25 = vmul.f32 %v9499_v22, %v8554_v42 }
 0x8e8   : > { %v4502_v48 = vpack.c.bf16 %v4494_v3, %v4494_v3 }
 0x8ea   : > { %v4546_v37 = vpop.permute.xlu0 %4545  ;;  %v9730_v39 = vunpack.c.l.b16 %v4502_v48  ;;  %v4204_v48 = vmul.f32 %v9519_v29, %v8530_v32 }
 0x8eb   : > { %v4562_v34 = vadd.f32 %v4546_v37, %v4514_v6  ;;  %4758 = vrot.lane.b32.xlu0 %v4757_v53, %s10465_s20  ;;  %v4492_v53 = vsub.f32 %v4444_v28, %v4470_v35  ;;  %v4704_v6 = vunpack.c.l.b16 %v4567_v46  ;;  %v4218_v46 = vmul.f32 %v9581_v14, %v8530_v32 }
 0x8ec   : > { %v4211_v35 = vmul.f32 %v9482_v63, %v8554_v42  ;;  %v4214_v28 = vmul.f32 %v9503_v7, %v8530_v32 }
 0x8ed   : > { %v4570_v11 = vpack.c.bf16 %v4562_v34, %v4562_v34  ;;  %v4246_v55 = vpop.permute.xlu1 %4245  ;;  %v4500_v30 = vpack.c.bf16 %v4492_v53, %v4492_v53 }
 0x8ee   : > { %v4288_v58 = vsub.f32 %v4192_v12, %v4246_v55  ;;  %v4215_v12 = vmul.f32 %v9564_v47, %v8554_v42 }
 0x8ef   : > { %v4763_v40 = vunpack.c.l.b16 %v4570_v11 }
 0x8f0   : > { %v4304_v52 = vpack.c.bf16 %v4288_v58, %v4288_v58  ;;  %v4213_v58 = vmul.f32 %v9484_v9, %v8554_v42 }
 0x8f1   : > { %v4764_v57 = vpack.c.b16 %v4763_v40, %v4762_v18 }
 0x8f2   : > { %v4472_v51 = vpop.permute.xlu0 %4471  ;;  %v9749_v18 = vunpack.c.l.b16 %v4304_v52 }
 0x8f3   : > { %v4493_v44 = vsub.f32 %v4445_v23, %v4472_v51  ;;  %4734 = vrot.lane.b32.xlu0 %v4733_v50, %s10465_s20  ;;  %4765 = vrot.lane.b32.xlu1 %v4764_v57, %s10465_s20  ;;  %v4203_v50 = vmul.f32 %v9497_v0, %v8554_v42  ;;  %v4819_v23 = vunpack.c.l.b16 %v4500_v30 }
 0x8f5   : > { %v4501_v16 = vpack.c.bf16 %v4493_v44, %v4493_v44  ;;  %v4542_v8 = vpop.permute.xlu1 %4541  ;;  %v4455_v44 = vmul.f32 %v9592_v56, %v8554_v42 }
 0x8f6   : > { %v4560_v59 = vadd.f32 %v4542_v8, %v4512_v62  ;;  %v4206_v62 = vmul.f32 %v9521_v61, %v8530_v32  ;;  %v4212_v8 = vmul.f32 %v9506_v24, %v8530_v32 }
 0x8f7   : > { %v9732_v3 = vunpack.c.l.b16 %v4501_v16  ;;  %v4217_v16 = vmul.f32 %v9566_v15, %v8554_v42 }
 0x8f8   : > { %v4568_v43 = vpack.c.bf16 %v4560_v59, %v4560_v59  ;;  %v4456_v59 = vmul.f32 %v9616_v17, %v8530_v32 }
 0x8f9   : > { %v4872_v20 = vpack.c.b16 %v9730_v39, %v9732_v3  ;;  %v4194_v39 = vmul.f32 %v9705_v49, %v9553_v33 }
 0x8fa   : > { %v4705_v37 = vunpack.c.l.b16 %v4568_v43  ;;  %v4244_v5 = vpop.permute.xlu0 %4243 }
 0x8fb   : > { %v4287_v34 = vsub.f32 %v4191_v45, %v4244_v5  ;;  %4239 = vrot.lane.b32.xlu0 %v4205_v25, %s10465_s20  ;;  %4479 = vrot.lane.b32.xlu1 %v4457_v41, %s10465_s20 }
 0x8fc   : > { %v4706_v26 = vpack.c.b16 %v4705_v37, %v4704_v6 }
 0x8fd   : > { %v4303_v11 = vpack.c.bf16 %v4287_v34, %v4287_v34  ;;  %v4468_v55 = vpop.permute.xlu1 %4467 }
 0x8fe   : > { %v4491_v27 = vsub.f32 %v4443_v54, %v4468_v55  ;;  %4707 = vrot.lane.b32.xlu2 %v4706_v26, %s10465_s20 }
 0x8ff   : > { %v9751_v40 = vunpack.c.l.b16 %v4303_v11 }
 0x900   : > { %v4499_v4 = vpack.c.bf16 %v4491_v27, %v4491_v27 }
 0x901   : > { %v4867_v57 = vpack.c.b16 %v9749_v18, %v9751_v40 }
 0x902   : > { %v4818_v36 = vunpack.c.l.b16 %v4499_v4  ;;  %v4250_v25 = vpop.permute.xlu0 %4249 }
 0x903   : > { %4261 = vrot.lane.b32.xlu0 %v4216_v31, %s10465_s20  ;;  %4235 = vrot.lane.b32.xlu1 %v4203_v50, %s10465_s20  ;;  %v4877_v31 = vsel %vm1812_vm8, %v4872_v20, 0 }
 0x904   : > { %v4820_v51 = vpack.c.b16 %v4819_v23, %v4818_v36  ;;  %v4450_v23 = vmul.f32 %v9705_v49, %v9605_v60  ;;  %v4106_v36 = vpop.f32.mrf.mxu1  ;;  %v4188_v60 = vmul.f32 %v9705_v49, %v9519_v29  ;;  %v4305_v29 = vpack.c.bf16 %v9682_v1, %v9682_v1 }
 0x905   : > { %v4190_v1 = vmul.f32 %v9705_v49, %v9521_v61  ;;  %v4202_v61 = vmul.f32 %v9705_v49, %v9581_v14 }
 0x906   : > { %4237 = vrot.lane.b32.xlu2 %v4204_v48, %s10465_s20  ;;  %v4825_v55 = vsel %vm1812_vm8, %v4820_v51, 0  ;;  %v4449_v48 = vmul.f32 %v9678_v2, %v9594_v13  ;;  %v4290_v13 = vsub.f32 %v4194_v39, %v4250_v25  ;;  %v4573_v25 = vpack.c.bf16 %v4106_v36, %v4106_v36 }
 0x907   : > { %v4200_v36 = vmul.f32 %v9705_v49, %v9579_v10 }
 0x908   : > { %v4306_v33 = vpack.c.bf16 %v4290_v13, %v4290_v13 }
 0x90b   : > { %4475 = vrot.lane.b32.xlu0 %v4455_v44, %s10465_s20  ;;  %4241 = vrot.lane.b32.xlu1 %v4206_v62, %s10465_s20 }
 0x90e   : > { %4259 = vrot.lane.b32.xlu2 %v4215_v12, %s10465_s20 }
 0x913   : > { %4253 = vrot.lane.b32.xlu0 %v4212_v8, %s10465_s20  ;;  %4263 = vrot.lane.b32.xlu1 %v4217_v16, %s10465_s20 }
 0x916   : > { %4265 = vrot.lane.b32.xlu2 %v4218_v46, %s10465_s20 }
 0x918   : > { %v4585_v43 = vpop.permute.xlu2 %4584 }
 0x91b   : > { %4477 = vrot.lane.b32.xlu1 %v4456_v59, %s10465_s20 }
 0x91e   : > { %4251 = vrot.lane.b32.xlu2 %v4211_v35, %s10465_s20  ;;  %v4108_v35 = vpop.f32.mrf.mxu1 }
 0x920   : > { %v4619_v45 = vpop.permute.xlu2 %4618 }
 0x923   : > { %4255 = vrot.lane.b32.xlu1 %v4213_v58, %s10465_s20 }
 0x926   : > { %4257 = vrot.lane.b32.xlu2 %v4214_v28, %s10465_s20  ;;  %v4187_v28 = vmul.f32 %v9678_v2, %v9497_v0  ;;  %s7973_s20 = sshra.s32 %s6252_s21, 4  ;;  %s7974_s20 = int_to_ptr.hbm [resolvable:$true] %s7973_s20 }
 0x927   : > { %s7975_s30 = scalar_lea.hbm %s7974_s20, 32  ;;  %p7980_p0 = scmp.lt.s32.totalorder %s7974_s20, %s10435_s16 }
 0x928   : > { %p7976_p11 = scmp.ne.s32.totalorder %s7974_s20, %s7975_s30  ;;  %p7981_p1 = scmp.lt.s32.totalorder %s7979_s26, %s7975_s30 }
 0x92a   : > { %p7977_p12 = pnand %p7976_p11, %p8151_p5  ;;  %p7982_p2 = por %p7981_p1, %p7980_p0 }
 0x92c   : > { %p7978_p13 = pneg %p7977_p12 }
 0x92e   : > { %p7983_p3 = pnand %p7982_p2, %p7978_p13 }
 0x930   : > { %v4677_v53 = vpop.permute.xlu2 %4676 }
 0x938   : > { %v4482_v42 = vpop.permute.xlu2 %4481 }
 0x939   : > { %v4498_v51 = vsub.f32 %v4450_v23, %v4482_v42  ;;  %v4182_v42 = vpop.f32.mrf.mxu3 }
 0x93b   : > { %v4506_v62 = vpack.c.bf16 %v4498_v51, %v4498_v51  ;;  %v4068_v51 = vpop.f32.mrf.mxu0 }
 0x93d   : > { %v4975_v8 = vunpack.c.l.b16 %v4506_v62 }
 0x945   : > { %v4650_v41 = vpop.permute.xlu0 %4649 }
 0x946   : > { %v4655_v6 = vsel %vm1812_vm8, %v4650_v41, 0 }
 0x947   : > { %4664 = vmatpush.bf16.xpose.msra.mxu2 %v4655_v6  ;;  %4688 = vmatpush.bf16.xpose.msra.mxu3 %v4655_v6 }
 0x94d   : > { %v4701_v37 = vpop.permute.xlu0 %4700  ;;  %v4643_v5 = vpop.permute.xlu1 %4642 }
 0x94e   : > { %7261 = vmatmul.msk.bf16.vlgmr.msra.gmra.mxu2 %vm1812_vm8, %v4643_v5  ;;  %7262 = vmatmul.msk.bf16.vlgmr.msra.gmra.mxu3 %vm1812_vm8, %v4677_v53 }
 0x955   : > { %v4592_v52 = vpop.permute.xlu0 %4591 }
 0x956   : > { %v4597_v32 = vsel %vm1812_vm8, %v4592_v52, 0  ;;  %v4896_v52 = vunpack.c.l.b16 %v4306_v33 }
 0x957   : > { %4606 = vmatpush.bf16.xpose.msrb.mxu0 %v4597_v32  ;;  %4630 = vmatpush.bf16.xpose.msrb.mxu1 %v4597_v32 }
 0x958   : > { %v4708_v34 = vpop.permute.xlu2 %4707  ;;  %v4793_v54 = vpop.permute.xlu1 %4792 }
 0x959   : > { %v4713_v26 = vsel %vm1812_vm8, %v4708_v34, 0 }
 0x95d   : > { %v4759_v11 = vpop.permute.xlu0 %4758 }
 0x95e   : > { %7259 = vmatmul.msk.bf16.vlgmr.msrb.gmra.mxu0 %vm1812_vm8, %v4585_v43  ;;  %7260 = vmatmul.msk.bf16.vlgmr.msrb.gmra.mxu1 %vm1812_vm8, %v4619_v45  ;;  %v4574_v45 = vpack.c.bf16 %v4108_v35, %v4108_v35  ;;  %v4144_v35 = vpop.f32.mrf.mxu2 }
 0x95f   : > { %4722 = vmatpush.bf16.xpose.msra.mxu0 %v4713_v26  ;;  %4746 = vmatpush.bf16.xpose.msra.mxu1 %v4713_v26 }
 0x960   : > { %v4238_v50 = vpop.permute.xlu2 %4237  ;;  %v5301_v32 = vunpack.c.l.b16 %v4574_v45 }
 0x961   : > { %v4284_v46 = vsub.f32 %v4188_v60, %v4238_v50  ;;  %v4201_v60 = vmul.f32 %v9678_v2, %v9566_v15 }
 0x963   : > { %v4300_v41 = vpack.c.bf16 %v4284_v46, %v4284_v46 }
 0x965   : > { %v4735_v30 = vpop.permute.xlu0 %4734  ;;  %v4766_v27 = vpop.permute.xlu1 %4765  ;;  %v4814_v34 = vunpack.c.l.b16 %v4300_v41 }
 0x966   : > { %v4771_v4 = vsel %vm1812_vm8, %v4766_v27, 0 }
 0x967   : > { %4834 = vmatpush.bf16.xpose.msrb.mxu0 %v4825_v55  ;;  %4856 = vmatpush.bf16.xpose.msrb.mxu1 %v4825_v55 }
 0x968   : > { %4780 = vmatpush.bf16.xpose.msrb.mxu2 %v4771_v4  ;;  %4804 = vmatpush.bf16.xpose.msrb.mxu3 %v4771_v4  ;;  %v4260_v16 = vpop.permute.xlu2 %4259 }
 0x96d   : > { %v4480_v44 = vpop.permute.xlu1 %4479  ;;  %v4240_v3 = vpop.permute.xlu0 %4239 }
 0x96e   : > { %v4497_v12 = vsub.f32 %v4449_v48, %v4480_v44  ;;  %7263 = vmatmul.msk.bf16.vlgmr.msra.gmra.mxu0 %vm1812_vm8, %v4701_v37  ;;  %7264 = vmatmul.msk.bf16.vlgmr.msra.gmra.mxu1 %vm1812_vm8, %v4735_v30  ;;  %v4189_v37 = vmul.f32 %v9678_v2, %v9499_v22  ;;  %v5300_v30 = vunpack.c.l.b16 %v4573_v25  ;;  %v4199_v44 = vmul.f32 %v9678_v2, %v9564_v47 }
 0x96f   : > { %7265 = vmatmul.msk.bf16.vlgmr.msrb.gmra.mxu2 %vm1812_vm8, %v4759_v11  ;;  %7266 = vmatmul.msk.bf16.vlgmr.msrb.gmra.mxu3 %vm1812_vm8, %v4793_v54  ;;  %v4895_v11 = vunpack.c.l.b16 %v4305_v29 }
 0x970   : > { %4886 = vmatpush.bf16.xpose.msra.mxu2 %v4877_v31  ;;  %4908 = vmatpush.bf16.xpose.msra.mxu3 %v4877_v31  ;;  %v4505_v20 = vpack.c.bf16 %v4497_v12, %v4497_v12  ;;  %v4285_v26 = vsub.f32 %v4189_v37, %v4240_v3  ;;  %v4266_v55 = vpop.permute.xlu2 %4265  ;;  %v5302_v31 = vpack.c.b16 %v5301_v32, %v5300_v30  ;;  %v4184_v3 = vpop.f32.mrf.mxu3 }
 0x971   : > { %v4897_v4 = vpack.c.b16 %v4896_v52, %v4895_v11  ;;  %v4298_v10 = vsub.f32 %v4202_v61, %v4266_v55  ;;  %v4295_v18 = vsub.f32 %v4199_v44, %v4260_v16  ;;  %v4448_v37 = vmul.f32 %v9705_v49, %v9616_v17 }
 0x972   : > { %v4974_v59 = vunpack.c.l.b16 %v4505_v20  ;;  %v4301_v23 = vpack.c.bf16 %v4285_v26, %v4285_v26  ;;  %v4195_v11 = vmul.f32 %v9678_v2, %v9482_v63  ;;  %v4198_v17 = vmul.f32 %v9705_v49, %v9503_v7 }
 0x973   : > { %v4314_v46 = vpack.c.bf16 %v4298_v10, %v4298_v10  ;;  %v4311_v47 = vpack.c.bf16 %v4295_v18, %v4295_v18  ;;  %v4575_v10 = vpack.c.bf16 %v4144_v35, %v4144_v35 }
 0x974   : > { %v4976_v58 = vpack.c.b16 %v4975_v8, %v4974_v59  ;;  %v4843_v12 = vunpack.c.l.b16 %v4301_v23  ;;  %v4578_v8 = vpack.c.bf16 %v4184_v3, %v4184_v3 }
 0x975   : > { %v4236_v43 = vpop.permute.xlu1 %4235  ;;  %v4262_v0 = vpop.permute.xlu0 %4261  ;;  %v5000_v41 = vunpack.c.l.b16 %v4314_v46 }
 0x976   : > { %v4283_v53 = vsub.f32 %v4187_v28, %v4236_v43  ;;  %v4981_v6 = vsel %vm1812_vm8, %v4976_v58, 0  ;;  %v4296_v62 = vsub.f32 %v4200_v36, %v4262_v0  ;;  %v4577_v58 = vpack.c.bf16 %v4182_v42, %v4182_v42  ;;  %v4070_v43 = vpop.f32.mrf.mxu0 }
 0x977   : > { %v4447_v28 = vmul.f32 %v9678_v2, %v9592_v56  ;;  %v5401_v45 = vunpack.c.l.b16 %v4578_v8  ;;  %v4196_v56 = vmul.f32 %v9705_v49, %v9506_v24 }
 0x978   : > { %4990 = vmatpush.bf16.xpose.msrb.mxu2 %v4981_v6  ;;  %5012 = vmatpush.bf16.xpose.msrb.mxu3 %v4981_v6  ;;  %v4299_v5 = vpack.c.bf16 %v4283_v53, %v4283_v53  ;;  %v4312_v20 = vpack.c.bf16 %v4296_v62, %v4296_v62  ;;  %v4252_v13 = vpop.permute.xlu2 %4251  ;;  %v4969_v6 = vunpack.c.l.b16 %v4311_v47  ;;  %v5400_v29 = vunpack.c.l.b16 %v4577_v58 }
 0x979   : > { %v4291_v24 = vsub.f32 %v4195_v11, %v4252_v13 }
 0x97a   : > { %v4813_v54 = vunpack.c.l.b16 %v4299_v5  ;;  %v4970_v33 = vunpack.c.l.b16 %v4312_v20  ;;  %v4572_v5 = vpack.c.bf16 %v4070_v43, %v4070_v43  ;;  %v5402_v32 = vpack.c.b16 %v5401_v45, %v5400_v29 }
 0x97b   : > { %v4307_v7 = vpack.c.bf16 %v4291_v24, %v4291_v24 }
 0x97c   : > { %v4815_v27 = vpack.c.b16 %v4814_v34, %v4813_v54  ;;  %v4971_v52 = vpack.c.b16 %v4970_v33, %v4969_v6  ;;  %v4571_v54 = vpack.c.bf16 %v4068_v51, %v4068_v51  ;;  %v4197_v51 = vmul.f32 %v9678_v2, %v9484_v9 }
 0x97d   : > { %v4242_v50 = vpop.permute.xlu1 %4241  ;;  %v4476_v40 = vpop.permute.xlu0 %4475  ;;  %v5350_v9 = vunpack.c.l.b16 %v4575_v10 }
 0x97e   : > { %v4286_v22 = vsub.f32 %v4190_v1, %v4242_v50  ;;  %7267 = vmatmul.msk.bf16.vlgmr.msrb.gmra.mxu0 %vm1812_vm8, %v4815_v27  ;;  %v4495_v15 = vsub.f32 %v4447_v28, %v4476_v40  ;;  %v5251_v1 = vunpack.c.l.b16 %v4572_v5  ;;  %v4917_v40 = vunpack.c.l.b16 %v4307_v7  ;;  %v9875_v5 = vld [vmem:[%s10422_s3] sm:$0xff] }
 0x97f   : > { %7269 = vmatmul.msk.bf16.vlgmr.msra.gmra.mxu2 %vm1812_vm8, %v4867_v57  ;;  %7270 = vmatmul.msk.bf16.vlgmr.msra.gmra.mxu3 %vm1812_vm8, %v4897_v4  ;;  %v4146_v4 = vpop.f32.mrf.mxu2 }
 0x980   : > { %v4302_v48 = vpack.c.bf16 %v4286_v22, %v4286_v22  ;;  %5314 = vmatpush.bf16.msra.mxu2 %v5302_v31  ;;  %5336 = vmatpush.bf16.msra.mxu3 %v5302_v31  ;;  %v4503_v34 = vpack.c.bf16 %v4495_v15, %v4495_v15  ;;  %v4258_v55 = vpop.permute.xlu2 %4257  ;;  %v5250_v22 = vunpack.c.l.b16 %v4571_v54 }
 0x981   : > { %v4294_v31 = vsub.f32 %v4198_v17, %v4258_v55 }
 0x982   : > { %v4844_v39 = vunpack.c.l.b16 %v4302_v48  ;;  %v4922_v50 = vunpack.c.l.b16 %v4503_v34  ;;  %v5252_v61 = vpack.c.b16 %v5251_v1, %v5250_v22  ;;  %v4576_v48 = vpack.c.bf16 %v4146_v4, %v4146_v4 }
 0x983   : > { %v4310_v49 = vpack.c.bf16 %v4294_v31, %v4294_v31 }
 0x984   : > { %v4845_v57 = vpack.c.b16 %v4844_v39, %v4843_v12  ;;  %v5351_v18 = vunpack.c.l.b16 %v4576_v48 }
 0x985   : > { %v4264_v14 = vpop.permute.xlu1 %4263  ;;  %v4254_v0 = vpop.permute.xlu0 %4253 }
 0x986   : > { %v4297_v59 = vsub.f32 %v4201_v60, %v4264_v14  ;;  %7268 = vmatmul.msk.bf16.vlgmr.msrb.gmra.mxu1 %vm1812_vm8, %v4845_v57  ;;  %v4292_v30 = vsub.f32 %v4196_v56, %v4254_v0  ;;  %v4948_v57 = vunpack.c.l.b16 %v4310_v49  ;;  %v5352_v13 = vpack.c.b16 %v5351_v18, %v5350_v9 }
 0x988   : > { %v4313_v16 = vpack.c.bf16 %v4297_v59, %v4297_v59  ;;  %v4308_v63 = vpack.c.bf16 %v4292_v30, %v4292_v30 }
 0x98a   : > { %v4999_v53 = vunpack.c.l.b16 %v4313_v16  ;;  %v4918_v39 = vunpack.c.l.b16 %v4308_v63 }
 0x98c   : > { %v5001_v25 = vpack.c.b16 %v5000_v41, %v4999_v53  ;;  %v4919_v2 = vpack.c.b16 %v4918_v39, %v4917_v40 }
 0x98d   : > { %v4478_v42 = vpop.permute.xlu1 %4477 }
 0x98e   : > { %v4496_v26 = vsub.f32 %v4448_v37, %v4478_v42 }
 0x98f   : > { %7273 = vmatmul.msk.bf16.vlgmr.msrb.gmra.mxu2 %vm1812_vm8, %v4971_v52  ;;  %7274 = vmatmul.msk.bf16.vlgmr.msrb.gmra.mxu3 %vm1812_vm8, %v5001_v25 }
 0x990   : > { %v4504_v27 = vpack.c.bf16 %v4496_v26, %v4496_v26  ;;  %5414 = vmatpush.bf16.msrb.mxu2 %v5402_v32  ;;  %5436 = vmatpush.bf16.msrb.mxu3 %v5402_v32 }
 0x992   : > { %v4923_v23 = vunpack.c.l.b16 %v4504_v27 }
 0x994   : > { %v4924_v36 = vpack.c.b16 %v4923_v23, %v4922_v50 }
 0x995   : > { %v4256_v44 = vpop.permute.xlu1 %4255 }
 0x996   : > { %v4293_v62 = vsub.f32 %v4197_v51, %v4256_v44  ;;  %v4929_v12 = vsel %vm1812_vm8, %v4924_v36, 0  ;;  %v9895_v51 = vld [vmem:[%s10422_s3 + $0x8] sm:$0xff] }
 0x997   : > { %4938 = vmatpush.bf16.xpose.msra.mxu0 %v4929_v12  ;;  %4960 = vmatpush.bf16.xpose.msra.mxu1 %v4929_v12 }
 0x998   : > { %v4309_v3 = vpack.c.bf16 %v4293_v62, %v4293_v62 }
 0x99a   : > { %v4947_v60 = vunpack.c.l.b16 %v4309_v3 }
 0x99c   : > { %v4949_v20 = vpack.c.b16 %v4948_v57, %v4947_v60 }
 0x99e   : > { %7271 = vmatmul.msk.bf16.vlgmr.msra.gmra.mxu0 %vm1812_vm8, %v4919_v2  ;;  %7272 = vmatmul.msk.bf16.vlgmr.msra.gmra.mxu1 %vm1812_vm8, %v4949_v20 }
 0x99f   : > { %5264 = vmatpush.bf16.msrb.mxu0 %v5252_v61  ;;  %5286 = vmatpush.bf16.msrb.mxu1 %v5252_v61 }
 0x9a3   : > { %5364 = vmatpush.bf16.msra.mxu0 %v5352_v13  ;;  %5386 = vmatpush.bf16.msra.mxu1 %v5352_v13 }
 0x9d1   : > { %v4666_v46 = vpop.f32.mrf.mxu2  ;;  %v4690_v59 = vpop.f32.mrf.mxu3 }
 0x9d9   : > { %v4668_v58 = vpop.f32.mrf.mxu2  ;;  %v4692_v28 = vpop.f32.mrf.mxu3 }
 0x9db   : > { %v4608_v14 = vpop.f32.mrf.mxu0  ;;  %v4632_v8 = vpop.f32.mrf.mxu1 }
 0x9e3   : > { %v4610_v47 = vpop.f32.mrf.mxu0  ;;  %v4634_v35 = vpop.f32.mrf.mxu1 }
 0x9eb   : > { %v9860_v16 = vpop.f32.mrf.mxu0  ;;  %v9862_v33 = vpop.f32.mrf.mxu1 }
 0x9f2   : > { %v4782_v43 = vpop.f32.mrf.mxu2  ;;  %v4806_v45 = vpop.f32.mrf.mxu3 }
 0x9f3   : > { %v9864_v41 = vpop.f32.mrf.mxu0  ;;  %v9870_v6 = vpop.f32.mrf.mxu1 }
 0x9fa   : > { %v9866_v15 = vpop.f32.mrf.mxu2  ;;  %v9868_v53 = vpop.f32.mrf.mxu3 }
 0x9fb   : > { %v4836_v29 = vpop.f32.mrf.mxu0 }
 0x9fc   : > { %v4837_v25 = vadd.f32 %v4836_v29, %v4608_v14 }
 0x9fe   : > { %v5019_v37 = vmul.f32 0.25, %v4837_v25 }
 0xa00   : > { %v9878_v52 = vadd.f32 %v9875_v5, %v5019_v37 }
 0xa02   : > { %v4888_v0 = vpop.f32.mrf.mxu2  ;;  %v4910_v42 = vpop.f32.mrf.mxu3  ;;  %v5051_v32 = vsel %vm2271_vm9, %v9878_v52, -inf }
 0xa03   : > { %v4911_v34 = vadd.f32 %v4910_v42, %v4690_v59  ;;  %v4838_v56 = vpop.f32.mrf.mxu0  ;;  %v4858_v26 = vpop.f32.mrf.mxu1  ;;  %5052 = vmax.xlane.f32.xlu1 %v5051_v32  ;;  %v4889_v17 = vadd.f32 %v4888_v0, %v4666_v46 }
 0xa04   : > { %v4859_v54 = vadd.f32 %v4858_v26, %v4632_v8  ;;  %v4839_v55 = vadd.f32 %v4838_v56, %v4610_v47 }
 0xa05   : > { %v5025_v11 = vmul.f32 0.25, %v4911_v34  ;;  %v5023_v50 = vmul.f32 0.25, %v4889_v17 }
 0xa06   : > { %v5021_v30 = vmul.f32 0.25, %v4859_v54  ;;  %v5020_v4 = vmul.f32 0.25, %v4839_v55 }
 0xa07   : > { %v9883_v27 = vadd.f32 %v9875_v5, %v5025_v11  ;;  %v9901_v7 = vadd.f32 %v9875_v5, %v5023_v50 }
 0xa08   : > { %v9886_v1 = vadd.f32 %v9875_v5, %v5021_v30  ;;  %v9898_v61 = vadd.f32 %v9895_v51, %v5020_v4 }
 0xa09   : > { %v5069_v24 = vsel %vm2271_vm9, %v9883_v27, -inf  ;;  %v5063_v57 = vsel %vm2271_vm9, %v9901_v7, -inf }
 0xa0a   : > { %v4912_v31 = vpop.f32.mrf.mxu3  ;;  %5070 = vmax.xlane.f32.xlu2 %v5069_v24  ;;  %v4890_v23 = vpop.f32.mrf.mxu2  ;;  %v5057_v22 = vsel %vm2271_vm9, %v9886_v1, -inf  ;;  %v5054_v10 = vsel %vm2271_vm9, %v9898_v61, -inf }
 0xa0b   : > { %v4891_v63 = vadd.f32 %v4890_v23, %v4668_v58  ;;  %v4860_v36 = vpop.f32.mrf.mxu1  ;;  %5058 = vmax.xlane.f32.xlu0 %v5057_v22  ;;  %v4913_v49 = vadd.f32 %v4912_v31, %v4692_v28 }
 0xa0c   : > { %v4861_v44 = vadd.f32 %v4860_v36, %v4634_v35 }
 0xa0d   : > { %v5024_v48 = vmul.f32 0.25, %v4891_v63  ;;  %v5026_v3 = vmul.f32 0.25, %v4913_v49 }
 0xa0e   : > { %v5022_v12 = vmul.f32 0.25, %v4861_v44 }
 0xa0f   : > { %v9904_v62 = vadd.f32 %v9895_v51, %v5024_v48  ;;  %v9916_v13 = vadd.f32 %v9895_v51, %v5026_v3 }
 0xa10   : > { %v9913_v9 = vadd.f32 %v9895_v51, %v5022_v12 }
 0xa11   : > { %v5066_v39 = vsel %vm2271_vm9, %v9904_v62, -inf  ;;  %v5072_v58 = vsel %vm2271_vm9, %v9916_v13, -inf }
 0xa12   : > { %5055 = vmax.xlane.f32.xlu2 %v5054_v10  ;;  %v4992_v18 = vpop.f32.mrf.mxu2  ;;  %v5014_v40 = vpop.f32.mrf.mxu3  ;;  %5067 = vmax.xlane.f32.xlu1 %v5066_v39  ;;  %v5060_v59 = vsel %vm2271_vm9, %v9913_v9, -inf }
 0xa13   : > { %v4993_v60 = vadd.f32 %v4992_v18, %v4782_v43  ;;  %5064 = vmax.xlane.f32.xlu0 %v5063_v57  ;;  %v5015_v20 = vadd.f32 %v5014_v40, %v4806_v45 }
 0xa15   : > { %v5031_v2 = vmul.f32 0.25, %v4993_v60  ;;  %v5033_v8 = vmul.f32 0.25, %v5015_v20 }
 0xa17   : > { %v9919_v14 = vadd.f32 %v9875_v5, %v5031_v2  ;;  %v9930_v25 = vadd.f32 %v9875_v5, %v5033_v8 }
 0xa19   : > { %v5087_v46 = vsel %vm2271_vm9, %v9919_v14, -inf  ;;  %v5093_v26 = vsel %vm2271_vm9, %v9930_v25, -inf }
 0xa1a   : > { %v4994_v47 = vpop.f32.mrf.mxu2  ;;  %v5016_v35 = vpop.f32.mrf.mxu3  ;;  %5088 = vmax.xlane.f32.xlu2 %v5087_v46  ;;  %5061 = vmax.xlane.f32.xlu1 %v5060_v59 }
 0xa1b   : > { %v4995_v28 = vadd.f32 %v4994_v47, %v9866_v15  ;;  %v5017_v43 = vadd.f32 %v5016_v35, %v9868_v53  ;;  %v4940_v45 = vpop.f32.mrf.mxu0  ;;  %v4962_v29 = vpop.f32.mrf.mxu1  ;;  %5073 = vmax.xlane.f32.xlu0 %v5072_v58 }
 0xa1c   : > { %v4963_v42 = vadd.f32 %v4962_v29, %v9862_v33  ;;  %v4941_v32 = vadd.f32 %v4940_v45, %v9860_v16 }
 0xa1d   : > { %v5032_v37 = vmul.f32 0.25, %v4995_v28  ;;  %v5034_v0 = vmul.f32 0.25, %v5017_v43 }
 0xa1e   : > { %v5029_v15 = vmul.f32 0.25, %v4963_v42  ;;  %v5027_v54 = vmul.f32 0.25, %v4941_v32 }
 0xa1f   : > { %v9935_v34 = vadd.f32 %v9895_v51, %v5032_v37  ;;  %v9938_v56 = vadd.f32 %v9895_v51, %v5034_v0 }
 0xa20   : > { %v9948_v17 = vadd.f32 %v9875_v5, %v5029_v15  ;;  %v9951_v30 = vadd.f32 %v9875_v5, %v5027_v54 }
 0xa21   : > { %v5096_v53 = vsel %vm2271_vm9, %v9938_v56, -inf  ;;  %v5090_v33 = vsel %vm2271_vm9, %v9935_v34, -inf }
 0xa22   : > { %5097 = vmax.xlane.f32.xlu2 %v5096_v53  ;;  %5094 = vmax.xlane.f32.xlu1 %v5093_v26  ;;  %v5081_v31 = vsel %vm2271_vm9, %v9948_v17, -inf  ;;  %v5075_v22 = vsel %vm2271_vm9, %v9951_v30, -inf }
 0xa23   : > { %v4942_v16 = vpop.f32.mrf.mxu0  ;;  %v4964_v11 = vpop.f32.mrf.mxu1  ;;  %5091 = vmax.xlane.f32.xlu0 %v5090_v33 }
 0xa24   : > { %v4943_v55 = vadd.f32 %v4942_v16, %v9864_v41  ;;  %v4965_v24 = vadd.f32 %v4964_v11, %v9870_v6 }
 0xa26   : > { %v5028_v4 = vmul.f32 0.25, %v4943_v55  ;;  %v5030_v23 = vmul.f32 0.25, %v4965_v24 }
 0xa28   : > { %v9955_v50 = vadd.f32 %v9895_v51, %v5028_v4  ;;  %v9964_v5 = vadd.f32 %v9895_v51, %v5030_v23 }
 0xa2a   : > { %5082 = vmax.xlane.f32.xlu2 %v5081_v31  ;;  %v5078_v41 = vsel %vm2271_vm9, %v9955_v50, -inf  ;;  %v5084_v6 = vsel %vm2271_vm9, %v9964_v5, -inf }
 0xa2b   : > { %5079 = vmax.xlane.f32.xlu1 %v5078_v41  ;;  %5076 = vmax.xlane.f32.xlu0 %v5075_v22 }
 0xa33   : > { %5085 = vmax.xlane.f32.xlu0 %v5084_v6 }
 0xa76   : > { %v5053_v63 = vpop.xlane.xlu1 %5052 }
 0xa77   : > { %v5099_v36 = vsub.f32 %v9878_v52, %v5053_v63 }
 0xa79   : > { %v5115_v48 = vmul.f32 1.442695, %v5099_v36 }
 0xa7b   : > { %7863 = vpow2.f32 %v5115_v48 }
 0xa7d   : > { %v5071_v44 = vpop.xlane.xlu2 %5070 }
 0xa7e   : > { %v5105_v49 = vsub.f32 %v9883_v27, %v5071_v44  ;;  %v5059_v12 = vpop.xlane.xlu0 %5058 }
 0xa7f   : > { %v5101_v10 = vsub.f32 %v9886_v1, %v5059_v12 }
 0xa80   : > { %v5127_v39 = vmul.f32 1.442695, %v5105_v49 }
 0xa81   : > { %v9971_v3 = vpop.eup %7863  ;;  %v5119_v51 = vmul.f32 1.442695, %v5101_v10 }
 0xa82   : > { %7865 = vpow2.f32 %v5127_v39  ;;  %v5147_v18 = vsel %vm2271_vm9, %v9971_v3, 0.0 }
 0xa83   : > { %7867 = vpow2.f32 %v5119_v51  ;;  %5148 = vadd.xlane.f32.xlu2 %v5147_v18 }
 0xa85   : > { %v5056_v40 = vpop.xlane.xlu2 %5055  ;;  %v5068_v52 = vpop.xlane.xlu1 %5067 }
 0xa86   : > { %v5100_v57 = vsub.f32 %v9898_v61, %v5056_v40  ;;  %v5104_v60 = vsub.f32 %v9904_v62, %v5068_v52  ;;  %v5065_v27 = vpop.xlane.xlu0 %5064 }
 0xa87   : > { %v5103_v2 = vsub.f32 %v9901_v7, %v5065_v27 }
 0xa88   : > { %v9978_v1 = vpop.eup %7865  ;;  %v5117_v20 = vmul.f32 1.442695, %v5100_v57  ;;  %v5125_v8 = vmul.f32 1.442695, %v5104_v60 }
 0xa89   : > { %v9980_v46 = vpop.eup %7867  ;;  %v5123_v59 = vmul.f32 1.442695, %v5103_v2  ;;  %v5165_v47 = vsel %vm2271_vm9, %v9978_v1, 0.0 }
 0xa8a   : > { %7869 = vpow2.f32 %v5117_v20  ;;  %5166 = vadd.xlane.f32.xlu0 %v5165_v47  ;;  %v5153_v61 = vsel %vm2271_vm9, %v9980_v46, 0.0 }
 0xa8b   : > { %7871 = vpow2.f32 %v5125_v8  ;;  %5154 = vadd.xlane.f32.xlu1 %v5153_v61 }
 0xa8c   : > { %7873 = vpow2.f32 %v5123_v59 }
 0xa8d   : > { %v5089_v62 = vpop.xlane.xlu2 %5088  ;;  %v5062_v7 = vpop.xlane.xlu1 %5061 }
 0xa8e   : > { %v5111_v35 = vsub.f32 %v9919_v14, %v5089_v62  ;;  %v5102_v58 = vsub.f32 %v9913_v9, %v5062_v7  ;;  %v5074_v28 = vpop.xlane.xlu0 %5073 }
 0xa8f   : > { %v5106_v43 = vsub.f32 %v9916_v13, %v5074_v28 }
 0xa90   : > { %v9989_v45 = vpop.eup %7869  ;;  %v5139_v29 = vmul.f32 1.442695, %v5111_v35  ;;  %v5121_v37 = vmul.f32 1.442695, %v5102_v58 }
 0xa91   : > { %v9991_v0 = vpop.eup %7871  ;;  %v5129_v42 = vmul.f32 1.442695, %v5106_v43  ;;  %v5150_v32 = vsel %vm2271_vm9, %v9989_v45, 0.0 }
 0xa92   : > { %v9995_v15 = vpop.eup %7873  ;;  %7875 = vpow2.f32 %v5139_v29  ;;  %v5162_v14 = vsel %vm2271_vm9, %v9991_v0, 0.0  ;;  %5151 = vadd.xlane.f32.xlu0 %v5150_v32 }
 0xa93   : > { %7877 = vpow2.f32 %v5121_v37  ;;  %5163 = vadd.xlane.f32.xlu2 %v5162_v14  ;;  %v5159_v9 = vsel %vm2271_vm9, %v9995_v15, 0.0 }
 0xa94   : > { %7879 = vpow2.f32 %v5129_v42  ;;  %5160 = vadd.xlane.f32.xlu1 %v5159_v9 }
 0xa95   : > { %v5098_v13 = vpop.xlane.xlu2 %5097  ;;  %v5095_v53 = vpop.xlane.xlu1 %5094 }
 0xa96   : > { %v5114_v26 = vsub.f32 %v9938_v56, %v5098_v13  ;;  %v5113_v54 = vsub.f32 %v9930_v25, %v5095_v53  ;;  %v5092_v33 = vpop.xlane.xlu0 %5091 }
 0xa97   : > { %v5112_v16 = vsub.f32 %v9935_v34, %v5092_v33 }
 0xa98   : > { %v10004_v11 = vpop.eup %7875  ;;  %v5145_v55 = vmul.f32 1.442695, %v5114_v26  ;;  %v5143_v4 = vmul.f32 1.442695, %v5113_v54 }
 0xa99   : > { %v10006_v24 = vpop.eup %7877  ;;  %v5141_v31 = vmul.f32 1.442695, %v5112_v16  ;;  %v5183_v23 = vsel %vm2271_vm9, %v10004_v11, 0.0 }
 0xa9a   : > { %v10010_v41 = vpop.eup %7879  ;;  %7881 = vpow2.f32 %v5145_v55  ;;  %v5156_v56 = vsel %vm2271_vm9, %v10006_v24, 0.0  ;;  %5184 = vadd.xlane.f32.xlu0 %v5183_v23 }
 0xa9b   : > { %7883 = vpow2.f32 %v5143_v4  ;;  %5157 = vadd.xlane.f32.xlu2 %v5156_v56  ;;  %v5168_v25 = vsel %vm2271_vm9, %v10010_v41, 0.0 }
 0xa9c   : > { %7885 = vpow2.f32 %v5141_v31  ;;  %5169 = vadd.xlane.f32.xlu1 %v5168_v25 }
 0xa9d   : > { %v5083_v34 = vpop.xlane.xlu2 %5082 }
 0xa9e   : > { %v5109_v22 = vsub.f32 %v9948_v17, %v5083_v34  ;;  %v5080_v6 = vpop.xlane.xlu1 %5079  ;;  %v5077_v63 = vpop.xlane.xlu0 %5076 }
 0xa9f   : > { %v5108_v36 = vsub.f32 %v9955_v50, %v5080_v6  ;;  %v5107_v48 = vsub.f32 %v9951_v30, %v5077_v63 }
 0xaa0   : > { %v10019_v44 = vpop.eup %7881  ;;  %v5135_v49 = vmul.f32 1.442695, %v5109_v22 }
 0xaa1   : > { %v10021_v12 = vpop.eup %7883  ;;  %v5133_v10 = vmul.f32 1.442695, %v5108_v36  ;;  %v5131_v39 = vmul.f32 1.442695, %v5107_v48  ;;  %v5192_v51 = vsel %vm2271_vm9, %v10019_v44, 0.0 }
 0xaa2   : > { %v10025_v18 = vpop.eup %7885  ;;  %7887 = vpow2.f32 %v5135_v49  ;;  %v5189_v17 = vsel %vm2271_vm9, %v10021_v12, 0.0  ;;  %5193 = vadd.xlane.f32.xlu0 %v5192_v51 }
 0xaa3   : > { %7889 = vpow2.f32 %v5133_v10  ;;  %5190 = vadd.xlane.f32.xlu2 %v5189_v17  ;;  %v5186_v30 = vsel %vm2271_vm9, %v10025_v18, 0.0 }
 0xaa4   : > { %7891 = vpow2.f32 %v5131_v39  ;;  %5187 = vadd.xlane.f32.xlu1 %v5186_v30 }
 0xaa6   : > { %v5086_v50 = vpop.xlane.xlu0 %5085 }
 0xaa7   : > { %v5110_v40 = vsub.f32 %v9964_v5, %v5086_v50 }
 0xaa8   : > { %v10032_v52 = vpop.eup %7887 }
 0xaa9   : > { %v10034_v57 = vpop.eup %7889  ;;  %v5137_v60 = vmul.f32 1.442695, %v5110_v40  ;;  %v5177_v27 = vsel %vm2271_vm9, %v10032_v52, 0.0 }
 0xaaa   : > { %v10038_v2 = vpop.eup %7891  ;;  %5178 = vadd.xlane.f32.xlu0 %v5177_v27  ;;  %v5174_v20 = vsel %vm2271_vm9, %v10034_v57, 0.0 }
 0xaab   : > { %7893 = vpow2.f32 %v5137_v60  ;;  %5175 = vadd.xlane.f32.xlu2 %v5174_v20  ;;  %v5171_v8 = vsel %vm2271_vm9, %v10038_v2, 0.0 }
 0xaac   : > { %5172 = vadd.xlane.f32.xlu1 %v5171_v8 }
 0xab1   : > { %v10044_v5 = vpop.eup %7893 }
 0xab2   : > { %v5180_v59 = vsel %vm2271_vm9, %v10044_v5, 0.0 }
 0xab4   : > { %5181 = vadd.xlane.f32.xlu1 %v5180_v59 }
 0xaf6   : > { %v5149_v47 = vpop.xlane.xlu2 %5148 }
 0xaf7   : > { %7895 = vrcp.f32 %v5149_v47 }
 0xafd   : > { %v5167_v61 = vpop.xlane.xlu0 %5166  ;;  %v7896_v35 = vpop.eup %7895 }
 0xafe   : > { %v5155_v62 = vpop.xlane.xlu1 %5154  ;;  %v5211_v43 = vmul.f32 %v7896_v35, %v9971_v3 }
 0xb00   : > { %v5227_v42 = vpack.c.bf16 %v5211_v43, %v5211_v43 }
 0xb02   : > { %v5245_v4 = vunpack.c.l.b16 %v5227_v42 }
 0xb05   : > { %v5152_v7 = vpop.xlane.xlu0 %5151 }
 0xb06   : > { %v5164_v58 = vpop.xlane.xlu2 %5163  ;;  %7897 = vrcp.f32 %v5152_v7 }
 0xb07   : > { %7899 = vrcp.f32 %v5164_v58  ;;  %v5161_v28 = vpop.xlane.xlu1 %5160 }
 0xb08   : > { %7901 = vrcp.f32 %v5161_v28 }
 0xb09   : > { %7903 = vrcp.f32 %v5155_v62 }
 0xb0a   : > { %7905 = vrcp.f32 %v5167_v61 }
 0xb0c   : > { %v7898_v29 = vpop.eup %7897 }
 0xb0d   : > { %v7900_v37 = vpop.eup %7899  ;;  %v5212_v32 = vmul.f32 %v7898_v29, %v9989_v45  ;;  %v5185_v14 = vpop.xlane.xlu0 %5184 }
 0xb0e   : > { %v7902_v9 = vpop.eup %7901  ;;  %v5216_v13 = vmul.f32 %v7900_v37, %v9991_v0  ;;  %v5158_v53 = vpop.xlane.xlu2 %5157 }
 0xb0f   : > { %v7904_v26 = vpop.eup %7903  ;;  %v5228_v54 = vpack.c.bf16 %v5212_v32, %v5212_v32  ;;  %v5215_v33 = vmul.f32 %v7902_v9, %v9995_v15  ;;  %7907 = vrcp.f32 %v5158_v53  ;;  %v5170_v16 = vpop.xlane.xlu1 %5169 }
 0xb10   : > { %v7906_v55 = vpop.eup %7905  ;;  %v5232_v3 = vpack.c.bf16 %v5216_v13, %v5216_v13  ;;  %7909 = vrcp.f32 %v5170_v16  ;;  %v5213_v56 = vmul.f32 %v7904_v26, %v9980_v46 }
 0xb11   : > { %v5246_v31 = vunpack.c.l.b16 %v5228_v54  ;;  %v5231_v23 = vpack.c.bf16 %v5215_v33, %v5215_v33  ;;  %7911 = vrcp.f32 %v5185_v14  ;;  %v5217_v45 = vmul.f32 %v7906_v55, %v9978_v1 }
 0xb12   : > { %v5296_v25 = vunpack.c.l.b16 %v5232_v3  ;;  %v5229_v36 = vpack.c.bf16 %v5213_v56, %v5213_v56 }
 0xb13   : > { %v5247_v0 = vpack.c.b16 %v5246_v31, %v5245_v4  ;;  %v5295_v34 = vunpack.c.l.b16 %v5231_v23  ;;  %v5233_v10 = vpack.c.bf16 %v5217_v45, %v5217_v45 }
 0xb14   : > { %v5273_v30 = vunpack.c.l.b16 %v5229_v36 }
 0xb15   : > { %v7908_v22 = vpop.eup %7907  ;;  %v5297_v6 = vpack.c.b16 %v5296_v25, %v5295_v34  ;;  %7275 = vmatmul.msk.bf16.vlgmr.msrb.gmra.mxu0 %vm2271_vm9, %v5247_v0  ;;  %v5194_v15 = vpop.xlane.xlu0 %5193  ;;  %v5323_v40 = vunpack.c.l.b16 %v5233_v10  ;;  %v7668_v34 = vld [vmem:[%s10427_s8 + $0x48] sm:$0xff] }
 0xb16   : > { %v7910_v63 = vpop.eup %7909  ;;  %v5214_v48 = vmul.f32 %v7908_v22, %v10006_v24  ;;  %v5191_v49 = vpop.xlane.xlu2 %5190  ;;  %7913 = vrcp.f32 %v5194_v15  ;;  %v7670_v22 = vld [vmem:[%s10427_s8 + $0x58] sm:$0xff]  ;;  %v7673_v15 = vld [vmem:[%s10427_s8 + $0x70] sm:$0xff] }
 0xb17   : > { %v5218_v46 = vmul.f32 %v7910_v63, %v10010_v41  ;;  %7915 = vrcp.f32 %v5191_v49  ;;  %7277 = vmatmul.msk.bf16.vlgmr.msra.gmra.mxu2 %vm2271_vm9, %v5297_v6  ;;  %v5188_v1 = vpop.xlane.xlu1 %5187  ;;  %v7912_v39 = vpop.eup %7911  ;;  %v7671_v63 = vld [vmem:[%s10427_s8 + $0x60] sm:$0xff] }
 0xb18   : > { %v5230_v51 = vpack.c.bf16 %v5214_v48, %v5214_v48  ;;  %7917 = vrcp.f32 %v5188_v1  ;;  %v5223_v60 = vmul.f32 %v7912_v39, %v10004_v11 }
 0xb19   : > { %v5234_v17 = vpack.c.bf16 %v5218_v46, %v5218_v46 }
 0xb1a   : > { %v5274_v50 = vunpack.c.l.b16 %v5230_v51  ;;  %v5239_v61 = vpack.c.bf16 %v5223_v60, %v5223_v60  ;;  %v7674_v51 = vld [vmem:[%s10427_s8 + $0x78] sm:$0xff] }
 0xb1b   : > { %v5324_v27 = vunpack.c.l.b16 %v5234_v17 }
 0xb1c   : > { %v7914_v24 = vpop.eup %7913  ;;  %v5275_v20 = vpack.c.b16 %v5274_v50, %v5273_v30  ;;  %v5395_v43 = vunpack.c.l.b16 %v5239_v61  ;;  %v7672_v30 = vld [vmem:[%s10427_s8 + $0x68] sm:$0xff] }
 0xb1d   : > { %v7916_v8 = vpop.eup %7915  ;;  %v5325_v59 = vpack.c.b16 %v5324_v27, %v5323_v40  ;;  %v5179_v7 = vpop.xlane.xlu0 %5178  ;;  %v5226_v58 = vmul.f32 %v7914_v24, %v10019_v44 }
 0xb1e   : > { %v7918_v47 = vpop.eup %7917  ;;  %7276 = vmatmul.msk.bf16.vlgmr.msrb.gmra.mxu1 %vm2271_vm9, %v5275_v20  ;;  %v5176_v41 = vpop.xlane.xlu2 %5175  ;;  %v5225_v11 = vmul.f32 %v7916_v8, %v10021_v12 }
 0xb1f   : > { %v5224_v62 = vmul.f32 %v7918_v47, %v10025_v18  ;;  %7919 = vrcp.f32 %v5176_v41  ;;  %v5173_v35 = vpop.xlane.xlu1 %5172  ;;  %7278 = vmatmul.msk.bf16.vlgmr.msra.gmra.mxu3 %vm2271_vm9, %v5325_v59  ;;  %v5242_v32 = vpack.c.bf16 %v5226_v58, %v5226_v58  ;;  %5508 = vmatpush.bf16.msrb.mxu1 %v7668_v34 }
 0xb20   : > { %7921 = vrcp.f32 %v5173_v35  ;;  %v5241_v42 = vpack.c.bf16 %v5225_v11, %v5225_v11  ;;  %5564 = vmatpush.bf16.msra.mxu3 %v7670_v22 }
 0xb21   : > { %v5240_v28 = vpack.c.bf16 %v5224_v62, %v5224_v62  ;;  %7923 = vrcp.f32 %v5179_v7  ;;  %v5424_v54 = vunpack.c.l.b16 %v5242_v32 }
 0xb22   : > { %v5423_v44 = vunpack.c.l.b16 %v5241_v42 }
 0xb23   : > { %v5396_v29 = vunpack.c.l.b16 %v5240_v28 }
 0xb24   : > { %v5425_v4 = vpack.c.b16 %v5424_v54, %v5423_v44 }
 0xb25   : > { %v7920_v37 = vpop.eup %7919  ;;  %v5397_v14 = vpack.c.b16 %v5396_v29, %v5395_v43 }
 0xb26   : > { %v7922_v9 = vpop.eup %7921  ;;  %v5220_v18 = vmul.f32 %v7920_v37, %v10034_v57 }
 0xb27   : > { %v5219_v13 = vmul.f32 %v7922_v9, %v10038_v2  ;;  %v5182_v53 = vpop.xlane.xlu1 %5181  ;;  %7281 = vmatmul.msk.bf16.vlgmr.msrb.gmra.mxu2 %vm2271_vm9, %v5397_v14  ;;  %v7924_v26 = vpop.eup %7923 }
 0xb28   : > { %v5236_v12 = vpack.c.bf16 %v5220_v18, %v5220_v18  ;;  %7925 = vrcp.f32 %v5182_v53  ;;  %v5221_v55 = vmul.f32 %v7924_v26, %v10032_v52  ;;  %v7667_v52 = vld [vmem:[%s10427_s8 + $0x40] sm:$0xff] }
 0xb29   : > { %v5235_v33 = vpack.c.bf16 %v5219_v13, %v5219_v13  ;;  %5480 = vmatpush.bf16.msrb.mxu0 %v7667_v52 }
 0xb2a   : > { %v5346_v16 = vunpack.c.l.b16 %v5236_v12  ;;  %v5237_v56 = vpack.c.bf16 %v5221_v55, %v5221_v55 }
 0xb2b   : > { %v5345_v3 = vunpack.c.l.b16 %v5235_v33 }
 0xb2c   : > { %v5373_v45 = vunpack.c.l.b16 %v5237_v56 }
 0xb2d   : > { %v5347_v31 = vpack.c.b16 %v5346_v16, %v5345_v3 }
 0xb2e   : > { %v7926_v23 = vpop.eup %7925 }
 0xb2f   : > { %v5222_v57 = vmul.f32 %v7926_v23, %v10044_v5  ;;  %7279 = vmatmul.msk.bf16.vlgmr.msra.gmra.mxu0 %vm2271_vm9, %v5347_v31  ;;  %7282 = vmatmul.msk.bf16.vlgmr.msrb.gmra.mxu3 %vm2271_vm9, %v5425_v4  ;;  %v7669_v5 = vld [vmem:[%s10427_s8 + $0x50] sm:$0xff] }
 0xb30   : > { %5536 = vmatpush.bf16.msra.mxu2 %v7669_v5  ;;  %5592 = vmatpush.bf16.msra.mxu0 %v7671_v63 }
 0xb31   : > { %v5238_v2 = vpack.c.bf16 %v5222_v57, %v5222_v57  ;;  %5676 = vmatpush.bf16.msrb.mxu3 %v7674_v51 }
 0xb33   : > { %v5374_v25 = vunpack.c.l.b16 %v5238_v2 }
 0xb34   : > { %5648 = vmatpush.bf16.msrb.mxu2 %v7673_v15 }
 0xb35   : > { %v5375_v0 = vpack.c.b16 %v5374_v25, %v5373_v45 }
 0xb37   : > { %7280 = vmatmul.msk.bf16.vlgmr.msra.gmra.mxu1 %vm2271_vm9, %v5375_v0 }
 0xb38   : > { %5620 = vmatpush.bf16.msra.mxu1 %v7672_v30 }
 0xb92   : > { %v5266_v6 = vpop.f32.mrf.mxu0 }
 0xb93   : > { %v5443_v36 = vpack.c.bf16 %v5266_v6, %v5266_v6 }
 0xb95   : > { %v5461_v1 = vunpack.c.l.b16 %v5443_v36 }
 0xb9a   : > { %v5268_v48 = vpop.f32.mrf.mxu0  ;;  %v5316_v49 = vpop.f32.mrf.mxu2 }
 0xb9b   : > { %v5444_v10 = vpack.c.bf16 %v5268_v48, %v5268_v48  ;;  %v5288_v46 = vpop.f32.mrf.mxu1  ;;  %v5447_v50 = vpack.c.bf16 %v5316_v49, %v5316_v49 }
 0xb9c   : > { %v5445_v40 = vpack.c.bf16 %v5288_v46, %v5288_v46 }
 0xb9d   : > { %v5462_v39 = vunpack.c.l.b16 %v5444_v10  ;;  %v5517_v59 = vunpack.c.l.b16 %v5447_v50 }
 0xb9e   : > { %v5489_v41 = vunpack.c.l.b16 %v5445_v40 }
 0xb9f   : > { %v5463_v17 = vpack.c.b16 %v5462_v39, %v5461_v1 }
 0xba1   : > { %7287 = vmatmul.msk.bf16.vlgmr.msrb.gmra.mxu0 %vm2271_vm9, %v5463_v17 }
 0xba2   : > { %v5318_v60 = vpop.f32.mrf.mxu2  ;;  %v5338_v27 = vpop.f32.mrf.mxu3 }
 0xba3   : > { %v5290_v24 = vpop.f32.mrf.mxu1  ;;  %v5448_v20 = vpack.c.bf16 %v5318_v60, %v5318_v60  ;;  %v5449_v35 = vpack.c.bf16 %v5338_v27, %v5338_v27 }
 0xba4   : > { %v5446_v8 = vpack.c.bf16 %v5290_v24, %v5290_v24 }
 0xba5   : > { %v5518_v47 = vunpack.c.l.b16 %v5448_v20  ;;  %v5545_v29 = vunpack.c.l.b16 %v5449_v35 }
 0xba6   : > { %v5490_v61 = vunpack.c.l.b16 %v5446_v8 }
 0xba7   : > { %v5519_v62 = vpack.c.b16 %v5518_v47, %v5517_v59 }
 0xba8   : > { %v5491_v7 = vpack.c.b16 %v5490_v61, %v5489_v41 }
 0xba9   : > { %7297 = vmatmul.msk.bf16.vlgmr.msra.gmra.mxu2 %vm2271_vm9, %v5519_v62 }
 0xbaa   : > { %7292 = vmatmul.msk.bf16.vlgmr.msrb.gmra.mxu1 %vm2271_vm9, %v5491_v7  ;;  %v5340_v11 = vpop.f32.mrf.mxu3  ;;  %v5416_v58 = vpop.f32.mrf.mxu2 }
 0xbab   : > { %v5450_v28 = vpack.c.bf16 %v5340_v11, %v5340_v11  ;;  %v5455_v32 = vpack.c.bf16 %v5416_v58, %v5416_v58 }
 0xbac   : > { %v5366_v43 = vpop.f32.mrf.mxu0 }
 0xbad   : > { %v5546_v37 = vunpack.c.l.b16 %v5450_v28  ;;  %v5451_v18 = vpack.c.bf16 %v5366_v43, %v5366_v43  ;;  %v5629_v12 = vunpack.c.l.b16 %v5455_v32 }
 0xbaf   : > { %v5547_v42 = vpack.c.b16 %v5546_v37, %v5545_v29  ;;  %v5573_v33 = vunpack.c.l.b16 %v5451_v18 }
 0xbb1   : > { %7302 = vmatmul.msk.bf16.vlgmr.msra.gmra.mxu3 %vm2271_vm9, %v5547_v42 }
 0xbb2   : > { %v5418_v14 = vpop.f32.mrf.mxu2  ;;  %v5438_v9 = vpop.f32.mrf.mxu3 }
 0xbb3   : > { %v5456_v13 = vpack.c.bf16 %v5418_v14, %v5418_v14  ;;  %v5457_v3 = vpack.c.bf16 %v5438_v9, %v5438_v9 }
 0xbb4   : > { %v5368_v53 = vpop.f32.mrf.mxu0  ;;  %v5388_v26 = vpop.f32.mrf.mxu1 }
 0xbb5   : > { %v5630_v44 = vunpack.c.l.b16 %v5456_v13  ;;  %v5452_v54 = vpack.c.bf16 %v5368_v53, %v5368_v53  ;;  %v5453_v23 = vpack.c.bf16 %v5388_v26, %v5388_v26  ;;  %v5657_v2 = vunpack.c.l.b16 %v5457_v3 }
 0xbb7   : > { %v5631_v16 = vpack.c.b16 %v5630_v44, %v5629_v12  ;;  %v5574_v55 = vunpack.c.l.b16 %v5452_v54  ;;  %v5601_v0 = vunpack.c.l.b16 %v5453_v23  ;;  %v7349_v23 = vld [vmem:[%s10429_s10 + $0x70] sm:$0xf] }
 0xbb9   : > { %v5575_v4 = vpack.c.b16 %v5574_v55, %v5573_v33  ;;  %7317 = vmatmul.msk.bf16.vlgmr.msrb.gmra.mxu2 %vm2271_vm9, %v5631_v16 }
 0xbba   : > { %v5440_v31 = vpop.f32.mrf.mxu3 }
 0xbbb   : > { %v5458_v56 = vpack.c.bf16 %v5440_v31, %v5440_v31  ;;  %7307 = vmatmul.msk.bf16.vlgmr.msra.gmra.mxu0 %vm2271_vm9, %v5575_v4 }
 0xbbc   : > { %v5390_v57 = vpop.f32.mrf.mxu1 }
 0xbbd   : > { %v5658_v45 = vunpack.c.l.b16 %v5458_v56  ;;  %v5454_v25 = vpack.c.bf16 %v5390_v57, %v5390_v57  ;;  %v7682_v56 = vld [vmem:[%s10429_s10 + $0x74] sm:$0xf0]  ;;  %v7681_v57 = vld [vmem:[%s10429_s10 + $0x74] sm:$0xf] }
 0xbbf   : > { %v5659_v52 = vpack.c.b16 %v5658_v45, %v5657_v2  ;;  %v5602_v34 = vunpack.c.l.b16 %v5454_v25  ;;  %v7351_v2 = vld [vmem:[%s10429_s10 + $0x78] sm:$0xf0]  ;;  %v7383_v45 = vld [vmem:[%s10430_s11 + $0x70] sm:$0xf]  ;;  %v7690_v25 = vld [vmem:[%s10430_s11 + $0x74] sm:$0xf0] }
 0xbc1   : > { %v5603_v5 = vpack.c.b16 %v5602_v34, %v5601_v0  ;;  %7322 = vmatmul.msk.bf16.vlgmr.msrb.gmra.mxu3 %vm2271_vm9, %v5659_v52  ;;  %v7354_v0 = vor.u32 %v7681_v57, %v7351_v2  ;;  %v7384_v52 = vor.u32 %v7690_v25, %v7383_v45  ;;  %v7689_v34 = vld [vmem:[%s10430_s11 + $0x74] sm:$0xf]  ;;  %v7767_v25 = vld [vmem:[%s10428_s9 + $0x1] ss:$0 sm:$0xff] }
 0xbc3   : > { %7312 = vmatmul.msk.bf16.vlgmr.msra.gmra.mxu1 %vm2271_vm9, %v5603_v5  ;;  %v7385_v5 = vld [vmem:[%s10430_s11 + $0x78] sm:$0xf0]  ;;  %5870 = vmatpush.bf16.msra.mxu2 %v7384_v52 }
 0xbc4   : > { %5816 = vmatpush.bf16.msrb.mxu1 %v7354_v0 }
 0xc1e   : > { %v5482_v22 = vpop.f32.mrf.mxu0 }
 0xc1f   : > { %v5683_v1 = vsel %vm727_vm0, %v5482_v22, 0.0  ;;  %v7388_v22 = vor.u32 %v7689_v34, %v7385_v5 }
 0xc21   : > { %5884 = vmatpush.bf16.msra.mxu3 %v7388_v22 }
 0xc26   : > { %v5484_v63 = vpop.f32.mrf.mxu0 }
 0xc27   : > { %v5510_v15 = vpop.f32.mrf.mxu1  ;;  %v5698_v59 = vsel %vm727_vm0, %v5484_v63, 0.0  ;;  %v7679_v63 = vld [vmem:[%s10429_s10 + $0x64] sm:$0xf] }
 0xc28   : > { %v5684_v49 = vsel %vm727_vm0, %v5510_v15, 0.0  ;;  %v7680_v15 = vld [vmem:[%s10429_s10 + $0x64] sm:$0xf0] }
 0xc29   : > { %v5685_v51 = vadd.f32 %v5684_v49, %v5683_v1  ;;  %v7375_v49 = vld [vmem:[%s10430_s11 + $0x60] sm:$0xf] }
 0xc2c   : > { %v5538_v6 = vpop.f32.mrf.mxu2 }
 0xc2d   : > { %v5686_v39 = vsel %vm727_vm0, %v5538_v6, 0.0  ;;  %v7341_v6 = vld [vmem:[%s10429_s10 + $0x60] sm:$0xf] }
 0xc2e   : > { %v5687_v30 = vadd.f32 %v5686_v39, %v5685_v51  ;;  %v7687_v39 = vld [vmem:[%s10430_s11 + $0x64] sm:$0xf]  ;;  %v7377_v51 = vld [vmem:[%s10430_s11 + $0x68] sm:$0xf0] }
 0xc2f   : > { %v5512_v10 = vpop.f32.mrf.mxu1 }
 0xc30   : > { %v5699_v24 = vsel %vm727_vm0, %v5512_v10, 0.0  ;;  %v7688_v10 = vld [vmem:[%s10430_s11 + $0x64] sm:$0xf0] }
 0xc31   : > { %v5700_v61 = vadd.f32 %v5699_v24, %v5698_v59  ;;  %v7376_v1 = vor.u32 %v7688_v10, %v7375_v49  ;;  %v7367_v24 = vld [vmem:[%s10430_s11 + $0x50] sm:$0xf]  ;;  %v7696_v49 = vld [vmem:[%s10431_s12 + $0xa8] sm:$0xff] }
 0xc32   : > { %v7704_v10 = vld [vmem:[%s10431_s12 + $0xe8] sm:$0xff] }
 0xc33   : > { %5871 = vmatpush.bf16.msra.mxu2 %v7376_v1  ;;  %v7703_v1 = vld [vmem:[%s10431_s12 + $0xe0] sm:$0xff] }
 0xc34   : > { %v5540_v36 = vpop.f32.mrf.mxu2  ;;  %v5566_v48 = vpop.f32.mrf.mxu3 }
 0xc35   : > { %v5688_v17 = vsel %vm727_vm0, %v5566_v48, 0.0  ;;  %v5701_v47 = vsel %vm727_vm0, %v5540_v36, 0.0  ;;  %v7342_v36 = vor.u32 %v7680_v15, %v7341_v6  ;;  %v7343_v48 = vld [vmem:[%s10429_s10 + $0x68] sm:$0xf0]  ;;  %v7698_v15 = vld [vmem:[%s10431_s12 + $0xb8] sm:$0xff] }
 0xc36   : > { %v5689_v60 = vadd.f32 %v5688_v17, %v5687_v30  ;;  %v5702_v58 = vadd.f32 %v5701_v47, %v5700_v61  ;;  %v7380_v17 = vor.u32 %v7687_v39, %v7377_v51  ;;  %v7333_v30 = vld [vmem:[%s10429_s10 + $0x50] sm:$0xf]  ;;  %v7685_v47 = vld [vmem:[%s10430_s11 + $0x54] sm:$0xf]  ;;  %v7694_v39 = vld [vmem:[%s10431_s12 + $0x98] sm:$0xff] }
 0xc37   : > { %v7702_v51 = vld [vmem:[%s10431_s12 + $0xd8] sm:$0xff] }
 0xc38   : > { %v5594_v46 = vpop.f32.mrf.mxu0  ;;  %5885 = vmatpush.bf16.msra.mxu3 %v7380_v17 }
 0xc39   : > { %v5690_v40 = vsel %vm727_vm0, %v5594_v46, 0.0  ;;  %v7346_v46 = vor.u32 %v7679_v63, %v7343_v48  ;;  %v7706_v63 = vld [vmem:[%s10431_s12 + $0xf8] sm:$0xff]  ;;  %v7705_v48 = vld [vmem:[%s10431_s12 + $0xf0] sm:$0xff] }
 0xc3a   : > { %v5691_v20 = vadd.f32 %v5690_v40, %v5689_v60  ;;  %v7677_v40 = vld [vmem:[%s10429_s10 + $0x54] sm:$0xf] }
 0xc3b   : > { %5817 = vmatpush.bf16.msrb.mxu1 %v7346_v46  ;;  %v7695_v46 = vld [vmem:[%s10431_s12 + $0xa0] sm:$0xff] }
 0xc3c   : > { %v5568_v50 = vpop.f32.mrf.mxu3  ;;  %v5650_v27 = vpop.f32.mrf.mxu2 }
 0xc3d   : > { %v5703_v35 = vsel %vm727_vm0, %v5568_v50, 0.0  ;;  %v5694_v11 = vsel %vm727_vm0, %v5650_v27, 0.0  ;;  %v7678_v50 = vld [vmem:[%s10429_s10 + $0x54] sm:$0xf0]  ;;  %v7335_v27 = vld [vmem:[%s10429_s10 + $0x58] sm:$0xf0] }
 0xc3e   : > { %v5704_v42 = vadd.f32 %v5703_v35, %v5702_v58  ;;  %v7334_v60 = vor.u32 %v7678_v50, %v7333_v30  ;;  %v7676_v35 = vld [vmem:[%s10429_s10 + $0x44] sm:$0xf0] }
 0xc40   : > { %v5622_v8 = vpop.f32.mrf.mxu1  ;;  %v5596_v62 = vpop.f32.mrf.mxu0 }
 0xc41   : > { %v5692_v41 = vsel %vm727_vm0, %v5622_v8, 0.0  ;;  %v5705_v29 = vsel %vm727_vm0, %v5596_v62, 0.0  ;;  %v7338_v8 = vor.u32 %v7677_v40, %v7335_v27  ;;  %v7701_v27 = vld [vmem:[%s10431_s12 + $0xd0] sm:$0xff] }
 0xc42   : > { %v5693_v7 = vadd.f32 %v5692_v41, %v5691_v20  ;;  %v5706_v14 = vadd.f32 %v5705_v29, %v5704_v42  ;;  %v7686_v20 = vld [vmem:[%s10430_s11 + $0x54] sm:$0xf0]  ;;  %v7369_v41 = vld [vmem:[%s10430_s11 + $0x58] sm:$0xf0]  ;;  %v7359_v29 = vld [vmem:[%s10430_s11 + $0x40] sm:$0xf] }
 0xc43   : > { %v7368_v59 = vor.u32 %v7686_v20, %v7367_v24  ;;  %v7372_v61 = vor.u32 %v7685_v47, %v7369_v41  ;;  %5818 = vmatpush.bf16.msrb.mxu1 %v7338_v8  ;;  %v7692_v24 = vld [vmem:[%s10431_s12 + $0x88] sm:$0xff] }
 0xc44   : > { %v5678_v28 = vpop.f32.mrf.mxu3  ;;  %v5695_v43 = vadd.f32 %v5694_v11, %v5693_v7  ;;  %v5652_v9 = vpop.f32.mrf.mxu2  ;;  %v7325_v7 = vld [vmem:[%s10429_s10 + $0x40] sm:$0xf]  ;;  %v7675_v11 = vld [vmem:[%s10429_s10 + $0x44] sm:$0xf]  ;;  %v7700_v20 = vld [vmem:[%s10431_s12 + $0xc8] sm:$0xff] }
 0xc45   : > { %v5696_v37 = vsel %vm727_vm0, %v5678_v28, 0.0  ;;  %v5709_v44 = vsel %vm727_vm0, %v5652_v9, 0.0  ;;  %5872 = vmatpush.bf16.msra.mxu2 %v7368_v59  ;;  %5886 = vmatpush.bf16.msra.mxu3 %v7372_v61  ;;  %v7326_v28 = vor.u32 %v7676_v35, %v7325_v7  ;;  %v7361_v9 = vld [vmem:[%s10430_s11 + $0x48] sm:$0xf0]  ;;  %v7691_v35 = vld [vmem:[%s10431_s12 + $0x80] sm:$0xff] }
 0xc46   : > { %v5697_v32 = vadd.f32 %v5696_v37, %v5695_v43  ;;  %v7327_v43 = vld [vmem:[%s10429_s10 + $0x48] sm:$0xf0]  ;;  %v7684_v37 = vld [vmem:[%s10430_s11 + $0x44] sm:$0xf0] }
 0xc47   : > { %v7330_v42 = vor.u32 %v7675_v11, %v7327_v43  ;;  %v7699_v11 = vld [vmem:[%s10431_s12 + $0xc0] sm:$0xff] }
 0xc48   : > { %v10118_v18 = vadd.f32 %v5697_v32, %v9238_v19  ;;  %v5624_v13 = vpop.f32.mrf.mxu1  ;;  %v7360_v32 = vor.u32 %v7684_v37, %v7359_v29 }
 0xc49   : > { %v5707_v53 = vsel %vm727_vm0, %v5624_v13, 0.0  ;;  %5819 = vmatpush.bf16.msrb.mxu1 %v7330_v42 }
 0xc4a   : > { %v5708_v26 = vadd.f32 %v5707_v53, %v5706_v14  ;;  %v5715_v12 = vmul.f32 %v10118_v18, %v10118_v18  ;;  %v7683_v14 = vld [vmem:[%s10430_s11 + $0x44] sm:$0xf]  ;;  %5873 = vmatpush.bf16.msra.mxu2 %v7360_v32 }
 0xc4b   : > { %v7364_v53 = vor.u32 %v7683_v14, %v7361_v9 }
 0xc4c   : > { %v5680_v54 = vpop.f32.mrf.mxu3  ;;  %v5710_v33 = vadd.f32 %v5709_v44, %v5708_v26  ;;  %v5717_v16 = vsel %vm727_vm0, %v5715_v12, 0.0 }
 0xc4d   : > { %v5711_v55 = vsel %vm727_vm0, %v5680_v54, 0.0  ;;  %5718 = vadd.xlane.f32.xlu2 %v5717_v16  ;;  %5887 = vmatpush.bf16.msra.mxu3 %v7364_v53 }
 0xc4e   : > { %v5712_v3 = vadd.f32 %v5711_v55, %v5710_v33  ;;  %6090 = vmatpush.bf16.msra.mxu1 %v7706_v63 }
 0xc50   : > { %v10127_v19 = vadd.f32 %v5712_v3, %v9244_v38  ;;  %v7350_v38 = vor.u32 %v7682_v56, %v7349_v23 }
 0xc52   : > { %v5716_v4 = vmul.f32 %v10127_v19, %v10127_v19  ;;  %5802 = vmatpush.bf16.msrb.mxu0 %v7350_v38  ;;  %6091 = vmatpush.bf16.msra.mxu1 %v7705_v48 }
 0xc54   : > { %v5720_v31 = vsel %vm727_vm0, %v5716_v4, 0.0 }
 0xc55   : > { %5721 = vadd.xlane.f32.xlu0 %v5720_v31 }
 0xc56   : > { %5803 = vmatpush.bf16.msrb.mxu0 %v7342_v36  ;;  %v7697_v36 = vld [vmem:[%s10431_s12 + $0xb0] sm:$0xff]  ;;  %6092 = vmatpush.bf16.msra.mxu1 %v7704_v10 }
 0xc5a   : > { %5804 = vmatpush.bf16.msrb.mxu0 %v7334_v60  ;;  %6093 = vmatpush.bf16.msra.mxu1 %v7703_v1  ;;  %v7693_v60 = vld [vmem:[%s10431_s12 + $0x90] sm:$0xff] }
 0xc5e   : > { %5805 = vmatpush.bf16.msrb.mxu0 %v7326_v28  ;;  %6094 = vmatpush.bf16.msra.mxu1 %v7702_v51 }
 0xc62   : > { %6076 = vmatpush.bf16.msra.mxu0 %v7698_v15  ;;  %6095 = vmatpush.bf16.msra.mxu1 %v7701_v27 }
 0xc66   : > { %6077 = vmatpush.bf16.msra.mxu0 %v7697_v36  ;;  %6096 = vmatpush.bf16.msra.mxu1 %v7700_v20 }
 0xc6a   : > { %6078 = vmatpush.bf16.msra.mxu0 %v7696_v49  ;;  %6097 = vmatpush.bf16.msra.mxu1 %v7699_v11 }
 0xc6e   : > { %6079 = vmatpush.bf16.msra.mxu0 %v7695_v46 }
 0xc72   : > { %6080 = vmatpush.bf16.msra.mxu0 %v7694_v39 }
 0xc76   : > { %6081 = vmatpush.bf16.msra.mxu0 %v7693_v60 }
 0xc7a   : > { %6082 = vmatpush.bf16.msra.mxu0 %v7692_v24 }
 0xc7e   : > { %6083 = vmatpush.bf16.msra.mxu0 %v7691_v35 }
 0xcc0   : > { %v5719_v62 = vpop.xlane.xlu2 %5718 }
 0xcc1   : > { %v5723_v58 = vmul.f32 %v5719_v62, %v8200_v21 }
 0xcc3   : > { %v5725_v13 = vadd.f32 1.1920929e-07, %v5723_v58 }
 0xcc5   : > { %7927 = vrsqrt.f32 %v5725_v13  ;;  %vm5733_vm9 = vweird.f32 %v5725_v13 }
 0xcc8   : > { %v5722_v26 = vpop.xlane.xlu0 %5721 }
 0xcc9   : > { %v5724_v12 = vmul.f32 %v5722_v26, %v8200_v21 }
 0xccb   : > { %v7928_v44 = vpop.eup %7927  ;;  %v5726_v54 = vadd.f32 1.1920929e-07, %v5724_v12 }
 0xccc   : > { %v5728_v33 = vmul.f32 %v7928_v44, %v5725_v13  ;;  %vm5734_vm8 = vweird.f32 %v7928_v44 }
 0xccd   : > { %7929 = vrsqrt.f32 %v5726_v54  ;;  %vm5735_vm12 = vmor %vm5733_vm9, %vm5734_vm8  ;;  %vm5743_vm14 = vweird.f32 %v5726_v54 }
 0xcce   : > { %v5729_v16 = vmul.f32 %v7928_v44, %v5728_v33 }
 0xcd0   : > { %v5730_v55 = vmul.f32 0.5, %v5729_v16 }
 0xcd2   : > { %v5731_v3 = vsub.f32 1.5, %v5730_v55 }
 0xcd3   : > { %v7930_v4 = vpop.eup %7929 }
 0xcd4   : > { %v5738_v31 = vmul.f32 %v7930_v4, %v5726_v54  ;;  %v5732_v23 = vmul.f32 %v7928_v44, %v5731_v3  ;;  %vm5744_vm13 = vweird.f32 %v7930_v4  ;;  %v7711_v3 = vld [vmem:[%s10433_s14 + $0x24] sm:$0xf] }
 0xcd5   : > { %vm5745_vm15 = vmor %vm5743_vm14, %vm5744_vm13 }
 0xcd6   : > { %v5739_v56 = vmul.f32 %v7930_v4, %v5738_v31  ;;  %v5736_v38 = vsel %vm5735_vm12, %v7928_v44, %v5732_v23 }
 0xcd7   : > { %v5747_v0 = vmul.f32 %v5736_v38, %v10118_v18 }
 0xcd8   : > { %v5740_v57 = vmul.f32 0.5, %v5739_v56 }
 0xcd9   : > { %v5752_v5 = vmul.f32 %v7767_v25, %v5747_v0 }
 0xcda   : > { %v5741_v2 = vsub.f32 1.5, %v5740_v57 }
 0xcdc   : > { %v5742_v45 = vmul.f32 %v7930_v4, %v5741_v2 }
 0xcde   : > { %v5746_v52 = vsel %vm5745_vm15, %v7930_v4, %v5742_v45 }
 0xcdf   : > { %v5748_v34 = vmul.f32 %v5746_v52, %v10127_v19  ;;  %v7461_v52 = vld [vmem:[%s10433_s14] sm:$0xf] }
 0xce1   : > { %v5753_v22 = vmul.f32 %v7767_v25, %v5748_v34 }
 0xce3   : > { %v5754_v6 = vpack.c.bf16 %v5753_v22, %v5752_v5 }
 0xce5   : > { %7355 = vmatmul.msk.bf16.vlgmr.msrb.gmra.mxu0 %vm727_vm0, %v5754_v6  ;;  %7356 = vmatmul.msk.bf16.vlgmr.msrb.gmra.mxu1 %vm727_vm0, %v5754_v6 }
 0xce6   : > { %7389 = vmatmul.msk.bf16.vlgmr.msra.gmra.mxu2 %vm727_vm0, %v5754_v6  ;;  %7390 = vmatmul.msk.bf16.vlgmr.msra.gmra.mxu3 %vm727_vm0, %v5754_v6 }
 0xd62   : > { %v10269_v17 = vpop.f32.mrf.mxu0  ;;  %v10271_v30 = vpop.f32.mrf.mxu1 }
 0xd63   : > { %v7391_v50 = vmul.f32 -1.442695, %v10269_v17  ;;  %v7392_v40 = vmul.f32 -1.442695, %v10271_v30 }
 0xd65   : > { %7931 = vpow2.f32 %v7391_v50 }
 0xd66   : > { %7933 = vpow2.f32 %v7392_v40 }
 0xd69   : > { %v5875_v23 = vpop.f32.mrf.mxu2  ;;  %v5889_v34 = vpop.f32.mrf.mxu3 }
 0xd6a   : > { %v10287_v8 = vpop.f32.mrf.mxu0  ;;  %v10289_v59 = vpop.f32.mrf.mxu1 }
 0xd6b   : > { %v7932_v47 = vpop.eup %7931  ;;  %v7393_v41 = vmul.f32 -1.442695, %v10287_v8  ;;  %v7394_v7 = vmul.f32 -1.442695, %v10289_v59 }
 0xd6c   : > { %v7934_v61 = vpop.eup %7933  ;;  %v5906_v62 = vadd.f32 1.0, %v7932_v47 }
 0xd6d   : > { %v5907_v58 = vadd.f32 1.0, %v7934_v61  ;;  %7935 = vpow2.f32 %v7393_v41 }
 0xd6e   : > { %7937 = vrcp.f32 %v5906_v62  ;;  %v5921_v33 = vand.u32 2147483648, %v5906_v62  ;;  %vm5915_vm2 = vweird.f32 %v5906_v62  ;;  %v5919_v16 = vand.u32 2147483647, %v5906_v62 }
 0xd6f   : > { %7939 = vrcp.f32 %v5907_v58  ;;  %v5934_v31 = vand.u32 2147483647, %v5907_v58  ;;  %v5936_v38 = vand.u32 2147483648, %v5907_v58  ;;  %vm5930_vm5 = vweird.f32 %v5907_v58 }
 0xd70   : > { %7941 = vpow2.f32 %v7394_v7  ;;  %v5922_v45 = vor.u32 1.1754944e-38, %v5921_v33  ;;  %vm5920_vm6 = vcmp.eq.f32.partialorder %v5919_v16, 8.507059e+37  ;;  %v7477_v16 = vld [vmem:[%s10433_s14 + $0x20] sm:$0xf] }
 0xd71   : > { %vm5935_vm11 = vcmp.eq.f32.partialorder %v5934_v31, 8.507059e+37  ;;  %v5937_v36 = vor.u32 1.1754944e-38, %v5936_v38  ;;  %v5877_v41 = vpop.f32.mrf.mxu2  ;;  %v5891_v11 = vpop.f32.mrf.mxu3  ;;  %v7479_v31 = vld [vmem:[%s10433_s14 + $0x28] sm:$0xf0]  ;;  %v7709_v38 = vld [vmem:[%s10433_s14 + $0x14] sm:$0xf] }
 0xd73   : > { %v7936_v28 = vpop.eup %7935 }
 0xd74   : > { %v7938_v43 = vpop.eup %7937  ;;  %v5908_v29 = vadd.f32 1.0, %v7936_v28 }
 0xd75   : > { %v7940_v37 = vpop.eup %7939  ;;  %v5911_v42 = vmul.f32 %v7938_v43, %v5906_v62  ;;  %vm5916_vm1 = vweird.f32 %v7938_v43 }
 0xd76   : > { %v7942_v32 = vpop.eup %7941  ;;  %v5926_v14 = vmul.f32 %v7940_v37, %v5907_v58  ;;  %7943 = vrcp.f32 %v5908_v29  ;;  %vm10299_vm3 = vmor %vm5915_vm2, %vm5916_vm1  ;;  %vm5931_vm4 = vweird.f32 %v7940_v37  ;;  %v5951_v25 = vand.u32 2147483648, %v5908_v29 }
 0xd77   : > { %v5912_v9 = vsub.f32 1.0, %v5911_v42  ;;  %v5909_v13 = vadd.f32 1.0, %v7942_v32  ;;  %vm10305_vm7 = vmor %vm5930_vm5, %vm5931_vm4  ;;  %v5949_v22 = vand.u32 2147483647, %v5908_v29  ;;  %vm5945_vm8 = vweird.f32 %v5908_v29 }
 0xd78   : > { %v5927_v53 = vsub.f32 1.0, %v5926_v14  ;;  %v5952_v10 = vor.u32 1.1754944e-38, %v5951_v25 }
 0xd79   : > { %v5913_v26 = vmul.f32 %v7938_v43, %v5912_v9  ;;  %7945 = vrcp.f32 %v5909_v13  ;;  %v5966_v49 = vand.u32 2147483648, %v5909_v13  ;;  %v5964_v1 = vand.u32 2147483647, %v5909_v13 }
 0xd7a   : > { %v5928_v12 = vmul.f32 %v7940_v37, %v5927_v53  ;;  %vm5950_vm13 = vcmp.eq.f32.partialorder %v5949_v22, 8.507059e+37  ;;  %vm5960_vm14 = vweird.f32 %v5909_v13 }
 0xd7b   : > { %v5914_v44 = vadd.f32 %v7938_v43, %v5913_v26  ;;  %v5967_v24 = vor.u32 1.1754944e-38, %v5966_v49  ;;  %vm5965_vm1 = vcmp.eq.f32.partialorder %v5964_v1, 8.507059e+37 }
 0xd7c   : > { %v7944_v54 = vpop.eup %7943  ;;  %v5929_v4 = vadd.f32 %v7940_v37, %v5928_v12  ;;  %v7714_v12 = vld [vmem:[%s10433_s14 + $0x34] sm:$0xf0] }
 0xd7d   : > { %v5941_v55 = vmul.f32 %v7944_v54, %v5908_v29  ;;  %v5918_v57 = vsel %vm10299_vm3, %v7938_v43, %v5914_v44  ;;  %vm5946_vm10 = vweird.f32 %v7944_v54  ;;  %v7713_v44 = vld [vmem:[%s10433_s14 + $0x34] sm:$0xf] }
 0xd7e   : > { %v5923_v6 = vsel %vm5920_vm6, %v5922_v45, %v5918_v57  ;;  %v5933_v15 = vsel %vm10305_vm7, %v7940_v37, %v5929_v4  ;;  %vm5947_vm9 = vmor %vm5945_vm8, %vm5946_vm10  ;;  %v7710_v57 = vld [vmem:[%s10433_s14 + $0x14] sm:$0xf0]  ;;  %v7471_v45 = vld [vmem:[%s10433_s14 + $0x18] sm:$0xf0] }
 0xd7f   : > { %v7946_v56 = vpop.eup %7945  ;;  %v5942_v2 = vsub.f32 1.0, %v5941_v55  ;;  %v5970_v39 = vmul.f32 %v5923_v6, %v10269_v17  ;;  %v5938_v51 = vsel %vm5935_vm11, %v5937_v36, %v5933_v15  ;;  %v7712_v55 = vld [vmem:[%s10433_s14 + $0x24] sm:$0xf0]  ;;  %v7474_v25 = vor.u32 %v7709_v38, %v7471_v45  ;;  %v7463_v15 = vld [vmem:[%s10433_s14 + $0x8] sm:$0xf0] }
 0xd80   : > { %v5956_v0 = vmul.f32 %v7946_v56, %v5909_v13  ;;  %vm5961_vm12 = vweird.f32 %v7946_v56  ;;  %v5971_v20 = vmul.f32 %v5938_v51, %v10271_v30  ;;  %v7478_v4 = vor.u32 %v7712_v55, %v7477_v16 }
 0xd81   : > { %v5943_v5 = vmul.f32 %v7944_v54, %v5942_v2  ;;  %vm5962_vm15 = vmor %vm5960_vm14, %vm5961_vm12  ;;  %v5974_v61 = vmul.f32 %v5970_v39, %v5875_v23  ;;  %v7482_v23 = vor.u32 %v7711_v3, %v7479_v31 }
 0xd82   : > { %v5957_v63 = vsub.f32 1.0, %v5956_v0  ;;  %v5975_v58 = vmul.f32 %v5971_v20, %v5889_v34  ;;  %v7708_v34 = vld [vmem:[%s10433_s14 + $0x4] sm:$0xf0] }
 0xd83   : > { %v5944_v48 = vadd.f32 %v7944_v54, %v5943_v5  ;;  %v7707_v5 = vld [vmem:[%s10433_s14 + $0x4] sm:$0xf]  ;;  %v7462_v6 = vor.u32 %v7708_v34, %v7461_v52 }
 0xd84   : > { %v5958_v46 = vmul.f32 %v7946_v56, %v5957_v63  ;;  %v7466_v63 = vor.u32 %v7707_v5, %v7463_v15 }
 0xd85   : > { %v5948_v50 = vsel %vm5947_vm9, %v7944_v54, %v5944_v48  ;;  %v7487_v54 = vld [vmem:[%s10433_s14 + $0x38] sm:$0xf0] }
 0xd86   : > { %v5953_v40 = vsel %vm5950_vm13, %v5952_v10, %v5948_v50  ;;  %v5959_v60 = vadd.f32 %v7946_v56, %v5958_v46  ;;  %v7490_v33 = vor.u32 %v7713_v44, %v7487_v54 }
 0xd87   : > { %v5972_v27 = vmul.f32 %v5953_v40, %v10287_v8 }
 0xd88   : > { %v5963_v47 = vsel %vm5962_vm15, %v7946_v56, %v5959_v60  ;;  %6222 = vmatpush.bf16.msrb.mxu3 %v7490_v33  ;;  %v7469_v56 = vld [vmem:[%s10433_s14 + $0x10] sm:$0xf] }
 0xd89   : > { %v5968_v62 = vsel %vm5965_vm1, %v5967_v24, %v5963_v47  ;;  %v5976_v7 = vmul.f32 %v5972_v27, %v5877_v41  ;;  %v7470_v2 = vor.u32 %v7710_v57, %v7469_v56 }
 0xd8a   : > { %v5973_v17 = vmul.f32 %v5968_v62, %v10289_v59 }
 0xd8b   : > { %v5978_v35 = vpack.c.bf16 %v5976_v7, %v5974_v61  ;;  %v7768_v61 = vld [vmem:[%s10432_s13] ss:$0 sm:$0xff] }
 0xd8c   : > { %v5977_v28 = vmul.f32 %v5973_v17, %v5891_v11  ;;  %6223 = vmatpush.bf16.msrb.mxu3 %v7482_v23 }
 0xd8d   : > { %6084 = vmatmul.bf16.vlgmr.msra.gmra.mxu0 %v5978_v35 }
 0xd8e   : > { %v5979_v43 = vpack.c.bf16 %v5977_v28, %v5975_v58  ;;  %v6155_v28 = vld [vmem:[%s10434_s15] sm:$0x3] }
 0xd90   : > { %6098 = vmatmul.bf16.vlgmr.msra.gmra.mxu1 %v5979_v43  ;;  %6224 = vmatpush.bf16.msrb.mxu3 %v7474_v25  ;;  %v6157_v43 = vperm.slane %v6155_v28, 0 }
 0xd94   : > { %6225 = vmatpush.bf16.msrb.mxu3 %v7466_v63 }
 0xe0a   : > { %v6085_v8 = vpop.f32.mrf.mxu0 }
 0xe0d   : > { %v6099_v29 = vpop.f32.mrf.mxu1 }
 0xe0e   : > { %v6100_v37 = vadd.f32 %v6099_v29, %v6085_v8  ;;  %v6158_v8 = vperm.slane %v6155_v28, 1 }
 0xe10   : > { %v10316_v30 = vadd.f32 %v6100_v37, %v10118_v18  ;;  %v7485_v18 = vld [vmem:[%s10433_s14 + $0x30] sm:$0xf] }
 0xe12   : > { %v6107_v42 = vmul.f32 %v10316_v30, %v10316_v30  ;;  %v6087_v32 = vpop.f32.mrf.mxu0 }
 0xe14   : > { %v6109_v14 = vsel %vm727_vm0, %v6107_v42, 0.0 }
 0xe15   : > { %v6101_v59 = vpop.f32.mrf.mxu1  ;;  %6110 = vadd.xlane.f32.xlu1 %v6109_v14 }
 0xe16   : > { %v6102_v9 = vadd.f32 %v6101_v59, %v6087_v32 }
 0xe18   : > { %v10322_v13 = vadd.f32 %v6102_v9, %v10127_v19  ;;  %v7486_v19 = vor.u32 %v7714_v12, %v7485_v18 }
 0xe1a   : > { %v6108_v53 = vmul.f32 %v10322_v13, %v10322_v13  ;;  %6208 = vmatpush.bf16.msrb.mxu2 %v7486_v19 }
 0xe1c   : > { %v6112_v26 = vsel %vm727_vm0, %v6108_v53, 0.0 }
 0xe1d   : > { %6113 = vadd.xlane.f32.xlu2 %v6112_v26 }
 0xe1e   : > { %6209 = vmatpush.bf16.msrb.mxu2 %v7478_v4 }
 0xe22   : > { %6210 = vmatpush.bf16.msrb.mxu2 %v7470_v2 }
 0xe26   : > { %6211 = vmatpush.bf16.msrb.mxu2 %v7462_v6 }
 0xe88   : > { %v6111_v0 = vpop.xlane.xlu1 %6110 }
 0xe89   : > { %v6115_v22 = vmul.f32 %v6111_v0, %v8200_v21 }
 0xe8b   : > { %v6117_v36 = vadd.f32 1.1920929e-07, %v6115_v22 }
 0xe8d   : > { %7947 = vrsqrt.f32 %v6117_v36  ;;  %vm6125_vm3 = vweird.f32 %v6117_v36 }
 0xe90   : > { %v6114_v48 = vpop.xlane.xlu2 %6113 }
 0xe91   : > { %v6116_v49 = vmul.f32 %v6114_v48, %v8200_v21 }
 0xe93   : > { %v7948_v10 = vpop.eup %7947  ;;  %v6118_v46 = vadd.f32 1.1920929e-07, %v6116_v49 }
 0xe94   : > { %v6120_v1 = vmul.f32 %v7948_v10, %v6117_v36  ;;  %vm6126_vm2 = vweird.f32 %v7948_v10 }
 0xe95   : > { %7949 = vrsqrt.f32 %v6118_v46  ;;  %vm6127_vm4 = vmor %vm6125_vm3, %vm6126_vm2  ;;  %vm6135_vm6 = vweird.f32 %v6118_v46 }
 0xe96   : > { %v6121_v39 = vmul.f32 %v7948_v10, %v6120_v1 }
 0xe98   : > { %v6122_v51 = vmul.f32 0.5, %v6121_v39 }
 0xe9a   : > { %v6123_v50 = vsub.f32 1.5, %v6122_v51 }
 0xe9b   : > { %v7950_v40 = vpop.eup %7949 }
 0xe9c   : > { %v6130_v60 = vmul.f32 %v7950_v40, %v6118_v46  ;;  %v6124_v27 = vmul.f32 %v7948_v10, %v6123_v50  ;;  %vm6136_vm5 = vweird.f32 %v7950_v40 }
 0xe9d   : > { %vm6137_vm7 = vmor %vm6135_vm6, %vm6136_vm5 }
 0xe9e   : > { %v6131_v24 = vmul.f32 %v7950_v40, %v6130_v60  ;;  %v6128_v47 = vsel %vm6127_vm4, %v7948_v10, %v6124_v27 }
 0xe9f   : > { %v6139_v62 = vmul.f32 %v6128_v47, %v10316_v30 }
 0xea0   : > { %v6132_v20 = vmul.f32 0.5, %v6131_v24 }
 0xea1   : > { %v6144_v35 = vmul.f32 %v7768_v61, %v6139_v62 }
 0xea2   : > { %v6133_v41 = vsub.f32 1.5, %v6132_v20 }
 0xea4   : > { %v6134_v21 = vmul.f32 %v7950_v40, %v6133_v41 }
 0xea6   : > { %v6138_v7 = vsel %vm6137_vm7, %v7950_v40, %v6134_v21 }
 0xea7   : > { %v6140_v17 = vmul.f32 %v6138_v7, %v10322_v13 }
 0xea9   : > { %v6145_v11 = vmul.f32 %v7768_v61, %v6140_v17 }
 0xeab   : > { %v6146_v58 = vpack.c.bf16 %v6145_v11, %v6144_v35 }
 0xead   : > { %7491 = vmatmul.msk.bf16.vlgmr.msrb.gmra.mxu2 %vm727_vm0, %v6146_v58  ;;  %7492 = vmatmul.msk.bf16.vlgmr.msrb.gmra.mxu3 %vm727_vm0, %v6146_v58 }
 0xf30   : > { %v6213_v29 = vpop.f32.mrf.mxu2  ;;  %v6227_v37 = vpop.f32.mrf.mxu3 }
 0xf31   : > { %v6214_v30 = vadd.f32 %v6213_v29, %v6157_v43  ;;  %v6228_v42 = vadd.f32 %v6227_v37, %v6158_v8 }
 0xf33   : > { %6232 = vst [vmem:[%s514_s28] sm:$0xff] %v6214_v30 }
 0xf34   : > { %6233 = vst [vmem:[%s514_s28 + $0x8] sm:$0xff] %v6228_v42 }
 0xf38   : > { %v6215_v32 = vpop.f32.mrf.mxu2  ;;  %v6229_v14 = vpop.f32.mrf.mxu3 }
 0xf39   : > { %v6216_v59 = vadd.f32 %v6215_v32, %v6157_v43  ;;  %v6230_v9 = vadd.f32 %v6229_v14, %v6158_v8 }
 0xf3b   : > { %6234 = vst [vmem:[%s514_s28 + $0x10] sm:$0xff] %v6216_v59 }
 0xf3c   : > { %6235 = vst [vmem:[%s514_s28 + $0x18] sm:$0xff] %v6230_v9 }
 0xf3d   : > { %7986 = shalt.err (!%p7983_p3)
}
 0xf3e   : > { %s8026_s19 = smov 256   ;;  %s8027_s28 = smov 16  }
 0xf3f   : > { %7720 = dma.vmem_to_hbm [thread:$0]  (%p8151_p5), %s6250_s17, 512, %s6252_s21, %s6237_s25, %s8026_s19, %s8026_s19, %s8027_s28  }
 0xf40 PF: > { %s10470_s27 = sld [smem:[#allocation7_spill]] }
 0xf41   : > { %s10471_s1 = sld [smem:[#allocation5_spill]] }
 0xf46   : > { %p7726_p4 = scmp.ge.s32.totalorder %s10470_s27, 2 }
 0xf47   : > { %s6266_s18 = sand.u32 1, %s10471_s1  }
 0xf48   : > { %p7723_p7 = pnand %p7726_p4, %p8155_p6  ;;  %s6267_s23 = scalar_lea.sflag [#allocation3], %s6266_s18 }
 0xf4a   : > { %p7724_p8 = pneg %p7723_p7 }
 0xf4c   : > { %8004 = dma.done.wait (%p7724_p8), %s6267_s23, 512  }
 0xf4d   : > { %8006 = vsyncadd (%p7724_p8), %s6267_s23, 4294966784  ;;  %s10473_s24 = sld [smem:[#allocation8_spill]]  ;;  %s10476_s21 = smov %s8013_s22 }
 0xf4e   : > { %s10474_s20 = sld [smem:[#allocation6_spill]] }
 0xf4f   : > { %s10475_s23 = sld [smem:[#allocation9_spill]] }
 0xf53   : > { %p26_p9 = scmp.ge.s32.totalorder %s10473_s24, 4  }
 0xf54   : > { %s10477_s22 = smov %s10474_s20 }
 0xf55   :  { %28 = sbr.rel (!%p26_p9) target bundleno = 7 (0x7), region = 128 }
 0xf5a   :  { %6273 = vsyncpa [#allocation3], 1 }
 0xf5b   :  { %6275 = vsyncpa [#allocation3 + $0x1], 1 }

</bundles_post_ra>
